<compile_context>
chip_gen: v6e
topology: v6e:2x2x1
jax: 0.10.0
libtpu: 0.0.40
codegen_flags: <defaults>
</compile_context>

<pallas_src>
import math
import functools

import jax
import jax.numpy as jnp
from jax.experimental import pallas as pl
from jax.experimental.pallas import tpu as pltpu

LN_EPS = 1e-6  # TODO(synk): timm ViT convention; torch nn.LayerNorm default is 1e-5.


# ----------------------------- host-side helpers ------------------------------
def _vmem_limit_bytes():
    """Generation-aware VMEM budget: ~0.75x physical, 64 MiB fallback."""
    default = 64 * 1024 * 1024
    try:
        cap = int(pltpu.get_tpu_info().vmem_capacity_bytes)
        return max(default // 2, (cap * 3) // 4)   # 96 MiB v5e/v6e, 48 MiB v7x
    except Exception:
        return default


def _row_tile(m, cap):
    """Largest row tile <= cap that divides m and is (8-mult or full)."""
    for c in range(min(cap, m), 0, -1):
        if m % c == 0 and (c % 8 == 0 or c == m):
            return c
    return m


def _pick_batch_tile(b, n, d, hidden, num_heads, fc_out, vmem_limit, cap=8):
    """Largest batch tile dividing b whose rough VMEM footprint fits the budget.

    Note: on v7x (2 TensorCores) a grid extent of 1 on the parallel batch axis
    leaves one core idle; for tiny batches that trade-off is accepted in favor
    of weight-DMA amortization.
    """
    hd_pad = max(d // num_heads, 128)  # lane padding of the head scratches

    def est(tb):
        m = tb * n
        scratch = m * d * 4 + 3 * num_heads * m * hd_pad * 2 + m * d * 2
        weights = 2 * 2 * (3 * d * d + d * d + 2 * d * hidden)   # dbl-buffered bf16
        io = 2 * (tb * n * d * 2) + n * d * 4 + 2 * d * fc_out * 2
        live = 2 * m * max(3 * d, hidden) * 4                     # rough intermediates
        return scratch + weights + io + live

    tb = max(1, min(cap, b))
    while tb > 1 and (b % tb or est(tb) > vmem_limit // 2):
        tb -= 1
    return tb


# ----------------------------- in-kernel helpers ------------------------------
def _gelu(x):
    # exact (erf) GELU, matching torch.nn.GELU default (f32 math)
    return 0.5 * x * (1.0 + jax.lax.erf(x * 0.7071067811865476))


def _layernorm(x, g, b, eps=LN_EPS):
    mu = jnp.mean(x, axis=-1, keepdims=True)
    var = jnp.mean((x - mu) ** 2, axis=-1, keepdims=True)
    return (x - mu) * jax.lax.rsqrt(var + eps) * g + b


# ----------------------- patch-embed linear (tiled over M) --------------------
def _patch_linear_kernel(x_ref, w_ref, b_ref, o_ref):
    acc = jnp.dot(x_ref[...], w_ref[...], preferred_element_type=jnp.float32)
    o_ref[...] = (acc + b_ref[...]).astype(o_ref.dtype)


def patch_embed_linear(x_bf16, w_bf16, b_f32, *, tile_m=512, vmem_limit=None):
    m, kdim = x_bf16.shape
    n = w_bf16.shape[1]
    tm = _row_tile(m, tile_m)
    return pl.pallas_call(
        _patch_linear_kernel,
        out_shape=jax.ShapeDtypeStruct((m, n), jnp.bfloat16),
        grid=(m // tm,),
        in_specs=[pl.BlockSpec((tm, kdim), lambda i: (i, 0)),
                  pl.BlockSpec((kdim, n), lambda i: (0, 0)),
                  pl.BlockSpec((1, n), lambda i: (0, 0))],
        out_specs=pl.BlockSpec((tm, n), lambda i: (i, 0)),
        compiler_params=pltpu.CompilerParams(
            dimension_semantics=("parallel",),
            vmem_limit_bytes=vmem_limit or _vmem_limit_bytes()),
    )(x_bf16, w_bf16, b_f32)


# ------- fused transformer encoder + final LN + pool + fc (one call) ----------
def _encoder_kernel(x_ref, pos_ref,
                    ln1g_ref, ln1b_ref, wqkv_ref, bqkv_ref,
                    wproj_ref, bproj_ref, ln2g_ref, ln2b_ref,
                    w1_ref, b1_ref, w2_ref, b2_ref,
                    ng_ref, nb_ref, wfc_ref, bfc_ref,
                    o_ref,
                    x_vmem, q3_ref, k3_ref, v3_ref, attn_ref,
                    *, num_heads):
    layer = pl.program_id(1)
    tb, n_tok, d = x_ref.shape
    m = tb * n_tok
    hd = d // num_heads

    # layer 0: load this batch tile's patch embeddings + pos embed (f32 resident)
    @pl.when(layer == 0)
    def _():
        x0 = x_ref[...].astype(jnp.float32) + pos_ref[...]      # (tb, n, d) f32
        x_vmem[...] = x0.reshape(m, d)

    x = x_vmem[...]                                             # (m, d) f32, resident

    # --- multi-head self-attention (pre-LN); MXU inputs bf16, math f32 ---
    h = _layernorm(x, ln1g_ref[0], ln1b_ref[0]).astype(jnp.bfloat16)
    qkv = jnp.dot(h, wqkv_ref[0], preferred_element_type=jnp.float32) + bqkv_ref[0]
    qkv = qkv.astype(jnp.bfloat16)                              # (m, 3d)
    # stage heads into (H, m, hd) scratches (1/sqrt(hd) already folded into w_qkv)
    for hi in range(num_heads):
        q3_ref[hi] = qkv[:, hi * hd:(hi + 1) * hd]
        k3_ref[hi] = qkv[:, d + hi * hd:d + (hi + 1) * hd]
        v3_ref[hi] = qkv[:, 2 * d + hi * hd:2 * d + (hi + 1) * hd]

    # per batch element: head-batched scores / softmax / PV (no cross-batch mixing)
    for ti in range(tb):
        r0 = ti * n_tok
        q_t = q3_ref[:, r0:r0 + n_tok, :]                       # (H, n, hd) bf16
        k_t = k3_ref[:, r0:r0 + n_tok, :]
        v_t = v3_ref[:, r0:r0 + n_tok, :]
        s = jnp.einsum('hqd,hkd->hqk', q_t, k_t,
                       preferred_element_type=jnp.float32)       # (H, n, n) f32
        s = s - jnp.max(s, axis=-1, keepdims=True)
        p = jnp.exp(s)
        p = p * pl.reciprocal(jnp.sum(p, axis=-1, keepdims=True), approx=True)
        o_t = jnp.einsum('hqk,hkd->hqd', p.astype(jnp.bfloat16), v_t,
                         preferred_element_type=jnp.float32)     # (H, n, hd) f32
        for hi in range(num_heads):
            attn_ref[r0:r0 + n_tok, hi * hd:(hi + 1) * hd] = o_t[hi].astype(jnp.bfloat16)

    x = x + jnp.dot(attn_ref[...], wproj_ref[0],
                    preferred_element_type=jnp.float32) + bproj_ref[0]

    # --- MLP (pre-LN) ---
    h2 = _layernorm(x, ln2g_ref[0], ln2b_ref[0]).astype(jnp.bfloat16)
    mlp = jnp.dot(h2, w1_ref[0], preferred_element_type=jnp.float32) + b1_ref[0]
    mlp = _gelu(mlp).astype(jnp.bfloat16)
    x = x + jnp.dot(mlp, w2_ref[0], preferred_element_type=jnp.float32) + b2_ref[0]

    x_vmem[...] = x

    # --- last layer epilogue: final LN + token-mean pool + fc head ---
    @pl.when(layer == pl.num_programs(1) - 1)
    def _():
        y = _layernorm(x, ng_ref[...], nb_ref[...])              # (m, d) f32
        pooled = jnp.mean(y.reshape(tb, n_tok, d), axis=1)       # (tb, d)
        out = jnp.dot(pooled.astype(jnp.bfloat16), wfc_ref[...],
                      preferred_element_type=jnp.float32) + bfc_ref[...]
        o_ref[...] = out.reshape(tb, 1, -1).astype(o_ref.dtype)


def fused_encoder(x_bnd, params, *, num_heads, batch_tile, vmem_limit):
    b, n, d = x_bnd.shape
    depth = params["w_qkv"].shape[0]
    fc_out = params["w_fc"].shape[1]
    hd = d // num_heads
    tb = batch_tile
    assert b % tb == 0 and d % num_heads == 0

    names = ("ln1_g", "ln1_b", "w_qkv", "b_qkv", "w_proj", "b_proj",
             "ln2_g", "ln2_b", "w_fc1", "b_fc1", "w_fc2", "b_fc2")
    weights = [params[k] for k in names]
    finals = [params["norm_g"], params["norm_b"], params["w_fc"], params["b_fc"]]

    def layer_spec(arr):
        zeros = (0,) * (arr.ndim - 1)
        return pl.BlockSpec((1,) + arr.shape[1:],
                            lambda bi, li, _z=zeros: (li,) + _z)

    def const_spec(arr):
        zeros = (0,) * arr.ndim
        return pl.BlockSpec(arr.shape, lambda bi, li, _z=zeros: _z)

    res = pl.pallas_call(
        functools.partial(_encoder_kernel, num_heads=num_heads),
        out_shape=jax.ShapeDtypeStruct((b, 1, fc_out), jnp.float32),
        grid=(b // tb, depth),                     # batch tiles outer, layers inner
        in_specs=[pl.BlockSpec((tb, n, d), lambda bi, li: (bi, 0, 0)),
                  pl.BlockSpec((1, n, d), lambda bi, li: (0, 0, 0))]
                 + [layer_spec(w) for w in weights]
                 + [const_spec(w) for w in finals],
        out_specs=pl.BlockSpec((tb, 1, fc_out), lambda bi, li: (bi, 0, 0)),
        scratch_shapes=[
            pltpu.VMEM((tb * n, d), jnp.float32),                # resident activation
            pltpu.VMEM((num_heads, tb * n, hd), jnp.bfloat16),   # q (heads leading)
            pltpu.VMEM((num_heads, tb * n, hd), jnp.bfloat16),   # k
            pltpu.VMEM((num_heads, tb * n, hd), jnp.bfloat16),   # v
            pltpu.VMEM((tb * n, d), jnp.bfloat16),               # merged attn output
        ],
        compiler_params=pltpu.CompilerParams(
            dimension_semantics=("parallel", "arbitrary"),
            vmem_limit_bytes=vmem_limit),
    )(x_bnd, params["pos_embed"], *weights, *finals)
    return res.reshape(b, fc_out)


# ------------------------------- parameters -----------------------------------
def init_params(key, *, in_chans, patch_size, embed_dim, depth, num_heads,
                mlp_ratio, num_patches, fc_out=384):
    hidden = int(embed_dim * mlp_ratio)
    patch_dim = in_chans * patch_size * patch_size
    patch_dim_padded = patch_dim + ((-patch_dim) % 128)          # lane-aligned K
    hd = embed_dim // num_heads
    scale = 1.0 / math.sqrt(hd)

    keys = iter(jax.random.split(key, 32))
    nrm = lambda shape: (0.02 * jax.random.normal(next(keys), shape)).astype(jnp.float32)

    w_patch = nrm((patch_dim, embed_dim))
    w_patch = jnp.pad(w_patch, ((0, patch_dim_padded - patch_dim), (0, 0)))

    # fold 1/sqrt(head_dim) into the q columns of the qkv projection (host-side)
    w_qkv = nrm((depth, embed_dim, 3 * embed_dim))
    b_qkv = nrm((depth, 1, 3 * embed_dim))                        # qkv_bias=True
    q_scale = jnp.concatenate([jnp.full((embed_dim,), scale, jnp.float32),
                               jnp.ones((2 * embed_dim,), jnp.float32)])
    w_qkv = w_qkv * q_scale
    b_qkv = b_qkv * q_scale

    return {
        # matmul weights stored in bf16 (MXU inputs); biases / LN / pos in f32
        "w_patch": w_patch.astype(jnp.bfloat16),
        "b_patch": nrm((1, embed_dim)),
        "pos_embed": nrm((1, num_patches, embed_dim)),
        "norm_g": jnp.ones((1, embed_dim), jnp.float32),
        "norm_b": jnp.zeros((1, embed_dim), jnp.float32),
        "w_fc": nrm((embed_dim, fc_out)).astype(jnp.bfloat16),
        "b_fc": nrm((1, fc_out)),
        # per-layer params stacked along a leading depth axis for the fused kernel
        "ln1_g": jnp.ones((depth, 1, embed_dim), jnp.float32),
        "ln1_b": jnp.zeros((depth, 1, embed_dim), jnp.float32),
        "w_qkv": w_qkv.astype(jnp.bfloat16),
        "b_qkv": b_qkv,
        "w_proj": nrm((depth, embed_dim, embed_dim)).astype(jnp.bfloat16),
        "b_proj": nrm((depth, 1, embed_dim)),
        "ln2_g": jnp.ones((depth, 1, embed_dim), jnp.float32),
        "ln2_b": jnp.zeros((depth, 1, embed_dim), jnp.float32),
        "w_fc1": nrm((depth, embed_dim, hidden)).astype(jnp.bfloat16),
        "b_fc1": nrm((depth, 1, hidden)),
        "w_fc2": nrm((depth, hidden, embed_dim)).astype(jnp.bfloat16),
        "b_fc2": nrm((depth, 1, embed_dim)),
    }


# --------------------------------- forward ------------------------------------
def encoder_effformer_forward(x_nchw, params, *, patch_size, num_heads,
                              batch_tile_cap=8):
    b, c, h, w = x_nchw.shape
    ps = patch_size
    ph, pw = h // ps, w // ps
    n = ph * pw
    d = params["w_patch"].shape[1]
    hidden = params["w_fc1"].shape[-1]
    fc_out = params["w_fc"].shape[1]

    vmem_limit = _vmem_limit_bytes()

    # im2col for the stride==kernel PatchEmbed conv (NCHW -> (B*N, C*ps*ps));
    # inner flatten order (C, kh, kw) matches torch Conv2d weight flattening.
    # K dim zero-padded to a multiple of 128 (weight rows padded identically).
    patches = x_nchw.reshape(b, c, ph, ps, pw, ps)
    patches = patches.transpose(0, 2, 4, 1, 3, 5).reshape(b * n, c * ps * ps)
    kpad = params["w_patch"].shape[0] - c * ps * ps
    if kpad:
        patches = jnp.pad(patches, ((0, 0), (0, kpad)))
    patches = patches.astype(jnp.bfloat16)

    x = patch_embed_linear(patches, params["w_patch"], params["b_patch"],
                           vmem_limit=vmem_limit)
    x = x.reshape(b, n, d)                       # bf16 activations between kernels

    # pos_embed add + all transformer blocks + final LN + pool + fc, fully fused
    # (drop rates = 0 -> dropout / drop-path are no-ops)
    tb = _pick_batch_tile(b, n, d, hidden, num_heads, fc_out, vmem_limit,
                          cap=batch_tile_cap)
    return fused_encoder(x, params, num_heads=num_heads, batch_tile=tb,
                         vmem_limit=vmem_limit)


if __name__ == "__main__":
    B, C, IMG, PS = 2, 3, 16, 4
    D, DEPTH, HEADS, MLP_RATIO = 128, 2, 4, 4.0
    N = (IMG // PS) ** 2

    key = jax.random.PRNGKey(0)
    kx, kp = jax.random.split(key)
    x = jax.random.normal(kx, (B, C, IMG, IMG), jnp.float32)
    params = init_params(kp, in_chans=C, patch_size=PS, embed_dim=D, depth=DEPTH,
                         num_heads=HEADS, mlp_ratio=MLP_RATIO, num_patches=N)

    fwd = jax.jit(functools.partial(encoder_effformer_forward,
                                    patch_size=PS, num_heads=HEADS))
    out = jax.block_until_ready(fwd(x, params))
    assert out.shape == (B, 384) and out.dtype == jnp.float32
    print("KERNEL_OK")
</pallas_src>

<mosaic_0001>
module attributes {stable_mosaic.version = 11 : i64} {
  func.func @_patch_linear_kernel(%arg0: i32, %arg1: memref<32x128xbf16, #tpu.memory_space<vmem>>, %arg2: memref<128x128xbf16, #tpu.memory_space<vmem>>, %arg3: memref<1x128xf32, #tpu.memory_space<vmem>>, %arg4: memref<32x128xbf16, #tpu.memory_space<vmem>>) attributes {dimension_semantics = [#tpu.dimension_semantics<parallel>], iteration_bounds = array<i64: 1>, scalar_prefetch = 0 : i64, scratch_operands = 0 : i64, tpu.core_type = #tpu.core_type<tc>, window_params = [{transform_indices = @transform_0, window_bounds = array<i64: 32, 128>}, {pipeline_mode = #tpu.pipeline_mode<synchronous>, transform_indices = @transform_1, window_bounds = array<i64: 128, 128>}, {pipeline_mode = #tpu.pipeline_mode<synchronous>, transform_indices = @transform_2, window_bounds = array<i64: 1, 128>}, {transform_indices = @transform_3, window_bounds = array<i64: 32, 128>}]} {
    %c0 = arith.constant 0 : index
    %c0_0 = arith.constant 0 : index
    %0 = vector.load %arg1[%c0, %c0_0] : memref<32x128xbf16, #tpu.memory_space<vmem>>, vector<32x128xbf16>
    %c0_1 = arith.constant 0 : index
    %c0_2 = arith.constant 0 : index
    %1 = vector.load %arg2[%c0_1, %c0_2] : memref<128x128xbf16, #tpu.memory_space<vmem>>, vector<128x128xbf16>
    %cst = arith.constant dense<0.000000e+00> : vector<32x128xf32>
    %2 = tpu.matmul %0, %1, %cst {dimension_numbers = #tpu.dot_dimension_numbers<[1], [0], [0], [1], [0, 0, 1, 1], [], []>} : vector<32x128xbf16>, vector<128x128xbf16>, vector<32x128xf32> -> vector<32x128xf32>
    %c0_3 = arith.constant 0 : index
    %c0_4 = arith.constant 0 : index
    %3 = vector.load %arg3[%c0_3, %c0_4] : memref<1x128xf32, #tpu.memory_space<vmem>>, vector<1x128xf32>
    %4 = vector.broadcast %3 : vector<1x128xf32> to vector<32x128xf32>
    %5 = arith.addf %2, %4 : vector<32x128xf32>
    %6 = arith.truncf %5 : vector<32x128xf32> to vector<32x128xbf16>
    %c0_5 = arith.constant 0 : index
    %c0_6 = arith.constant 0 : index
    %7 = vector.load %arg4[%c0_5, %c0_6] : memref<32x128xbf16, #tpu.memory_space<vmem>>, vector<32x128xbf16>
    tpu.vector_store %arg4[%c0_5, %c0_6], %6 {strides = array<i32>} : memref<32x128xbf16, #tpu.memory_space<vmem>>, vector<32x128xbf16>,
    return
  }
  func.func @transform_0(%arg0: i32) -> (i32, i32) {
    %c0_i32 = arith.constant 0 : i32
    %c0_i32_0 = arith.constant 0 : i32
    return %arg0, %c0_i32 : i32, i32
  }
  func.func @transform_1(%arg0: i32) -> (i32, i32) {
    %c0_i32 = arith.constant 0 : i32
    %c0_i32_0 = arith.constant 0 : i32
    %c0_i32_1 = arith.constant 0 : i32
    return %c0_i32, %c0_i32_0 : i32, i32
  }
  func.func @transform_2(%arg0: i32) -> (i32, i32) {
    %c0_i32 = arith.constant 0 : i32
    %c0_i32_0 = arith.constant 0 : i32
    %c0_i32_1 = arith.constant 0 : i32
    return %c0_i32, %c0_i32_0 : i32, i32
  }
  func.func @transform_3(%arg0: i32) -> (i32, i32) {
    %c0_i32 = arith.constant 0 : i32
    %c0_i32_0 = arith.constant 0 : i32
    return %arg0, %c0_i32 : i32, i32
  }
}

module attributes {stable_mosaic.version = 11 : i64} {
  func.func @_encoder_kernel(%arg0: i32, %arg1: i32, %arg2: memref<2x16x128xbf16, #tpu.memory_space<vmem>>, %arg3: memref<1x16x128xf32, #tpu.memory_space<vmem>>, %arg4: memref<1x1x128xf32, #tpu.memory_space<vmem>>, %arg5: memref<1x1x128xf32, #tpu.memory_space<vmem>>, %arg6: memref<1x128x384xbf16, #tpu.memory_space<vmem>>, %arg7: memref<1x1x384xf32, #tpu.memory_space<vmem>>, %arg8: memref<1x128x128xbf16, #tpu.memory_space<vmem>>, %arg9: memref<1x1x128xf32, #tpu.memory_space<vmem>>, %arg10: memref<1x1x128xf32, #tpu.memory_space<vmem>>, %arg11: memref<1x1x128xf32, #tpu.memory_space<vmem>>, %arg12: memref<1x128x512xbf16, #tpu.memory_space<vmem>>, %arg13: memref<1x1x512xf32, #tpu.memory_space<vmem>>, %arg14: memref<1x512x128xbf16, #tpu.memory_space<vmem>>, %arg15: memref<1x1x128xf32, #tpu.memory_space<vmem>>, %arg16: memref<1x128xf32, #tpu.memory_space<vmem>>, %arg17: memref<1x128xf32, #tpu.memory_space<vmem>>, %arg18: memref<128x384xbf16, #tpu.memory_space<vmem>>, %arg19: memref<1x384xf32, #tpu.memory_space<vmem>>, %arg20: memref<2x1x384xf32, #tpu.memory_space<vmem>>, %arg21: memref<32x128xf32, #tpu.memory_space<vmem>>, %arg22: memref<4x32x32xbf16, #tpu.memory_space<vmem>>, %arg23: memref<4x32x32xbf16, #tpu.memory_space<vmem>>, %arg24: memref<4x32x32xbf16, #tpu.memory_space<vmem>>, %arg25: memref<32x128xbf16, #tpu.memory_space<vmem>>) attributes {dimension_semantics = [#tpu.dimension_semantics<parallel>, #tpu.dimension_semantics<arbitrary>], iteration_bounds = array<i64: 1, 2>, scalar_prefetch = 0 : i64, scratch_operands = 5 : i64, tpu.core_type = #tpu.core_type<tc>, window_params = [{transform_indices = @transform_0, window_bounds = array<i64: 2, 16, 128>}, {pipeline_mode = #tpu.pipeline_mode<synchronous>, transform_indices = @transform_1, window_bounds = array<i64: 1, 16, 128>}, {transform_indices = @transform_2, window_bounds = array<i64: 1, 1, 128>}, {transform_indices = @transform_3, window_bounds = array<i64: 1, 1, 128>}, {transform_indices = @transform_4, window_bounds = array<i64: 1, 128, 384>}, {transform_indices = @transform_5, window_bounds = array<i64: 1, 1, 384>}, {transform_indices = @transform_6, window_bounds = array<i64: 1, 128, 128>}, {transform_indices = @transform_7, window_bounds = array<i64: 1, 1, 128>}, {transform_indices = @transform_8, window_bounds = array<i64: 1, 1, 128>}, {transform_indices = @transform_9, window_bounds = array<i64: 1, 1, 128>}, {transform_indices = @transform_10, window_bounds = array<i64: 1, 128, 512>}, {transform_indices = @transform_11, window_bounds = array<i64: 1, 1, 512>}, {transform_indices = @transform_12, window_bounds = array<i64: 1, 512, 128>}, {transform_indices = @transform_13, window_bounds = array<i64: 1, 1, 128>}, {pipeline_mode = #tpu.pipeline_mode<synchronous>, transform_indices = @transform_14, window_bounds = array<i64: 1, 128>}, {pipeline_mode = #tpu.pipeline_mode<synchronous>, transform_indices = @transform_15, window_bounds = array<i64: 1, 128>}, {pipeline_mode = #tpu.pipeline_mode<synchronous>, transform_indices = @transform_16, window_bounds = array<i64: 128, 384>}, {pipeline_mode = #tpu.pipeline_mode<synchronous>, transform_indices = @transform_17, window_bounds = array<i64: 1, 384>}, {transform_indices = @transform_18, window_bounds = array<i64: 2, 1, 384>}]} {
    %c0_i32 = arith.constant 0 : i32
    %0 = arith.cmpi eq, %arg1, %c0_i32 : i32
    %1 = arith.extui %0 : i1 to i32
    %c0_i32_0 = arith.constant 0 : i32
    %2 = arith.cmpi ne, %1, %c0_i32_0 : i32
    scf.if %2 {
      %c0_130 = arith.constant 0 : index
      %c0_131 = arith.constant 0 : index
      %c0_132 = arith.constant 0 : index
      %215 = vector.load %arg2[%c0_130, %c0_131, %c0_132] : memref<2x16x128xbf16, #tpu.memory_space<vmem>>, vector<2x16x128xbf16>
      %216 = arith.extf %215 : vector<2x16x128xbf16> to vector<2x16x128xf32>
      %c0_133 = arith.constant 0 : index
      %c0_134 = arith.constant 0 : index
      %c0_135 = arith.constant 0 : index
      %217 = vector.load %arg3[%c0_133, %c0_134, %c0_135] : memref<1x16x128xf32, #tpu.memory_space<vmem>>, vector<1x16x128xf32>
      %218 = vector.broadcast %217 : vector<1x16x128xf32> to vector<2x16x128xf32>
      %219 = arith.addf %216, %218 : vector<2x16x128xf32>
      %220 = vector.shape_cast %219 : vector<2x16x128xf32> to vector<32x128xf32>
      %c0_136 = arith.constant 0 : index
      %c0_137 = arith.constant 0 : index
      %221 = vector.load %arg21[%c0_136, %c0_137] : memref<32x128xf32, #tpu.memory_space<vmem>>, vector<32x128xf32>
      tpu.vector_store %arg21[%c0_136, %c0_137], %220 {strides = array<i32>} : memref<32x128xf32, #tpu.memory_space<vmem>>, vector<32x128xf32>,
    } else {
    }
    %c0 = arith.constant 0 : index
    %c0_1 = arith.constant 0 : index
    %3 = vector.load %arg21[%c0, %c0_1] : memref<32x128xf32, #tpu.memory_space<vmem>>, vector<32x128xf32>
    %c0_2 = arith.constant 0 : index
    %c0_3 = arith.constant 0 : index
    %c0_4 = arith.constant 0 : index
    %4 = vector.load %arg4[%c0_2, %c0_3, %c0_4] : memref<1x1x128xf32, #tpu.memory_space<vmem>>, vector<1x1x128xf32>
    %5 = vector.shape_cast %4 : vector<1x1x128xf32> to vector<1x128xf32>
    %c0_5 = arith.constant 0 : index
    %c0_6 = arith.constant 0 : index
    %c0_7 = arith.constant 0 : index
    %6 = vector.load %arg5[%c0_5, %c0_6, %c0_7] : memref<1x1x128xf32, #tpu.memory_space<vmem>>, vector<1x1x128xf32>
    %7 = vector.shape_cast %6 : vector<1x1x128xf32> to vector<1x128xf32>
    %cst = arith.constant dense<0.000000e+00> : vector<32xf32>
    %8 = vector.multi_reduction <add>, %3, %cst [1] : vector<32x128xf32> to vector<32xf32>
    %9 = vector.shape_cast %8 : vector<32xf32> to vector<32x1xf32>
    %cst_8 = arith.constant 1.280000e+02 : f32
    %10 = vector.broadcast %cst_8 : f32 to vector<32x1xf32>
    %11 = arith.divf %9, %10 : vector<32x1xf32>
    %12 = vector.broadcast %11 : vector<32x1xf32> to vector<32x128xf32>
    %13 = arith.subf %3, %12 : vector<32x128xf32>
    %14 = arith.mulf %13, %13 : vector<32x128xf32>
    %cst_9 = arith.constant dense<0.000000e+00> : vector<32xf32>
    %15 = vector.multi_reduction <add>, %14, %cst_9 [1] : vector<32x128xf32> to vector<32xf32>
    %16 = vector.shape_cast %15 : vector<32xf32> to vector<32x1xf32>
    %cst_10 = arith.constant 1.280000e+02 : f32
    %17 = vector.broadcast %cst_10 : f32 to vector<32x1xf32>
    %18 = arith.divf %16, %17 : vector<32x1xf32>
    %19 = vector.broadcast %11 : vector<32x1xf32> to vector<32x128xf32>
    %20 = arith.subf %3, %19 : vector<32x128xf32>
    %cst_11 = arith.constant 9.99999997E-7 : f32
    %21 = vector.broadcast %cst_11 : f32 to vector<32x1xf32>
    %22 = arith.addf %18, %21 : vector<32x1xf32>
    %23 = math.rsqrt %22 : vector<32x1xf32>
    %24 = vector.broadcast %23 : vector<32x1xf32> to vector<32x128xf32>
    %25 = arith.mulf %20, %24 : vector<32x128xf32>
    %26 = vector.broadcast %5 : vector<1x128xf32> to vector<32x128xf32>
    %27 = arith.mulf %25, %26 : vector<32x128xf32>
    %28 = vector.broadcast %7 : vector<1x128xf32> to vector<32x128xf32>
    %29 = arith.addf %27, %28 : vector<32x128xf32>
    %30 = arith.truncf %29 : vector<32x128xf32> to vector<32x128xbf16>
    %c0_12 = arith.constant 0 : index
    %c0_13 = arith.constant 0 : index
    %c0_14 = arith.constant 0 : index
    %31 = vector.load %arg6[%c0_12, %c0_13, %c0_14] : memref<1x128x384xbf16, #tpu.memory_space<vmem>>, vector<1x128x384xbf16>
    %32 = vector.shape_cast %31 : vector<1x128x384xbf16> to vector<128x384xbf16>
    %cst_15 = arith.constant dense<0.000000e+00> : vector<32x384xf32>
    %33 = tpu.matmul %30, %32, %cst_15 {dimension_numbers = #tpu.dot_dimension_numbers<[1], [0], [0], [1], [0, 0, 1, 1], [], []>} : vector<32x128xbf16>, vector<128x384xbf16>, vector<32x384xf32> -> vector<32x384xf32>
    %c0_16 = arith.constant 0 : index
    %c0_17 = arith.constant 0 : index
    %c0_18 = arith.constant 0 : index
    %34 = vector.load %arg7[%c0_16, %c0_17, %c0_18] : memref<1x1x384xf32, #tpu.memory_space<vmem>>, vector<1x1x384xf32>
    %35 = vector.shape_cast %34 : vector<1x1x384xf32> to vector<1x384xf32>
    %36 = vector.broadcast %35 : vector<1x384xf32> to vector<32x384xf32>
    %37 = arith.addf %33, %36 : vector<32x384xf32>
    %38 = arith.truncf %37 : vector<32x384xf32> to vector<32x384xbf16>
    %39 = vector.extract_strided_slice %38 {offsets = [0, 0], sizes = [32, 32], strides = [1, 1]} : vector<32x384xbf16> to vector<32x32xbf16>
    %c0_19 = arith.constant 0 : index
    %c0_20 = arith.constant 0 : index
    %c0_21 = arith.constant 0 : index
    %40 = vector.load %arg22[%c0_19, %c0_20, %c0_21] : memref<4x32x32xbf16, #tpu.memory_space<vmem>>, vector<1x32x32xbf16>
    %41 = vector.shape_cast %40 : vector<1x32x32xbf16> to vector<32x32xbf16>
    %42 = vector.shape_cast %39 : vector<32x32xbf16> to vector<1x32x32xbf16>
    tpu.vector_store %arg22[%c0_19, %c0_20, %c0_21], %42 {strides = array<i32>} : memref<4x32x32xbf16, #tpu.memory_space<vmem>>, vector<1x32x32xbf16>,
    %43 = vector.extract_strided_slice %38 {offsets = [0, 128], sizes = [32, 32], strides = [1, 1]} : vector<32x384xbf16> to vector<32x32xbf16>
    %c0_22 = arith.constant 0 : index
    %c0_23 = arith.constant 0 : index
    %c0_24 = arith.constant 0 : index
    %44 = vector.load %arg23[%c0_22, %c0_23, %c0_24] : memref<4x32x32xbf16, #tpu.memory_space<vmem>>, vector<1x32x32xbf16>
    %45 = vector.shape_cast %44 : vector<1x32x32xbf16> to vector<32x32xbf16>
    %46 = vector.shape_cast %43 : vector<32x32xbf16> to vector<1x32x32xbf16>
    tpu.vector_store %arg23[%c0_22, %c0_23, %c0_24], %46 {strides = array<i32>} : memref<4x32x32xbf16, #tpu.memory_space<vmem>>, vector<1x32x32xbf16>,
    %47 = vector.extract_strided_slice %38 {offsets = [0, 256], sizes = [32, 32], strides = [1, 1]} : vector<32x384xbf16> to vector<32x32xbf16>
    %c0_25 = arith.constant 0 : index
    %c0_26 = arith.constant 0 : index
    %c0_27 = arith.constant 0 : index
    %48 = vector.load %arg24[%c0_25, %c0_26, %c0_27] : memref<4x32x32xbf16, #tpu.memory_space<vmem>>, vector<1x32x32xbf16>
    %49 = vector.shape_cast %48 : vector<1x32x32xbf16> to vector<32x32xbf16>
    %50 = vector.shape_cast %47 : vector<32x32xbf16> to vector<1x32x32xbf16>
    tpu.vector_store %arg24[%c0_25, %c0_26, %c0_27], %50 {strides = array<i32>} : memref<4x32x32xbf16, #tpu.memory_space<vmem>>, vector<1x32x32xbf16>,
    %51 = vector.extract_strided_slice %38 {offsets = [0, 32], sizes = [32, 32], strides = [1, 1]} : vector<32x384xbf16> to vector<32x32xbf16>
    %c1 = arith.constant 1 : index
    %c0_28 = arith.constant 0 : index
    %c0_29 = arith.constant 0 : index
    %52 = vector.load %arg22[%c1, %c0_28, %c0_29] : memref<4x32x32xbf16, #tpu.memory_space<vmem>>, vector<1x32x32xbf16>
    %53 = vector.shape_cast %52 : vector<1x32x32xbf16> to vector<32x32xbf16>
    %54 = vector.shape_cast %51 : vector<32x32xbf16> to vector<1x32x32xbf16>
    tpu.vector_store %arg22[%c1, %c0_28, %c0_29], %54 {strides = array<i32>} : memref<4x32x32xbf16, #tpu.memory_space<vmem>>, vector<1x32x32xbf16>,
    %55 = vector.extract_strided_slice %38 {offsets = [0, 160], sizes = [32, 32], strides = [1, 1]} : vector<32x384xbf16> to vector<32x32xbf16>
    %c1_30 = arith.constant 1 : index
    %c0_31 = arith.constant 0 : index
    %c0_32 = arith.constant 0 : index
    %56 = vector.load %arg23[%c1_30, %c0_31, %c0_32] : memref<4x32x32xbf16, #tpu.memory_space<vmem>>, vector<1x32x32xbf16>
    %57 = vector.shape_cast %56 : vector<1x32x32xbf16> to vector<32x32xbf16>
    %58 = vector.shape_cast %55 : vector<32x32xbf16> to vector<1x32x32xbf16>
    tpu.vector_store %arg23[%c1_30, %c0_31, %c0_32], %58 {strides = array<i32>} : memref<4x32x32xbf16, #tpu.memory_space<vmem>>, vector<1x32x32xbf16>,
    %59 = vector.extract_strided_slice %38 {offsets = [0, 288], sizes = [32, 32], strides = [1, 1]} : vector<32x384xbf16> to vector<32x32xbf16>
    %c1_33 = arith.constant 1 : index
    %c0_34 = arith.constant 0 : index
    %c0_35 = arith.constant 0 : index
    %60 = vector.load %arg24[%c1_33, %c0_34, %c0_35] : memref<4x32x32xbf16, #tpu.memory_space<vmem>>, vector<1x32x32xbf16>
    %61 = vector.shape_cast %60 : vector<1x32x32xbf16> to vector<32x32xbf16>
    %62 = vector.shape_cast %59 : vector<32x32xbf16> to vector<1x32x32xbf16>
    tpu.vector_store %arg24[%c1_33, %c0_34, %c0_35], %62 {strides = array<i32>} : memref<4x32x32xbf16, #tpu.memory_space<vmem>>, vector<1x32x32xbf16>,
    %63 = vector.extract_strided_slice %38 {offsets = [0, 64], sizes = [32, 32], strides = [1, 1]} : vector<32x384xbf16> to vector<32x32xbf16>
    %c2 = arith.constant 2 : index
    %c0_36 = arith.constant 0 : index
    %c0_37 = arith.constant 0 : index
    %64 = vector.load %arg22[%c2, %c0_36, %c0_37] : memref<4x32x32xbf16, #tpu.memory_space<vmem>>, vector<1x32x32xbf16>
    %65 = vector.shape_cast %64 : vector<1x32x32xbf16> to vector<32x32xbf16>
    %66 = vector.shape_cast %63 : vector<32x32xbf16> to vector<1x32x32xbf16>
    tpu.vector_store %arg22[%c2, %c0_36, %c0_37], %66 {strides = array<i32>} : memref<4x32x32xbf16, #tpu.memory_space<vmem>>, vector<1x32x32xbf16>,
    %67 = vector.extract_strided_slice %38 {offsets = [0, 192], sizes = [32, 32], strides = [1, 1]} : vector<32x384xbf16> to vector<32x32xbf16>
    %c2_38 = arith.constant 2 : index
    %c0_39 = arith.constant 0 : index
    %c0_40 = arith.constant 0 : index
    %68 = vector.load %arg23[%c2_38, %c0_39, %c0_40] : memref<4x32x32xbf16, #tpu.memory_space<vmem>>, vector<1x32x32xbf16>
    %69 = vector.shape_cast %68 : vector<1x32x32xbf16> to vector<32x32xbf16>
    %70 = vector.shape_cast %67 : vector<32x32xbf16> to vector<1x32x32xbf16>
    tpu.vector_store %arg23[%c2_38, %c0_39, %c0_40], %70 {strides = array<i32>} : memref<4x32x32xbf16, #tpu.memory_space<vmem>>, vector<1x32x32xbf16>,
    %71 = vector.extract_strided_slice %38 {offsets = [0, 320], sizes = [32, 32], strides = [1, 1]} : vector<32x384xbf16> to vector<32x32xbf16>
    %c2_41 = arith.constant 2 : index
    %c0_42 = arith.constant 0 : index
    %c0_43 = arith.constant 0 : index
    %72 = vector.load %arg24[%c2_41, %c0_42, %c0_43] : memref<4x32x32xbf16, #tpu.memory_space<vmem>>, vector<1x32x32xbf16>
    %73 = vector.shape_cast %72 : vector<1x32x32xbf16> to vector<32x32xbf16>
    %74 = vector.shape_cast %71 : vector<32x32xbf16> to vector<1x32x32xbf16>
    tpu.vector_store %arg24[%c2_41, %c0_42, %c0_43], %74 {strides = array<i32>} : memref<4x32x32xbf16, #tpu.memory_space<vmem>>, vector<1x32x32xbf16>,
    %75 = vector.extract_strided_slice %38 {offsets = [0, 96], sizes = [32, 32], strides = [1, 1]} : vector<32x384xbf16> to vector<32x32xbf16>
    %c3 = arith.constant 3 : index
    %c0_44 = arith.constant 0 : index
    %c0_45 = arith.constant 0 : index
    %76 = vector.load %arg22[%c3, %c0_44, %c0_45] : memref<4x32x32xbf16, #tpu.memory_space<vmem>>, vector<1x32x32xbf16>
    %77 = vector.shape_cast %76 : vector<1x32x32xbf16> to vector<32x32xbf16>
    %78 = vector.shape_cast %75 : vector<32x32xbf16> to vector<1x32x32xbf16>
    tpu.vector_store %arg22[%c3, %c0_44, %c0_45], %78 {strides = array<i32>} : memref<4x32x32xbf16, #tpu.memory_space<vmem>>, vector<1x32x32xbf16>,
    %79 = vector.extract_strided_slice %38 {offsets = [0, 224], sizes = [32, 32], strides = [1, 1]} : vector<32x384xbf16> to vector<32x32xbf16>
    %c3_46 = arith.constant 3 : index
    %c0_47 = arith.constant 0 : index
    %c0_48 = arith.constant 0 : index
    %80 = vector.load %arg23[%c3_46, %c0_47, %c0_48] : memref<4x32x32xbf16, #tpu.memory_space<vmem>>, vector<1x32x32xbf16>
    %81 = vector.shape_cast %80 : vector<1x32x32xbf16> to vector<32x32xbf16>
    %82 = vector.shape_cast %79 : vector<32x32xbf16> to vector<1x32x32xbf16>
    tpu.vector_store %arg23[%c3_46, %c0_47, %c0_48], %82 {strides = array<i32>} : memref<4x32x32xbf16, #tpu.memory_space<vmem>>, vector<1x32x32xbf16>,
    %83 = vector.extract_strided_slice %38 {offsets = [0, 352], sizes = [32, 32], strides = [1, 1]} : vector<32x384xbf16> to vector<32x32xbf16>
    %c3_49 = arith.constant 3 : index
    %c0_50 = arith.constant 0 : index
    %c0_51 = arith.constant 0 : index
    %84 = vector.load %arg24[%c3_49, %c0_50, %c0_51] : memref<4x32x32xbf16, #tpu.memory_space<vmem>>, vector<1x32x32xbf16>
    %85 = vector.shape_cast %84 : vector<1x32x32xbf16> to vector<32x32xbf16>
    %86 = vector.shape_cast %83 : vector<32x32xbf16> to vector<1x32x32xbf16>
    tpu.vector_store %arg24[%c3_49, %c0_50, %c0_51], %86 {strides = array<i32>} : memref<4x32x32xbf16, #tpu.memory_space<vmem>>, vector<1x32x32xbf16>,
    %c0_52 = arith.constant 0 : index
    %c0_53 = arith.constant 0 : index
    %c0_54 = arith.constant 0 : index
    %87 = vector.load %arg22[%c0_52, %c0_53, %c0_54] : memref<4x32x32xbf16, #tpu.memory_space<vmem>>, vector<4x16x32xbf16>
    %c0_55 = arith.constant 0 : index
    %c0_56 = arith.constant 0 : index
    %c0_57 = arith.constant 0 : index
    %88 = vector.load %arg23[%c0_55, %c0_56, %c0_57] : memref<4x32x32xbf16, #tpu.memory_space<vmem>>, vector<4x16x32xbf16>
    %c0_58 = arith.constant 0 : index
    %c0_59 = arith.constant 0 : index
    %c0_60 = arith.constant 0 : index
    %89 = vector.load %arg24[%c0_58, %c0_59, %c0_60] : memref<4x32x32xbf16, #tpu.memory_space<vmem>>, vector<4x16x32xbf16>
    "tpu.trace_start"() <{level = 10 : i32, message = "hqd,hkd->hqk"}> : () -> ()
    %cst_61 = arith.constant dense<0.000000e+00> : vector<4x16x16xf32>
    %90 = tpu.matmul %87, %88, %cst_61 {dimension_numbers = #tpu.dot_dimension_numbers<[2], [2], [1], [1], [0, 0, 0, 1, 1, 1], [0], [0]>} : vector<4x16x32xbf16>, vector<4x16x32xbf16>, vector<4x16x16xf32> -> vector<4x16x16xf32>
    "tpu.trace_stop"() : () -> ()
    %cst_62 = arith.constant dense<0xFF800000> : vector<4x16xf32>
    %91 = vector.multi_reduction <maximumf>, %90, %cst_62 [2] : vector<4x16x16xf32> to vector<4x16xf32>
    %92 = vector.shape_cast %91 : vector<4x16xf32> to vector<4x16x1xf32>
    %93 = vector.broadcast %92 : vector<4x16x1xf32> to vector<4x16x16xf32>
    %94 = arith.subf %90, %93 : vector<4x16x16xf32>
    %95 = math.exp %94 : vector<4x16x16xf32>
    %cst_63 = arith.constant dense<0.000000e+00> : vector<4x16xf32>
    %96 = vector.multi_reduction <add>, %95, %cst_63 [2] : vector<4x16x16xf32> to vector<4x16xf32>
    %97 = vector.shape_cast %96 : vector<4x16xf32> to vector<4x16x1xf32>
    %98 = tpu.reciprocal %97 {approx = true} : vector<4x16x1xf32> -> vector<4x16x1xf32>
    %99 = vector.broadcast %98 : vector<4x16x1xf32> to vector<4x16x16xf32>
    %100 = arith.mulf %95, %99 : vector<4x16x16xf32>
    %101 = arith.truncf %100 : vector<4x16x16xf32> to vector<4x16x16xbf16>
    "tpu.trace_start"() <{level = 10 : i32, message = "hqk,hkd->hqd"}> : () -> ()
    %cst_64 = arith.constant dense<0.000000e+00> : vector<4x16x32xf32>
    %102 = tpu.matmul %101, %89, %cst_64 {dimension_numbers = #tpu.dot_dimension_numbers<[2], [1], [1], [2], [0, 0, 0, 1, 1, 2], [0], [0]>} : vector<4x16x16xbf16>, vector<4x16x32xbf16>, vector<4x16x32xf32> -> vector<4x16x32xf32>
    "tpu.trace_stop"() : () -> ()
    %103 = vector.extract_strided_slice %102 {offsets = [0, 0, 0], sizes = [1, 16, 32], strides = [1, 1, 1]} : vector<4x16x32xf32> to vector<1x16x32xf32>
    %104 = vector.shape_cast %103 : vector<1x16x32xf32> to vector<16x32xf32>
    %105 = arith.truncf %104 : vector<16x32xf32> to vector<16x32xbf16>
    %c0_65 = arith.constant 0 : index
    %c0_66 = arith.constant 0 : index
    %106 = vector.load %arg25[%c0_65, %c0_66] : memref<32x128xbf16, #tpu.memory_space<vmem>>, vector<16x32xbf16>
    tpu.vector_store %arg25[%c0_65, %c0_66], %105 {strides = array<i32>} : memref<32x128xbf16, #tpu.memory_space<vmem>>, vector<16x32xbf16>,
    %107 = vector.extract_strided_slice %102 {offsets = [1, 0, 0], sizes = [1, 16, 32], strides = [1, 1, 1]} : vector<4x16x32xf32> to vector<1x16x32xf32>
    %108 = vector.shape_cast %107 : vector<1x16x32xf32> to vector<16x32xf32>
    %109 = arith.truncf %108 : vector<16x32xf32> to vector<16x32xbf16>
    %c0_67 = arith.constant 0 : index
    %c32 = arith.constant 32 : index
    %110 = vector.load %arg25[%c0_67, %c32] : memref<32x128xbf16, #tpu.memory_space<vmem>>, vector<16x32xbf16>
    tpu.vector_store %arg25[%c0_67, %c32], %109 {strides = array<i32>} : memref<32x128xbf16, #tpu.memory_space<vmem>>, vector<16x32xbf16>,
    %111 = vector.extract_strided_slice %102 {offsets = [2, 0, 0], sizes = [1, 16, 32], strides = [1, 1, 1]} : vector<4x16x32xf32> to vector<1x16x32xf32>
    %112 = vector.shape_cast %111 : vector<1x16x32xf32> to vector<16x32xf32>
    %113 = arith.truncf %112 : vector<16x32xf32> to vector<16x32xbf16>
    %c0_68 = arith.constant 0 : index
    %c64 = arith.constant 64 : index
    %114 = vector.load %arg25[%c0_68, %c64] : memref<32x128xbf16, #tpu.memory_space<vmem>>, vector<16x32xbf16>
    tpu.vector_store %arg25[%c0_68, %c64], %113 {strides = array<i32>} : memref<32x128xbf16, #tpu.memory_space<vmem>>, vector<16x32xbf16>,
    %115 = vector.extract_strided_slice %102 {offsets = [3, 0, 0], sizes = [1, 16, 32], strides = [1, 1, 1]} : vector<4x16x32xf32> to vector<1x16x32xf32>
    %116 = vector.shape_cast %115 : vector<1x16x32xf32> to vector<16x32xf32>
    %117 = arith.truncf %116 : vector<16x32xf32> to vector<16x32xbf16>
    %c0_69 = arith.constant 0 : index
    %c96 = arith.constant 96 : index
    %118 = vector.load %arg25[%c0_69, %c96] : memref<32x128xbf16, #tpu.memory_space<vmem>>, vector<16x32xbf16>
    tpu.vector_store %arg25[%c0_69, %c96], %117 {strides = array<i32>} : memref<32x128xbf16, #tpu.memory_space<vmem>>, vector<16x32xbf16>,
    %c0_70 = arith.constant 0 : index
    %c16 = arith.constant 16 : index
    %c0_71 = arith.constant 0 : index
    %119 = vector.load %arg22[%c0_70, %c16, %c0_71] : memref<4x32x32xbf16, #tpu.memory_space<vmem>>, vector<4x16x32xbf16>
    %c0_72 = arith.constant 0 : index
    %c16_73 = arith.constant 16 : index
    %c0_74 = arith.constant 0 : index
    %120 = vector.load %arg23[%c0_72, %c16_73, %c0_74] : memref<4x32x32xbf16, #tpu.memory_space<vmem>>, vector<4x16x32xbf16>
    %c0_75 = arith.constant 0 : index
    %c16_76 = arith.constant 16 : index
    %c0_77 = arith.constant 0 : index
    %121 = vector.load %arg24[%c0_75, %c16_76, %c0_77] : memref<4x32x32xbf16, #tpu.memory_space<vmem>>, vector<4x16x32xbf16>
    "tpu.trace_start"() <{level = 10 : i32, message = "hqd,hkd->hqk"}> : () -> ()
    %cst_78 = arith.constant dense<0.000000e+00> : vector<4x16x16xf32>
    %122 = tpu.matmul %119, %120, %cst_78 {dimension_numbers = #tpu.dot_dimension_numbers<[2], [2], [1], [1], [0, 0, 0, 1, 1, 1], [0], [0]>} : vector<4x16x32xbf16>, vector<4x16x32xbf16>, vector<4x16x16xf32> -> vector<4x16x16xf32>
    "tpu.trace_stop"() : () -> ()
    %cst_79 = arith.constant dense<0xFF800000> : vector<4x16xf32>
    %123 = vector.multi_reduction <maximumf>, %122, %cst_79 [2] : vector<4x16x16xf32> to vector<4x16xf32>
    %124 = vector.shape_cast %123 : vector<4x16xf32> to vector<4x16x1xf32>
    %125 = vector.broadcast %124 : vector<4x16x1xf32> to vector<4x16x16xf32>
    %126 = arith.subf %122, %125 : vector<4x16x16xf32>
    %127 = math.exp %126 : vector<4x16x16xf32>
    %cst_80 = arith.constant dense<0.000000e+00> : vector<4x16xf32>
    %128 = vector.multi_reduction <add>, %127, %cst_80 [2] : vector<4x16x16xf32> to vector<4x16xf32>
    %129 = vector.shape_cast %128 : vector<4x16xf32> to vector<4x16x1xf32>
    %130 = tpu.reciprocal %129 {approx = true} : vector<4x16x1xf32> -> vector<4x16x1xf32>
    %131 = vector.broadcast %130 : vector<4x16x1xf32> to vector<4x16x16xf32>
    %132 = arith.mulf %127, %131 : vector<4x16x16xf32>
    %133 = arith.truncf %132 : vector<4x16x16xf32> to vector<4x16x16xbf16>
    "tpu.trace_start"() <{level = 10 : i32, message = "hqk,hkd->hqd"}> : () -> ()
    %cst_81 = arith.constant dense<0.000000e+00> : vector<4x16x32xf32>
    %134 = tpu.matmul %133, %121, %cst_81 {dimension_numbers = #tpu.dot_dimension_numbers<[2], [1], [1], [2], [0, 0, 0, 1, 1, 2], [0], [0]>} : vector<4x16x16xbf16>, vector<4x16x32xbf16>, vector<4x16x32xf32> -> vector<4x16x32xf32>
    "tpu.trace_stop"() : () -> ()
    %135 = vector.extract_strided_slice %134 {offsets = [0, 0, 0], sizes = [1, 16, 32], strides = [1, 1, 1]} : vector<4x16x32xf32> to vector<1x16x32xf32>
    %136 = vector.shape_cast %135 : vector<1x16x32xf32> to vector<16x32xf32>
    %137 = arith.truncf %136 : vector<16x32xf32> to vector<16x32xbf16>
    %c16_82 = arith.constant 16 : index
    %c0_83 = arith.constant 0 : index
    %138 = vector.load %arg25[%c16_82, %c0_83] : memref<32x128xbf16, #tpu.memory_space<vmem>>, vector<16x32xbf16>
    tpu.vector_store %arg25[%c16_82, %c0_83], %137 {strides = array<i32>} : memref<32x128xbf16, #tpu.memory_space<vmem>>, vector<16x32xbf16>,
    %139 = vector.extract_strided_slice %134 {offsets = [1, 0, 0], sizes = [1, 16, 32], strides = [1, 1, 1]} : vector<4x16x32xf32> to vector<1x16x32xf32>
    %140 = vector.shape_cast %139 : vector<1x16x32xf32> to vector<16x32xf32>
    %141 = arith.truncf %140 : vector<16x32xf32> to vector<16x32xbf16>
    %c16_84 = arith.constant 16 : index
    %c32_85 = arith.constant 32 : index
    %142 = vector.load %arg25[%c16_84, %c32_85] : memref<32x128xbf16, #tpu.memory_space<vmem>>, vector<16x32xbf16>
    tpu.vector_store %arg25[%c16_84, %c32_85], %141 {strides = array<i32>} : memref<32x128xbf16, #tpu.memory_space<vmem>>, vector<16x32xbf16>,
    %143 = vector.extract_strided_slice %134 {offsets = [2, 0, 0], sizes = [1, 16, 32], strides = [1, 1, 1]} : vector<4x16x32xf32> to vector<1x16x32xf32>
    %144 = vector.shape_cast %143 : vector<1x16x32xf32> to vector<16x32xf32>
    %145 = arith.truncf %144 : vector<16x32xf32> to vector<16x32xbf16>
    %c16_86 = arith.constant 16 : index
    %c64_87 = arith.constant 64 : index
    %146 = vector.load %arg25[%c16_86, %c64_87] : memref<32x128xbf16, #tpu.memory_space<vmem>>, vector<16x32xbf16>
    tpu.vector_store %arg25[%c16_86, %c64_87], %145 {strides = array<i32>} : memref<32x128xbf16, #tpu.memory_space<vmem>>, vector<16x32xbf16>,
    %147 = vector.extract_strided_slice %134 {offsets = [3, 0, 0], sizes = [1, 16, 32], strides = [1, 1, 1]} : vector<4x16x32xf32> to vector<1x16x32xf32>
    %148 = vector.shape_cast %147 : vector<1x16x32xf32> to vector<16x32xf32>
    %149 = arith.truncf %148 : vector<16x32xf32> to vector<16x32xbf16>
    %c16_88 = arith.constant 16 : index
    %c96_89 = arith.constant 96 : index
    %150 = vector.load %arg25[%c16_88, %c96_89] : memref<32x128xbf16, #tpu.memory_space<vmem>>, vector<16x32xbf16>
    tpu.vector_store %arg25[%c16_88, %c96_89], %149 {strides = array<i32>} : memref<32x128xbf16, #tpu.memory_space<vmem>>, vector<16x32xbf16>,
    %c0_90 = arith.constant 0 : index
    %c0_91 = arith.constant 0 : index
    %151 = vector.load %arg25[%c0_90, %c0_91] : memref<32x128xbf16, #tpu.memory_space<vmem>>, vector<32x128xbf16>
    %c0_92 = arith.constant 0 : index
    %c0_93 = arith.constant 0 : index
    %c0_94 = arith.constant 0 : index
    %152 = vector.load %arg8[%c0_92, %c0_93, %c0_94] : memref<1x128x128xbf16, #tpu.memory_space<vmem>>, vector<1x128x128xbf16>
    %153 = vector.shape_cast %152 : vector<1x128x128xbf16> to vector<128x128xbf16>
    %cst_95 = arith.constant dense<0.000000e+00> : vector<32x128xf32>
    %154 = tpu.matmul %151, %153, %cst_95 {dimension_numbers = #tpu.dot_dimension_numbers<[1], [0], [0], [1], [0, 0, 1, 1], [], []>} : vector<32x128xbf16>, vector<128x128xbf16>, vector<32x128xf32> -> vector<32x128xf32>
    %155 = arith.addf %3, %154 : vector<32x128xf32>
    %c0_96 = arith.constant 0 : index
    %c0_97 = arith.constant 0 : index
    %c0_98 = arith.constant 0 : index
    %156 = vector.load %arg9[%c0_96, %c0_97, %c0_98] : memref<1x1x128xf32, #tpu.memory_space<vmem>>, vector<1x1x128xf32>
    %157 = vector.shape_cast %156 : vector<1x1x128xf32> to vector<1x128xf32>
    %158 = vector.broadcast %157 : vector<1x128xf32> to vector<32x128xf32>
    %159 = arith.addf %155, %158 : vector<32x128xf32>
    %c0_99 = arith.constant 0 : index
    %c0_100 = arith.constant 0 : index
    %c0_101 = arith.constant 0 : index
    %160 = vector.load %arg10[%c0_99, %c0_100, %c0_101] : memref<1x1x128xf32, #tpu.memory_space<vmem>>, vector<1x1x128xf32>
    %161 = vector.shape_cast %160 : vector<1x1x128xf32> to vector<1x128xf32>
    %c0_102 = arith.constant 0 : index
    %c0_103 = arith.constant 0 : index
    %c0_104 = arith.constant 0 : index
    %162 = vector.load %arg11[%c0_102, %c0_103, %c0_104] : memref<1x1x128xf32, #tpu.memory_space<vmem>>, vector<1x1x128xf32>
    %163 = vector.shape_cast %162 : vector<1x1x128xf32> to vector<1x128xf32>
    %cst_105 = arith.constant dense<0.000000e+00> : vector<32xf32>
    %164 = vector.multi_reduction <add>, %159, %cst_105 [1] : vector<32x128xf32> to vector<32xf32>
    %165 = vector.shape_cast %164 : vector<32xf32> to vector<32x1xf32>
    %cst_106 = arith.constant 1.280000e+02 : f32
    %166 = vector.broadcast %cst_106 : f32 to vector<32x1xf32>
    %167 = arith.divf %165, %166 : vector<32x1xf32>
    %168 = vector.broadcast %167 : vector<32x1xf32> to vector<32x128xf32>
    %169 = arith.subf %159, %168 : vector<32x128xf32>
    %170 = arith.mulf %169, %169 : vector<32x128xf32>
    %cst_107 = arith.constant dense<0.000000e+00> : vector<32xf32>
    %171 = vector.multi_reduction <add>, %170, %cst_107 [1] : vector<32x128xf32> to vector<32xf32>
    %172 = vector.shape_cast %171 : vector<32xf32> to vector<32x1xf32>
    %cst_108 = arith.constant 1.280000e+02 : f32
    %173 = vector.broadcast %cst_108 : f32 to vector<32x1xf32>
    %174 = arith.divf %172, %173 : vector<32x1xf32>
    %175 = vector.broadcast %167 : vector<32x1xf32> to vector<32x128xf32>
    %176 = arith.subf %159, %175 : vector<32x128xf32>
    %cst_109 = arith.constant 9.99999997E-7 : f32
    %177 = vector.broadcast %cst_109 : f32 to vector<32x1xf32>
    %178 = arith.addf %174, %177 : vector<32x1xf32>
    %179 = math.rsqrt %178 : vector<32x1xf32>
    %180 = vector.broadcast %179 : vector<32x1xf32> to vector<32x128xf32>
    %181 = arith.mulf %176, %180 : vector<32x128xf32>
    %182 = vector.broadcast %161 : vector<1x128xf32> to vector<32x128xf32>
    %183 = arith.mulf %181, %182 : vector<32x128xf32>
    %184 = vector.broadcast %163 : vector<1x128xf32> to vector<32x128xf32>
    %185 = arith.addf %183, %184 : vector<32x128xf32>
    %186 = arith.truncf %185 : vector<32x128xf32> to vector<32x128xbf16>
    %c0_110 = arith.constant 0 : index
    %c0_111 = arith.constant 0 : index
    %c0_112 = arith.constant 0 : index
    %187 = vector.load %arg12[%c0_110, %c0_111, %c0_112] : memref<1x128x512xbf16, #tpu.memory_space<vmem>>, vector<1x128x512xbf16>
    %188 = vector.shape_cast %187 : vector<1x128x512xbf16> to vector<128x512xbf16>
    %cst_113 = arith.constant dense<0.000000e+00> : vector<32x512xf32>
    %189 = tpu.matmul %186, %188, %cst_113 {dimension_numbers = #tpu.dot_dimension_numbers<[1], [0], [0], [1], [0, 0, 1, 1], [], []>} : vector<32x128xbf16>, vector<128x512xbf16>, vector<32x512xf32> -> vector<32x512xf32>
    %c0_114 = arith.constant 0 : index
    %c0_115 = arith.constant 0 : index
    %c0_116 = arith.constant 0 : index
    %190 = vector.load %arg13[%c0_114, %c0_115, %c0_116] : memref<1x1x512xf32, #tpu.memory_space<vmem>>, vector<1x1x512xf32>
    %191 = vector.shape_cast %190 : vector<1x1x512xf32> to vector<1x512xf32>
    %192 = vector.broadcast %191 : vector<1x512xf32> to vector<32x512xf32>
    %193 = arith.addf %189, %192 : vector<32x512xf32>
    %cst_117 = arith.constant 5.000000e-01 : f32
    %194 = vector.broadcast %cst_117 : f32 to vector<32x512xf32>
    %195 = arith.mulf %194, %193 : vector<32x512xf32>
    %cst_118 = arith.constant 0.707106769 : f32
    %196 = vector.broadcast %cst_118 : f32 to vector<32x512xf32>
    %197 = arith.mulf %193, %196 : vector<32x512xf32>
    %198 = math.erf %197 : vector<32x512xf32>
    %cst_119 = arith.constant 1.000000e+00 : f32
    %199 = vector.broadcast %cst_119 : f32 to vector<32x512xf32>
    %200 = arith.addf %199, %198 : vector<32x512xf32>
    %201 = arith.mulf %195, %200 : vector<32x512xf32>
    %202 = arith.truncf %201 : vector<32x512xf32> to vector<32x512xbf16>
    %c0_120 = arith.constant 0 : index
    %c0_121 = arith.constant 0 : index
    %c0_122 = arith.constant 0 : index
    %203 = vector.load %arg14[%c0_120, %c0_121, %c0_122] : memref<1x512x128xbf16, #tpu.memory_space<vmem>>, vector<1x512x128xbf16>
    %204 = vector.shape_cast %203 : vector<1x512x128xbf16> to vector<512x128xbf16>
    %cst_123 = arith.constant dense<0.000000e+00> : vector<32x128xf32>
    %205 = tpu.matmul %202, %204, %cst_123 {dimension_numbers = #tpu.dot_dimension_numbers<[1], [0], [0], [1], [0, 0, 1, 1], [], []>} : vector<32x512xbf16>, vector<512x128xbf16>, vector<32x128xf32> -> vector<32x128xf32>
    %206 = arith.addf %159, %205 : vector<32x128xf32>
    %c0_124 = arith.constant 0 : index
    %c0_125 = arith.constant 0 : index
    %c0_126 = arith.constant 0 : index
    %207 = vector.load %arg15[%c0_124, %c0_125, %c0_126] : memref<1x1x128xf32, #tpu.memory_space<vmem>>, vector<1x1x128xf32>
    %208 = vector.shape_cast %207 : vector<1x1x128xf32> to vector<1x128xf32>
    %209 = vector.broadcast %208 : vector<1x128xf32> to vector<32x128xf32>
    %210 = arith.addf %206, %209 : vector<32x128xf32>
    %c0_127 = arith.constant 0 : index
    %c0_128 = arith.constant 0 : index
    %211 = vector.load %arg21[%c0_127, %c0_128] : memref<32x128xf32, #tpu.memory_space<vmem>>, vector<32x128xf32>
    tpu.vector_store %arg21[%c0_127, %c0_128], %210 {strides = array<i32>} : memref<32x128xf32, #tpu.memory_space<vmem>>, vector<32x128xf32>,
    %c1_i32 = arith.constant 1 : i32
    %212 = arith.cmpi eq, %arg1, %c1_i32 : i32
    %213 = arith.extui %212 : i1 to i32
    %c0_i32_129 = arith.constant 0 : i32
    %214 = arith.cmpi ne, %213, %c0_i32_129 : i32
    scf.if %214 {
      %c0_130 = arith.constant 0 : index
      %c0_131 = arith.constant 0 : index
      %215 = vector.load %arg16[%c0_130, %c0_131] : memref<1x128xf32, #tpu.memory_space<vmem>>, vector<1x128xf32>
      %c0_132 = arith.constant 0 : index
      %c0_133 = arith.constant 0 : index
      %216 = vector.load %arg17[%c0_132, %c0_133] : memref<1x128xf32, #tpu.memory_space<vmem>>, vector<1x128xf32>
      %cst_134 = arith.constant dense<0.000000e+00> : vector<32xf32>
      %217 = vector.multi_reduction <add>, %210, %cst_134 [1] : vector<32x128xf32> to vector<32xf32>
      %218 = vector.shape_cast %217 : vector<32xf32> to vector<32x1xf32>
      %cst_135 = arith.constant 1.280000e+02 : f32
      %219 = vector.broadcast %cst_135 : f32 to vector<32x1xf32>
      %220 = arith.divf %218, %219 : vector<32x1xf32>
      %221 = vector.broadcast %220 : vector<32x1xf32> to vector<32x128xf32>
      %222 = arith.subf %210, %221 : vector<32x128xf32>
      %223 = arith.mulf %222, %222 : vector<32x128xf32>
      %cst_136 = arith.constant dense<0.000000e+00> : vector<32xf32>
      %224 = vector.multi_reduction <add>, %223, %cst_136 [1] : vector<32x128xf32> to vector<32xf32>
      %225 = vector.shape_cast %224 : vector<32xf32> to vector<32x1xf32>
      %cst_137 = arith.constant 1.280000e+02 : f32
      %226 = vector.broadcast %cst_137 : f32 to vector<32x1xf32>
      %227 = arith.divf %225, %226 : vector<32x1xf32>
      %228 = vector.broadcast %220 : vector<32x1xf32> to vector<32x128xf32>
      %229 = arith.subf %210, %228 : vector<32x128xf32>
      %cst_138 = arith.constant 9.99999997E-7 : f32
      %230 = vector.broadcast %cst_138 : f32 to vector<32x1xf32>
      %231 = arith.addf %227, %230 : vector<32x1xf32>
      %232 = math.rsqrt %231 : vector<32x1xf32>
      %233 = vector.broadcast %232 : vector<32x1xf32> to vector<32x128xf32>
      %234 = arith.mulf %229, %233 : vector<32x128xf32>
      %235 = vector.broadcast %215 : vector<1x128xf32> to vector<32x128xf32>
      %236 = arith.mulf %234, %235 : vector<32x128xf32>
      %237 = vector.broadcast %216 : vector<1x128xf32> to vector<32x128xf32>
      %238 = arith.addf %236, %237 : vector<32x128xf32>
      %239 = vector.shape_cast %238 : vector<32x128xf32> to vector<2x16x128xf32>
      %cst_139 = arith.constant dense<0.000000e+00> : vector<2x128xf32>
      %240 = vector.multi_reduction <add>, %239, %cst_139 [1] : vector<2x16x128xf32> to vector<2x128xf32>
      %cst_140 = arith.constant 1.600000e+01 : f32
      %241 = vector.broadcast %cst_140 : f32 to vector<2x128xf32>
      %242 = arith.divf %240, %241 : vector<2x128xf32>
      %243 = arith.truncf %242 : vector<2x128xf32> to vector<2x128xbf16>
      %c0_141 = arith.constant 0 : index
      %c0_142 = arith.constant 0 : index
      %244 = vector.load %arg18[%c0_141, %c0_142] : memref<128x384xbf16, #tpu.memory_space<vmem>>, vector<128x384xbf16>
      %cst_143 = arith.constant dense<0.000000e+00> : vector<2x384xf32>
      %245 = tpu.matmul %243, %244, %cst_143 {dimension_numbers = #tpu.dot_dimension_numbers<[1], [0], [0], [1], [0, 0, 1, 1], [], []>} : vector<2x128xbf16>, vector<128x384xbf16>, vector<2x384xf32> -> vector<2x384xf32>
      %c0_144 = arith.constant 0 : index
      %c0_145 = arith.constant 0 : index
      %246 = vector.load %arg19[%c0_144, %c0_145] : memref<1x384xf32, #tpu.memory_space<vmem>>, vector<1x384xf32>
      %247 = vector.broadcast %246 : vector<1x384xf32> to vector<2x384xf32>
      %248 = arith.addf %245, %247 : vector<2x384xf32>
      %249 = vector.shape_cast %248 : vector<2x384xf32> to vector<2x1x384xf32>
      %c0_146 = arith.constant 0 : index
      %c0_147 = arith.constant 0 : index
      %c0_148 = arith.constant 0 : index
      %250 = vector.load %arg20[%c0_146, %c0_147, %c0_148] : memref<2x1x384xf32, #tpu.memory_space<vmem>>, vector<2x1x384xf32>
      tpu.vector_store %arg20[%c0_146, %c0_147, %c0_148], %249 {strides = array<i32>} : memref<2x1x384xf32, #tpu.memory_space<vmem>>, vector<2x1x384xf32>,
    } else {
    }
    return
  }
  func.func @transform_0(%arg0: i32, %arg1: i32) -> (i32, i32, i32) {
    %c0_i32 = arith.constant 0 : i32
    %c0_i32_0 = arith.constant 0 : i32
    %c0_i32_1 = arith.constant 0 : i32
    return %arg0, %c0_i32, %c0_i32_0 : i32, i32, i32
  }
  func.func @transform_1(%arg0: i32, %arg1: i32) -> (i32, i32, i32) {
    %c0_i32 = arith.constant 0 : i32
    %c0_i32_0 = arith.constant 0 : i32
    %c0_i32_1 = arith.constant 0 : i32
    %c0_i32_2 = arith.constant 0 : i32
    return %c0_i32, %c0_i32_0, %c0_i32_1 : i32, i32, i32
  }
  func.func @transform_2(%arg0: i32, %arg1: i32) -> (i32, i32, i32) {
    %c0_i32 = arith.constant 0 : i32
    %c0_i32_0 = arith.constant 0 : i32
    %c0_i32_1 = arith.constant 0 : i32
    return %arg1, %c0_i32, %c0_i32_0 : i32, i32, i32
  }
  func.func @transform_3(%arg0: i32, %arg1: i32) -> (i32, i32, i32) {
    %c0_i32 = arith.constant 0 : i32
    %c0_i32_0 = arith.constant 0 : i32
    %c0_i32_1 = arith.constant 0 : i32
    return %arg1, %c0_i32, %c0_i32_0 : i32, i32, i32
  }
  func.func @transform_4(%arg0: i32, %arg1: i32) -> (i32, i32, i32) {
    %c0_i32 = arith.constant 0 : i32
    %c0_i32_0 = arith.constant 0 : i32
    %c0_i32_1 = arith.constant 0 : i32
    return %arg1, %c0_i32, %c0_i32_0 : i32, i32, i32
  }
  func.func @transform_5(%arg0: i32, %arg1: i32) -> (i32, i32, i32) {
    %c0_i32 = arith.constant 0 : i32
    %c0_i32_0 = arith.constant 0 : i32
    %c0_i32_1 = arith.constant 0 : i32
    return %arg1, %c0_i32, %c0_i32_0 : i32, i32, i32
  }
  func.func @transform_6(%arg0: i32, %arg1: i32) -> (i32, i32, i32) {
    %c0_i32 = arith.constant 0 : i32
    %c0_i32_0 = arith.constant 0 : i32
    %c0_i32_1 = arith.constant 0 : i32
    return %arg1, %c0_i32, %c0_i32_0 : i32, i32, i32
  }
  func.func @transform_7(%arg0: i32, %arg1: i32) -> (i32, i32, i32) {
    %c0_i32 = arith.constant 0 : i32
    %c0_i32_0 = arith.constant 0 : i32
    %c0_i32_1 = arith.constant 0 : i32
    return %arg1, %c0_i32, %c0_i32_0 : i32, i32, i32
  }
  func.func @transform_8(%arg0: i32, %arg1: i32) -> (i32, i32, i32) {
    %c0_i32 = arith.constant 0 : i32
    %c0_i32_0 = arith.constant 0 : i32
    %c0_i32_1 = arith.constant 0 : i32
    return %arg1, %c0_i32, %c0_i32_0 : i32, i32, i32
  }
  func.func @transform_9(%arg0: i32, %arg1: i32) -> (i32, i32, i32) {
    %c0_i32 = arith.constant 0 : i32
    %c0_i32_0 = arith.constant 0 : i32
    %c0_i32_1 = arith.constant 0 : i32
    return %arg1, %c0_i32, %c0_i32_0 : i32, i32, i32
  }
  func.func @transform_10(%arg0: i32, %arg1: i32) -> (i32, i32, i32) {
    %c0_i32 = arith.constant 0 : i32
    %c0_i32_0 = arith.constant 0 : i32
    %c0_i32_1 = arith.constant 0 : i32
    return %arg1, %c0_i32, %c0_i32_0 : i32, i32, i32
  }
  func.func @transform_11(%arg0: i32, %arg1: i32) -> (i32, i32, i32) {
    %c0_i32 = arith.constant 0 : i32
    %c0_i32_0 = arith.constant 0 : i32
    %c0_i32_1 = arith.constant 0 : i32
    return %arg1, %c0_i32, %c0_i32_0 : i32, i32, i32
  }
  func.func @transform_12(%arg0: i32, %arg1: i32) -> (i32, i32, i32) {
    %c0_i32 = arith.constant 0 : i32
    %c0_i32_0 = arith.constant 0 : i32
    %c0_i32_1 = arith.constant 0 : i32
    return %arg1, %c0_i32, %c0_i32_0 : i32, i32, i32
  }
  func.func @transform_13(%arg0: i32, %arg1: i32) -> (i32, i32, i32) {
    %c0_i32 = arith.constant 0 : i32
    %c0_i32_0 = arith.constant 0 : i32
    %c0_i32_1 = arith.constant 0 : i32
    return %arg1, %c0_i32, %c0_i32_0 : i32, i32, i32
  }
  func.func @transform_14(%arg0: i32, %arg1: i32) -> (i32, i32) {
    %c0_i32 = arith.constant 0 : i32
    %c0_i32_0 = arith.constant 0 : i32
    %c0_i32_1 = arith.constant 0 : i32
    return %c0_i32, %c0_i32_0 : i32, i32
  }
  func.func @transform_15(%arg0: i32, %arg1: i32) -> (i32, i32) {
    %c0_i32 = arith.constant 0 : i32
    %c0_i32_0 = arith.constant 0 : i32
    %c0_i32_1 = arith.constant 0 : i32
    return %c0_i32, %c0_i32_0 : i32, i32
  }
  func.func @transform_16(%arg0: i32, %arg1: i32) -> (i32, i32) {
    %c0_i32 = arith.constant 0 : i32
    %c0_i32_0 = arith.constant 0 : i32
    %c0_i32_1 = arith.constant 0 : i32
    return %c0_i32, %c0_i32_0 : i32, i32
  }
  func.func @transform_17(%arg0: i32, %arg1: i32) -> (i32, i32) {
    %c0_i32 = arith.constant 0 : i32
    %c0_i32_0 = arith.constant 0 : i32
    %c0_i32_1 = arith.constant 0 : i32
    return %c0_i32, %c0_i32_0 : i32, i32
  }
  func.func @transform_18(%arg0: i32, %arg1: i32) -> (i32, i32, i32) {
    %c0_i32 = arith.constant 0 : i32
    %c0_i32_0 = arith.constant 0 : i32
    %c0_i32_1 = arith.constant 0 : i32
    return %arg0, %c0_i32, %c0_i32_0 : i32, i32, i32
  }
}

</mosaic_0001>

<bundles_post_ra>
// kernel: encoder_effformer_forward.2
= control target key start
LH: loop header
LB: loop body
LE: loop exit
PB: predicated region body
PF: predicated region fallthrough
CT: control target
= control target key end

     0   :  { %8 = vsyncpa [#allocation3], 0  ;;  %s281_s12 = smov [#allocation2]   ;;  %s341_s0 = inlined_call_operand.vmem [shape: bf16[32,128], index: 0, kind: input, shape index: {}]   ;;  %s342_s1 = inlined_call_operand.vmem [shape: bf16[128,128], index: 1, kind: input, shape index: {}]   ;;  %s343_s2 = inlined_call_operand.hbm [shape: f32[1,128], index: 2, kind: input, shape index: {}]   ;;  %s344_s3 = inlined_call_operand.vmem [shape: bf16[32,128], index: 3, kind: output, shape index: {}]  }
   0x1   :  { %s19_s13 = sshll.u32 %s281_s12, 4  ;;  %s20_s13 = int_to_ptr.vmem [resolvable:$true] %s19_s13 }
   0x2   :  { %s267_s14 = scalar_lea.vmem %s20_s13, 16  ;;  %s271_s15 = scalar_lea.vmem %s20_s13, 32 }
   0x3   :  { %p268_p0 = scmp.ne.s32.totalorder %s20_s13, %s267_s14  ;;  %p272_p1 = scmp.lt.s32.totalorder %s20_s13, %s20_s13 }
   0x4   :  { %p273_p2 = scmp.lt.s32.totalorder %s271_s15, %s267_s14 }
   0x6   :  { %p274_p3 = por %p273_p2, %p272_p1 }
   0x8   :  { %p275_p4 = pnand %p274_p3, %p268_p0 }
   0xa   :  { %278 = shalt.err (!%p275_p4)
}
   0xb   :  { %22 = dma.hbm_to_vmem [thread:$0]  %s343_s2, 16, %s20_s13, [#allocation3]  }
   0xc   :  { %279 = dma.done.wait [#allocation3], 16  }
   0xd   :  { %280 = vsyncadd [#allocation3], 4294967280  ;;  %v249_v0 = vld [vmem:[%s342_s1 + $0x38] sm:$0xff]   ;;  %v250_v1 = vld [vmem:[%s342_s1 + $0x30] sm:$0xff]  }
   0xe   :  { %228 = vmatprep.subr.bf16.mxu0 %v249_v0  ;;  %v251_v2 = vld [vmem:[%s342_s1 + $0x28] sm:$0xff]   ;;  %v252_v3 = vld [vmem:[%s342_s1 + $0x20] sm:$0xff]   ;;  %v253_v5 = vld [vmem:[%s342_s1 + $0x18] sm:$0xff]  }
   0xf   :  { %229 = vmatpush3.bf16.msra.mxu0 %v249_v0  ;;  %v257_v4 = vld [vmem:[%s341_s0] sm:$0xff]   ;;  %v254_v6 = vld [vmem:[%s342_s1 + $0x10] sm:$0xff]   ;;  %v255_v7 = vld [vmem:[%s342_s1 + $0x8] sm:$0xff]  }
  0x10   :  { %230 = vmatprep.subr.bf16.mxu0 %v250_v1  ;;  %244 = vmatprep.mubr.bf16.mxu0 %v257_v4  ;;  %v256_v8 = vld [vmem:[%s342_s1] sm:$0xff]   ;;  %v258_v9 = vld [vmem:[%s341_s0 + $0x8] sm:$0xff]  }
  0x11   :  { %v188_v11 = vld [vmem:[#allocation2] ss:$0 sm:$0xff] }
  0x13   :  { %231 = vmatpush3.bf16.msra.mxu0 %v250_v1 }
  0x14   :  { %232 = vmatprep.subr.bf16.mxu0 %v251_v2 }
  0x17   :  { %233 = vmatpush3.bf16.msra.mxu0 %v251_v2 }
  0x18   :  { %234 = vmatprep.subr.bf16.mxu0 %v252_v3 }
  0x1b   :  { %235 = vmatpush3.bf16.msra.mxu0 %v252_v3 }
  0x1c   :  { %236 = vmatprep.subr.bf16.mxu0 %v253_v5 }
  0x1f   :  { %237 = vmatpush3.bf16.msra.mxu0 %v253_v5 }
  0x20   :  { %238 = vmatprep.subr.bf16.mxu0 %v254_v6 }
  0x23   :  { %239 = vmatpush3.bf16.msra.mxu0 %v254_v6 }
  0x24   :  { %240 = vmatprep.subr.bf16.mxu0 %v255_v7 }
  0x27   :  { %241 = vmatpush3.bf16.msra.mxu0 %v255_v7 }
  0x28   :  { %242 = vmatprep.subr.bf16.mxu0 %v256_v8 }
  0x2b   :  { %243 = vmatpush3.bf16.msra.mxu0 %v256_v8 }
  0x2e   :  { %245 = vmatmul.mubr.bf16.vlgmr.msra.gmra.mxu0 %v258_v9 }
  0xee   :  { %v246_v10 = vpop.f32.mrf.mxu0 }
  0xef   :  { %v157_v14 = vadd.f32 %v246_v10, %v188_v11 }
  0xf0   :  { %v148_v12 = vpop.f32.mrf.mxu0 }
  0xf1   :  { %v149_v17 = vadd.f32 %v188_v11, %v148_v12 }
  0xf2   :  { %v247_v13 = vpop.f32.mrf.mxu0 }
  0xf3   :  { %v160_v15 = vadd.f32 %v247_v13, %v188_v11 }
  0xf4   :  { %v151_v16 = vpop.f32.mrf.mxu0 }
  0xf5   :  { %v215_v18 = vpack.c.bf16 %v160_v15, %v157_v14  ;;  %v152_v19 = vadd.f32 %v188_v11, %v151_v16 }
  0xf7   :  { %217 = vst [vmem:[%s344_s3 + $0x8] sm:$0xff] %v215_v18   ;;  %v210_v20 = vpack.c.bf16 %v152_v19, %v149_v17 }
  0xf9   :  { %211 = vst [vmem:[%s344_s3] sm:$0xff] %v210_v20  }
  0xfa   :  { %187 = vsyncpa [#allocation3], 1 }

// kernel: encoder_effformer_forward.3
= control target key start
LH: loop header
LB: loop body
LE: loop exit
PB: predicated region body
PF: predicated region fallthrough
CT: control target
= control target key end

     0   :  { %s6626_s0 = inlined_call_operand.vmem [shape: bf16[2,16,128], index: 0, kind: input, shape index: {}]   ;;  %s6627_s1 = inlined_call_operand.vmem [shape: f32[1,16,128], index: 1, kind: input, shape index: {}]   ;;  %s6628_s2 = inlined_call_operand.vmem [shape: f32[2,1,128], index: 2, kind: input, shape index: {}]   ;;  %s6629_s3 = inlined_call_operand.vmem [shape: f32[2,1,128], index: 3, kind: input, shape index: {}]   ;;  %s6630_s4 = inlined_call_operand.hbm [shape: bf16[2,128,384], index: 4, kind: input, shape index: {}]   ;;  %s6631_s5 = inlined_call_operand.hbm [shape: f32[2,1,384], index: 5, kind: input, shape index: {}]   ;;  %s6632_s6 = inlined_call_operand.hbm [shape: bf16[2,128,128], index: 6, kind: input, shape index: {}]   ;;  %s6633_s7 = inlined_call_operand.hbm [shape: f32[2,1,128], index: 7, kind: input, shape index: {}]   ;;  %s6634_s8 = inlined_call_operand.vmem [shape: f32[2,1,128], index: 8, kind: input, shape index: {}]   ;;  %s6635_s9 = inlined_call_operand.vmem [shape: f32[2,1,128], index: 9, kind: input, shape index: {}]   ;;  %s6636_s10 = inlined_call_operand.vmem [shape: bf16[2,128,512], index: 10, kind: input, shape index: {}]   ;;  %s6637_s11 = inlined_call_operand.hbm [shape: f32[2,1,512], index: 11, kind: input, shape index: {}]   ;;  %s6638_s12 = inlined_call_operand.vmem [shape: bf16[2,512,128], index: 12, kind: input, shape index: {}]   ;;  %s6639_s13 = inlined_call_operand.hbm [shape: f32[2,1,128], index: 13, kind: input, shape index: {}]   ;;  %s6640_s14 = inlined_call_operand.vmem [shape: f32[1,128], index: 14, kind: input, shape index: {}]   ;;  %s6641_s15 = inlined_call_operand.vmem [shape: f32[1,128], index: 15, kind: input, shape index: {}]   ;;  %s6642_s16 = inlined_call_operand.hbm [shape: bf16[128,384], index: 16, kind: input, shape index: {}]   ;;  %s6643_s17 = inlined_call_operand.vmem [shape: f32[1,384], index: 17, kind: input, shape index: {}]   ;;  %s6644_s18 = inlined_call_operand.vmem [shape: f32[2,1,384], index: 18, kind: output, shape index: {}]  }
   0x1   :  { %6658 = sst [smem:[#allocation26_spill]] %s6626_s0 }
   0x2   :  { %6659 = sst [smem:[#allocation27_spill]] %s6627_s1 }
   0x3   :  { %6660 = sst [smem:[#allocation28_spill]] %s6628_s2 }
   0x4   :  { %6661 = sst [smem:[#allocation29_spill]] %s6629_s3 }
   0x5   :  { %6662 = sst [smem:[#allocation30_spill]] %s6630_s4 }
   0x6   :  { %6663 = sst [smem:[#allocation31_spill]] %s6631_s5 }
   0x7   :  { %6664 = sst [smem:[#allocation32_spill]] %s6632_s6 }
   0x8   :  { %6665 = sst [smem:[#allocation33_spill]] %s6633_s7 }
   0x9   :  { %6666 = sst [smem:[#allocation34_spill]] %s6634_s8 }
   0xa   :  { %6667 = sst [smem:[#allocation35_spill]] %s6635_s9 }
   0xb   :  { %6668 = sst [smem:[#allocation36_spill]] %s6636_s10 }
   0xc   :  { %6669 = sst [smem:[#allocation37_spill]] %s6637_s11 }
   0xd   :  { %6670 = sst [smem:[#allocation38_spill]] %s6638_s12 }
   0xe   :  { %6671 = sst [smem:[#allocation39_spill]] %s6639_s13 }
   0xf   :  { %6672 = sst [smem:[#allocation40_spill]] %s6640_s14 }
  0x10   :  { %6673 = sst [smem:[#allocation41_spill]] %s6641_s15 }
  0x11   :  { %6674 = sst [smem:[#allocation42_spill]] %s6642_s16 }
  0x12   :  { %6675 = sst [smem:[#allocation43_spill]] %s6643_s17 }
  0x13   :  { %6676 = sst [smem:[#allocation44_spill]] %s6644_s18 }
  0x14   :  { %23 = vsyncpa [#allocation8], 0 }
  0x15   :  { %25 = vsyncpa [#allocation8 + $0x1], 0 }
  0x16   :  { %26 = vsyncpa [#allocation10], 0 }
  0x17   :  { %28 = vsyncpa [#allocation10 + $0x1], 0 }
  0x18   :  { %29 = vsyncpa [#allocation13], 0 }
  0x19   :  { %31 = vsyncpa [#allocation13 + $0x1], 0 }
  0x1a   :  { %32 = vsyncpa [#allocation16], 0 }
  0x1b   :  { %34 = vsyncpa [#allocation16 + $0x1], 0  ;;  %s5690_s27 = smov 0   ;;  %s5692_s28 = smov 0  }
  0x1c   :  { %s5694_s29 = smov 0   ;;  %s5696_s30 = smov 0  }
  0x1d   :  { %s5698_s0 = smov 0   ;;  %s5700_s19 = smov 0  }
  0x1e LB: > { %6677 = sst [smem:[#allocation23_spill]] %s5560_s29  ;;  %s6647_s1 = sadd.s32 4294967295, %s5572_s19   ;;  %s5572_s19 = sphi %s5700_s19, %s40_s19   ;;  %s5568_s0 = sphi %s5698_s0, %s6727_s0   ;;  %s5564_s30 = sphi %s5696_s30, %s6726_s30   ;;  %s5560_s29 = sphi %s5694_s29, %s6722_s29   ;;  %s5556_s28 = sphi %s5692_s28, %s6725_s28   ;;  %s5552_s27 = sphi %s5690_s27, %s6724_s27  }
  0x1f   : > { %p165_p0 = scmp.ne.s32.totalorder %s5560_s29, %s5556_s28  ;;  %p166_p1 = scmp.eq.s32.totalorder %s5572_s19, 0 }
  0x20   : > { %p171_p2 = scmp.ne.s32.totalorder %s5556_s28, %s5552_s27  ;;  %p5726_p3 = scmp.eq.s32.totalorder %s6647_s1, 0 }
  0x21   : > { %p167_p4 = por %p166_p1, %p165_p0  ;;  %p4359_p5 = scmp.ge.s32.totalorder %s5572_s19, 1 }
  0x22   : > { %p5733_p6 = por %p5726_p3, %p171_p2  ;;  %p526_p7 = scmp.lt.s32.totalorder %s5572_s19, 3 }
  0x23   : > { %s5574_s23 = smov [#allocation17]   ;;  %p4945_p10 = scmp.lt.s32.totalorder %s5572_s19, 2 }
  0x24   : > { %s6679_s22 = scalar_select %p5733_p6, 1, 0 }
  0x25   : > { %p5738_p8 = pnand %p4359_p5, %p526_p7  ;;  %s557_s24 = sshll.u32 %s5574_s23, 4  ;;  %s558_s24 = int_to_ptr.vmem [resolvable:$true] %s557_s24 }
  0x26   : > { %p5751_p12 = pnand %p4945_p10, %p167_p4  ;;  %s49_s27 = sadd.s32 1, %s5568_s0 }
  0x27   : > { %s6680_s2 = scalar_select %p5738_p8, 1, 0 }
  0x28   : > { %p4921_p9 = pneg %p5738_p8  ;;  %s5323_s1 = scalar_lea.vmem %s558_s24, 3072 }
  0x29   : > { %p5324_p0 = scmp.ne.s32.totalorder %s558_s24, %s5323_s1  ;;  %p5331_p5 = scmp.lt.s32.totalorder %s558_s24, %s558_s24 }
  0x2a   : > { %p5747_p11 = pnand %p4921_p9, %p5726_p3  ;;  %p5332_p7 = scmp.lt.s32.totalorder %s5323_s1, %s5323_s1 }
  0x2c   : > { %p5314_p13 = pneg %p5747_p11  ;;  %p5333_p6 = por %p5332_p7, %p5331_p5 }
  0x2e   : > { %p5326_p1 = pnand %p5324_p0, %p5314_p13 }
  0x30   : > { %p5327_p2 = pneg %p5326_p1 }
  0x32   : > { %p5334_p8 = pnand %p5333_p6, %p5327_p2 }
  0x34   : > { %5337 = shalt.err (!%p5334_p8)
}
  0x35   : > { %s6651_s23 = smov 192   ;;  %s6652_s20 = smov 12  }
  0x36   : > { %s6683_s16 = sld [smem:[#allocation42_spill]]  ;;  %p50_p4 = scmp.ge.s32.totalorder %s49_s27, 2 }
  0x37   : > { %s5767_s1 = sand.u32 1, %s5560_s29   ;;  %s5770_s15 = sand.u32 1, %s5572_s19  }
  0x38   : > { %s6729_s27 = smov (%p50_p4, %s49_s27), 0  ;;  %s4901_s14 = smul.u32 3, %s5767_s1 }
  0x39   : > { %6684 = sst [smem:[#allocation24_spill]] %s6729_s27  ;;  %s155_s25 = ssub.s32 %s5568_s0, %s6729_s27 }
  0x3a   : > { %s4902_s12 = smul.u32 48, %s5568_s0  ;;  %p156_p6 = scmp.eq.s32.totalorder %s155_s25, 0 }
  0x3b   : > { %s6685_s5 = sld [smem:[#allocation31_spill]]  ;;  %s611_s18 = scalar_lea.vmem [#allocation9], %s4901_s14 }
  0x3c   : > { %4924 = dma.hbm_to_vmem [thread:$0]  (!%p5747_p11), %s6683_s16, 3072, %s558_s24, [#allocation16], %s6651_s23, %s6651_s23, %s6652_s20  }
  0x3d   : > { %s619_s24 = sshll.u32 %s611_s18, 4  ;;  %s6686_s23 = sadd.s32 1, %s5560_s29  ;;  %s620_s24 = int_to_ptr.vmem [resolvable:$true] %s619_s24 }
  0x3e   : > { %s5784_s20 = scalar_select %p156_p6, %s5560_s29, %s6686_s23  }
  0x3f   : > { %s6656_s16 = scalar_lea.sflag [#allocation10], %s5770_s15  ;;  %p5789_p8 = pneg %p5751_p12 }
  0x40   : > { %6687 = sst [smem:[#allocation25_spill]] %s5784_s20  ;;  %s5351_s27 = scalar_lea.vmem %s620_s24, 48 }
  0x41   : > { %s617_s17 = scalar_lea.hbm %s6685_s5, %s4902_s12  ;;  %p5352_p9 = scmp.ne.s32.totalorder %s620_s24, %s5351_s27 }
  0x42   : > { %s5577_s9 = smov [#allocation9]  }
  0x43   : > { %p5354_p10 = pnand %p5352_p9, %p5789_p8  ;;  %s5356_s10 = sshll.u32 %s5577_s9, 4  ;;  %s5357_s10 = int_to_ptr.vmem [resolvable:$false] %s5356_s10 }
  0x44   : > { %s5358_s12 = scalar_lea.vmem %s5357_s10, 96  ;;  %p5359_p13 = scmp.lt.s32.totalorder %s620_s24, %s5357_s10 }
  0x45   : > { %p5355_p11 = pneg %p5354_p10  ;;  %p5360_p0 = scmp.lt.s32.totalorder %s5358_s12, %s5351_s27 }
  0x47   : > { %p5361_p1 = por %p5360_p0, %p5359_p13 }
  0x49   : > { %p5362_p2 = pnand %p5361_p1, %p5355_p11 }
  0x4b   : > { %5365 = shalt.err (!%p5362_p2)
}
  0x4c   : > { %4931 = dma.hbm_to_vmem [thread:$0]  (!%p5751_p12), %s617_s17, 48, %s620_s24, %s6656_s16  }
  0x4d   : > { %s6655_s14 = sshll.u32 %s5568_s0, 4  ;;  %s6689_s7 = sld [smem:[#allocation33_spill]] }
  0x4e   : > { %s650_s27 = scalar_lea.vmem [#allocation12], %s5767_s1  ;;  %s6657_s10 = scalar_lea.sflag [#allocation13], %s5770_s15 }
  0x4f   : > { %s657_s9 = sshll.u32 %s650_s27, 4  ;;  %s5578_s5 = smov [#allocation12]   ;;  %s658_s9 = int_to_ptr.vmem [resolvable:$true] %s657_s9 }
  0x50   : > { %s5379_s12 = scalar_lea.vmem %s658_s9, 16  ;;  %s5384_s20 = sshll.u32 %s5578_s5, 4  ;;  %s5385_s20 = int_to_ptr.vmem [resolvable:$false] %s5384_s20 }
  0x51   : > { %p5380_p5 = scmp.ne.s32.totalorder %s658_s9, %s5379_s12  ;;  %s5386_s29 = scalar_lea.vmem %s5385_s20, 32 }
  0x52   : > { %p5387_p6 = scmp.lt.s32.totalorder %s658_s9, %s5385_s20  ;;  %p5388_p9 = scmp.lt.s32.totalorder %s5386_s29, %s5379_s12 }
  0x53   : > { %s655_s18 = scalar_lea.hbm %s6689_s7, %s6655_s14  ;;  %p5382_p7 = pnand %p5380_p5, %p5789_p8 }
  0x54   : > { %p5389_p10 = por %p5388_p9, %p5387_p6 }
  0x55   : > { %p5383_p4 = pneg %p5382_p7 }
  0x57   : > { %p5390_p11 = pnand %p5389_p10, %p5383_p4 }
  0x59   : > { %5393 = shalt.err (!%p5390_p11)
}
  0x5a   : > { %4937 = dma.hbm_to_vmem [thread:$0]  (!%p5751_p12), %s655_s18, 16, %s658_s9, %s6657_s10  }
  0x5b   : > { %s4899_s17 = smul.u32 192, %s5767_s1  ;;  %s4365_s24 = sshll.u32 %s5767_s1, 6 }
  0x5c   : > { %s4900_s5 = smul.u32 3072, %s5568_s0  ;;  %s6690_s4 = sld [smem:[#allocation30_spill]] }
  0x5d   : > { %s590_s25 = scalar_lea.vmem [#allocation7], %s4899_s17  ;;  %s4585_s12 = sshll.u32 %s5568_s0, 10 }
  0x5e   : > { %s597_s27 = sshll.u32 %s590_s25, 4  ;;  %s587_s14 = scalar_lea.sflag [#allocation8], %s5767_s1  ;;  %s598_s27 = int_to_ptr.vmem [resolvable:$true] %s597_s27 }
  0x5f   : > { %s5407_s16 = scalar_lea.vmem %s598_s27, 3072  ;;  %s5579_s7 = smov [#allocation7]  }
  0x60   : > { %p5408_p13 = scmp.ne.s32.totalorder %s598_s27, %s5407_s16  ;;  %s5412_s3 = sshll.u32 %s5579_s7, 4  ;;  %s5413_s3 = int_to_ptr.vmem [resolvable:$false] %s5412_s3 }
  0x61   : > { %s5414_s18 = scalar_lea.vmem %s5413_s3, 6144  ;;  %p5415_p2 = scmp.lt.s32.totalorder %s598_s27, %s5413_s3 }
  0x62   : > { %s596_s29 = scalar_lea.hbm %s6690_s4, %s4900_s5  ;;  %p5410_p0 = pnand %p5408_p13, %p5789_p8 }
  0x63   : > { %p5416_p5 = scmp.lt.s32.totalorder %s5414_s18, %s5407_s16 }
  0x64   : > { %p5411_p1 = pneg %p5410_p0 }
  0x65   : > { %p5417_p7 = por %p5416_p5, %p5415_p2 }
  0x67   : > { %p5418_p4 = pnand %p5417_p7, %p5411_p1 }
  0x69   : > { %5421 = shalt.err (!%p5418_p4)
}
  0x6a   : > { %s6691_s9 = smov 12   ;;  %s6692_s17 = smov 192  }
  0x6b   : > { %4928 = dma.hbm_to_vmem [thread:$0]  (!%p5751_p12), %s596_s29, 3072, %s598_s27, %s587_s14, %s6692_s17, %s6692_s17, %s6691_s9  }
  0x6c   : > { %s6693_s6 = sld [smem:[#allocation32_spill]]  ;;  %s630_s7 = scalar_lea.vmem [#allocation11], %s4365_s24 }
  0x6d   : > { %s637_s25 = sshll.u32 %s630_s7, 4  ;;  %s4369_s3 = sshll.u32 %s5767_s1, 2  ;;  %s638_s25 = int_to_ptr.vmem [resolvable:$true] %s637_s25 }
  0x6e   : > { %s5435_s16 = scalar_lea.vmem %s638_s25, 1024  ;;  %s5580_s18 = smov [#allocation11]  }
  0x6f   : > { %p5436_p6 = scmp.ne.s32.totalorder %s638_s25, %s5435_s16  ;;  %s5440_s10 = sshll.u32 %s5580_s18, 4  ;;  %s5441_s10 = int_to_ptr.vmem [resolvable:$false] %s5440_s10 }
  0x70   : > { %s5442_s4 = scalar_lea.vmem %s5441_s10, 2048  ;;  %p5443_p11 = scmp.lt.s32.totalorder %s638_s25, %s5441_s10 }
  0x71   : > { %p5438_p9 = pnand %p5436_p6, %p5789_p8  ;;  %p5444_p13 = scmp.lt.s32.totalorder %s5442_s4, %s5435_s16 }
  0x72   : > { %s636_s20 = scalar_lea.hbm %s6693_s6, %s4585_s12 }
  0x73   : > { %p5439_p10 = pneg %p5438_p9  ;;  %p5445_p0 = por %p5444_p13, %p5443_p11 }
  0x75   : > { %p5446_p1 = pnand %p5445_p0, %p5439_p10 }
  0x77   : > { %5449 = shalt.err (!%p5446_p1)
}
  0x78   : > { %s5581_s14 = smov 64   ;;  %s5582_s24 = smov 4  }
  0x79   : > { %s6694_s29 = scalar_lea.sflag [#allocation10], %s5770_s15  ;;  %s4586_s27 = sshll.u32 %s5568_s0, 6 }
  0x7a   : > { %4934 = dma.hbm_to_vmem [thread:$0]  (!%p5751_p12), %s636_s20, 1024, %s638_s25, %s6694_s29, %s5581_s14, %s5581_s14, %s5582_s24  }
  0x7b   : > { %s6695_s11 = sld [smem:[#allocation37_spill]]  ;;  %s688_s10 = scalar_lea.vmem [#allocation14], %s4369_s3 }
  0x7c   : > { %s696_s4 = sshll.u32 %s688_s10, 4  ;;  %s6696_s5 = sshll.u32 %s5568_s0, 4  ;;  %s697_s4 = int_to_ptr.vmem [resolvable:$true] %s696_s4 }
  0x7d   : > { %s6697_s13 = sld [smem:[#allocation39_spill]]  ;;  %s5463_s18 = scalar_lea.vmem %s697_s4, 64 }
  0x7e   : > { %p5464_p2 = scmp.ne.s32.totalorder %s697_s4, %s5463_s18  ;;  %s5583_s20 = smov [#allocation14]  }
  0x7f   : > { %s5468_s25 = sshll.u32 %s5583_s20, 4  ;;  %s5469_s25 = int_to_ptr.vmem [resolvable:$false] %s5468_s25 }
  0x80   : > { %p5466_p5 = pnand %p5464_p2, %p5789_p8  ;;  %s5470_s14 = scalar_lea.vmem %s5469_s25, 128 }
  0x81   : > { %s694_s17 = scalar_lea.hbm %s6695_s11, %s4586_s27  ;;  %p5471_p4 = scmp.lt.s32.totalorder %s697_s4, %s5469_s25 }
  0x82   : > { %p5467_p7 = pneg %p5466_p5  ;;  %p5472_p6 = scmp.lt.s32.totalorder %s5470_s14, %s5463_s18 }
  0x83   : > { %s5847_s16 = scalar_lea.hbm %s6697_s13, %s6696_s5 }
  0x84   : > { %p5473_p9 = por %p5472_p6, %p5471_p4 }
  0x86   : > { %p5474_p10 = pnand %p5473_p9, %p5467_p7 }
  0x88   : > { %5477 = shalt.err (!%p5474_p10)
}
  0x89   : > { %s6698_s3 = scalar_lea.sflag [#allocation13], %s5770_s15  ;;  %s714_s24 = scalar_lea.vmem [#allocation15], %s5767_s1 }
  0x8a   : > { %4940 = dma.hbm_to_vmem [thread:$0]  (!%p5751_p12), %s694_s17, 64, %s697_s4, %s6698_s3  }
  0x8b   : > { %s721_s29 = sshll.u32 %s714_s24, 4  ;;  %s712_s27 = scalar_lea.sflag [#allocation16], %s5770_s15  ;;  %s722_s29 = int_to_ptr.vmem [resolvable:$true] %s721_s29 }
  0x8c   : > { %s5491_s12 = scalar_lea.vmem %s722_s29, 16  ;;  %s5584_s9 = smov [#allocation15]  }
  0x8d   : > { %p5492_p11 = scmp.ne.s32.totalorder %s722_s29, %s5491_s12  ;;  %s5496_s10 = sshll.u32 %s5584_s9, 4  ;;  %s5497_s10 = int_to_ptr.vmem [resolvable:$false] %s5496_s10 }
  0x8e   : > { %s5498_s5 = scalar_lea.vmem %s5497_s10, 32  ;;  %p5499_p1 = scmp.lt.s32.totalorder %s722_s29, %s5497_s10 }
  0x8f   : > { %p5494_p13 = pnand %p5492_p11, %p5789_p8  ;;  %p5500_p2 = scmp.lt.s32.totalorder %s5498_s5, %s5491_s12 }
  0x91   : > { %p5495_p0 = pneg %p5494_p13  ;;  %p5501_p5 = por %p5500_p2, %p5499_p1 }
  0x93   : > { %p5502_p7 = pnand %p5501_p5, %p5495_p0 }
  0x95   : > { %5505 = shalt.err (!%p5502_p7)
}
  0x96   : > { %4943 = dma.hbm_to_vmem [thread:$0]  (!%p5751_p12), %s5847_s16, 16, %s722_s29, %s712_s27  }
  0x97   : > { %p6699_p4 = scmp.ne.s32.totalorder %s6680_s2, 0 }
  0x98   : > { %s5865_s8 = sand.u32 (!%p6699_p4), 1, %s5556_s28   ;;  %p6700_p8 = scmp.ne.s32.totalorder (!%p6699_p4), %s6679_s22, 0 }
  0x99   : > { %730 = sbr.rel (%p6699_p4) target bundleno = 3779 (0xec3), region = 92  ;;  %s733_s1 = scalar_lea.sflag (!%p6699_p4), [#allocation8], %s5865_s8 }
  0x9a   : > { %s4903_s15 = smul.u32 (!%p6699_p4), 192, %s5865_s8 }
  0x9c   : > { %s5869_s17 = scalar_lea.vmem (!%p6699_p4), [#allocation7], %s4903_s15 }
  0x9e   : > { %5531 = dma.done.wait (%p6700_p8), %s733_s1, 3072  }
  0x9f   : > { %5533 = vsyncadd (%p6700_p8), %s733_s1, 4294964224  ;;  %s6701_s26 = sadd.s32 4294967295, %s5572_s19   ;;  %s4904_s4 = smul.u32 3, %s5865_s8 }
  0xa0   : > { %s741_s2 = sand.u32 1, %s6701_s26  }
  0xa1   : > { %s742_s23 = scalar_lea.sflag [#allocation10], %s741_s2  ;;  %s5878_s7 = scalar_lea.vmem [#allocation9], %s4904_s4 }
  0xa2   : > { %5535 = dma.done.wait (%p6700_p8), %s742_s23, 1072  }
  0xa3   : > { %5537 = vsyncadd (%p6700_p8), %s742_s23, 4294966224  ;;  %s4374_s16 = sshll.u32 %s5865_s8, 6  ;;  %s760_s20 = scalar_lea.sflag [#allocation13], %s741_s2 }
  0xa4   : > { %s5885_s18 = scalar_lea.vmem [#allocation11], %s4374_s16 }
  0xa5   : > { %5539 = dma.done.wait (%p6700_p8), %s760_s20, 80  }
  0xa6   : > { %5541 = vsyncadd (%p6700_p8), %s760_s20, 4294967216  ;;  %s4375_s14 = sshll.u32 %s5865_s8, 2  ;;  %s777_s24 = scalar_lea.sflag [#allocation16], %s741_s2 }
  0xa7   : > { %s5893_s3 = scalar_lea.vmem [#allocation14], %s4375_s14 }
  0xa8   : > { %5543 = dma.done.wait (%p6700_p8), %s777_s24, 16  }
  0xa9   : > { %5545 = vsyncadd (%p6700_p8), %s777_s24, 4294967280 }
  0xaa   : > { %5547 = dma.done.wait (%p5726_p3), [#allocation16], 3072  }
  0xab   : > { %5549 = vsyncadd (%p5726_p3), [#allocation16], 4294964224  ;;  %p894_p12 = scmp.lt.s32.totalorder %s5564_s30, 1  ;;  %s6703_s1 = sld [smem:[#allocation29_spill]] }
  0xac   : > { %s6704_s4 = sld [smem:[#allocation34_spill]]  ;;  %p4381_p3 = scmp.ne.s32.totalorder %s5564_s30, 0 }
  0xad   : > { %s5906_s27 = scalar_select %p894_p12, %s5564_s30, 1 }
  0xae   : > { %s6705_s14 = sld [smem:[#allocation35_spill]] }
  0xaf   : > { %s4587_s29 = sshll.u32 %s5906_s27, 8  ;;  %s6706_s9 = sld [smem:[#allocation36_spill]] }
  0xb0   : > { %s6707_s22 = sld [smem:[#allocation38_spill]] }
  0xb1   : > { %s899_s26 = scalar_lea.vmem %s6703_s1, %s5906_s27  ;;  %s6708_s1 = sld [smem:[#allocation26_spill]] (!%p4381_p3) }
  0xb2   : > { %s902_s23 = scalar_lea.vmem %s6704_s4, %s5906_s27  ;;  %926 = sbr.rel (%p4381_p3) target bundleno = 190 (0xbe), region = 124 }
  0xb3   : > { %s6709_s4 = sld [smem:[#allocation27_spill]] (!%p4381_p3) }
  0xb4   : > { %s905_s24 = scalar_lea.vmem %s6705_s14, %s5906_s27 }
  0xb5   : > { %s5928_s6 = scalar_lea.vmem %s6706_s9, %s4587_s29 }
  0xb6   : > { %s5933_s13 = scalar_lea.vmem %s6707_s22, %s4587_s29 }
  0xb7   : > { %v4618_v0 = vld [vmem:[%s6708_s1] sm:$0xff]   ;;  %v4625_v5 = vld [vmem:[%s6708_s1 + $0x8] sm:$0xff]  }
  0xb8   : > { %v4619_v3 = vunpack.c.l.bf16 %v4618_v0  ;;  %v4620_v4 = vunpack.c.h.bf16 %v4618_v0  ;;  %v4623_v6 = vunpack.c.l.bf16 %v4625_v5  ;;  %v4624_v7 = vunpack.c.h.bf16 %v4625_v5 }
  0xb9   : > { %v935_v1 = vld [vmem:[%s6709_s4] sm:$0xff]  ;;  %v936_v2 = vld [vmem:[%s6709_s4 + $0x8] sm:$0xff] }
  0xba   : > { %v937_v8 = vadd.f32 %v4619_v3, %v935_v1  ;;  %v938_v9 = vadd.f32 %v4620_v4, %v936_v2  ;;  %v939_v10 = vadd.f32 %v4623_v6, %v935_v1  ;;  %v940_v11 = vadd.f32 %v4624_v7, %v936_v2 }
  0xbc   : > { %941 = vst [vmem:[#allocation2 + $0x10] sm:$0xff] %v937_v8  ;;  %942 = vst [vmem:[#allocation2] sm:$0xff] %v938_v9 }
  0xbd   : > { %943 = vst [vmem:[#allocation2 + $0x18] sm:$0xff] %v939_v10  ;;  %944 = vst [vmem:[#allocation2 + $0x8] sm:$0xff] %v940_v11 }
  0xbe PF: > { %v5010_v15 = vld [vmem:[%s5869_s17 + $0xac] ss:$12 sps:$4 sm:$0xff]   ;;  %v5012_v16 = vld [vmem:[%s5869_s17 + $0xa8] ss:$12 sps:$4 sm:$0xff]   ;;  %v5015_v27 = vld [vmem:[%s5869_s17 + $0x90] ss:$12 sps:$4 sm:$0xff]  }
  0xbf   : > { %1195 = vmatprep.subr.bf16.mxu0 %v5010_v15  ;;  %v5013_v26 = vld [vmem:[%s5869_s17 + $0x94] ss:$12 sps:$4 sm:$0xff]   ;;  %v5016_v28 = vld [vmem:[%s5869_s17 + $0x7c] ss:$12 sps:$4 sm:$0xff]   ;;  %v5018_v29 = vld [vmem:[%s5869_s17 + $0x78] ss:$12 sps:$4 sm:$0xff]  }
  0xc0   : > { %1196 = vmatpush1.bf16.msra.mxu0 %v5012_v16  ;;  %v5019_v30 = vld [vmem:[%s5869_s17 + $0x64] ss:$12 sps:$4 sm:$0xff]   ;;  %v5021_v31 = vld [vmem:[%s5869_s17 + $0x60] ss:$12 sps:$4 sm:$0xff]   ;;  %v5024_v33 = vld [vmem:[%s5869_s17 + $0x48] ss:$12 sps:$4 sm:$0xff]  }
  0xc1   : > { %1197 = vmatprep.subr.bf16.mxu0 %v5013_v26  ;;  %v5022_v32 = vld [vmem:[%s5869_s17 + $0x4c] ss:$12 sps:$4 sm:$0xff]   ;;  %v5025_v34 = vld [vmem:[%s5869_s17 + $0x34] ss:$12 sps:$4 sm:$0xff]   ;;  %v5585_v35 = vmov 0   ;;  %s6710_s14 = sld [smem:[#allocation28_spill]]  ;;  %v1052_v26 = vlaneseq }
  0xc2   : > { %1227 = vmatprep.mubr.bf16.mxu0 %v5585_v35  ;;  %v5027_v36 = vld [vmem:[%s5869_s17 + $0x30] ss:$12 sps:$4 sm:$0xff]   ;;  %v5030_v38 = vld [vmem:[%s5869_s17 + $0x18] ss:$12 sps:$4 sm:$0xff]   ;;  %v5033_v42 = vld [vmem:[%s5869_s17] ss:$12 sps:$4 sm:$0xff]  }
  0xc3   : > { %v945_v12 = vld [vmem:[#allocation2 + $0x10] sm:$0xff]  ;;  %v946_v13 = vld [vmem:[#allocation2] sm:$0xff]  ;;  %v5028_v37 = vld [vmem:[%s5869_s17 + $0x1c] ss:$12 sps:$4 sm:$0xff]   ;;  %v5586_v10 = vmov 0.0   ;;  %vm5587_vm0 = vmmov 0  }
  0xc4   : > { %951 = vadd.xlane.f32.xlu0 %v945_v12  ;;  %v947_v14 = vld [vmem:[#allocation2 + $0x18] sm:$0xff]  ;;  %v948_v25 = vld [vmem:[#allocation2 + $0x8] sm:$0xff]  ;;  %1198 = vmatpush1.bf16.msra.mxu0 %v5015_v27  ;;  %v5031_v40 = vld [vmem:[%s5869_s17 + $0x4] ss:$12 sps:$4 sm:$0xff]   ;;  %v6006_v27 = vshrl.u32 %v1052_v26, 7  ;;  %vm1317_vm1 = vcmask 257024  }
  0xc5   : > { %1199 = vmatprep.subr.bf16.mxu0 %v5016_v28  ;;  %v5034_v45 = vld [vmem:[%s5869_s17 + $0xb0] ss:$12 sps:$4 sm:$0xff]   ;;  %v5035_v46 = vld [vmem:[%s5869_s17 + $0x98] ss:$12 sps:$4 sm:$0xff]   ;;  %v5036_v4 = vld [vmem:[%s5869_s17 + $0x80] ss:$12 sps:$4 sm:$0xff]  }
  0xc6   : > { %4743 = vmatprep.subr.bf16.mxu1 %v5034_v45  ;;  %v4383_v63 = vld [vmem:[%s899_s26] ss:$0 sm:$0xff]  ;;  %v5037_v5 = vld [vmem:[%s5869_s17 + $0x68] ss:$12 sps:$4 sm:$0xff]   ;;  %v5039_v7 = vld [vmem:[%s5869_s17 + $0x38] ss:$12 sps:$4 sm:$0xff]  }
  0xc7   : > { %4744 = vmatpush3.bf16.msra.mxu1 %v5034_v45  ;;  %s6711_s12 = scalar_lea.vmem %s6710_s14, %s5906_s27  ;;  %v5038_v6 = vld [vmem:[%s5869_s17 + $0x50] ss:$12 sps:$4 sm:$0xff]   ;;  %v5040_v8 = vld [vmem:[%s5869_s17 + $0x20] ss:$12 sps:$4 sm:$0xff]   ;;  %v5041_v9 = vld [vmem:[%s5869_s17 + $0x8] ss:$12 sps:$4 sm:$0xff]  }
  0xc8   : > { %953 = vadd.xlane.f32.xlu0 %v946_v13  ;;  %1200 = vmatpush1.bf16.msra.mxu0 %v5018_v29  ;;  %v4382_v59 = vld [vmem:[%s6711_s12] ss:$0 sm:$0xff]  ;;  %v6009_v28 = vsub.s32 0, %v6006_v27  ;;  %v6012_v29 = vld [vmem:[%s5878_s7] sm:$0x7]  ;;  %s5588_s17 = smov 64  }
  0xc9   : > { %1201 = vmatprep.subr.bf16.mxu0 %v5019_v30  ;;  %4745 = vmatprep.subr.bf16.mxu1 %v5035_v46  ;;  %v6015_v30 = vsub.s32 1, %v6006_v27  ;;  %s5589_s7 = smov 96   ;;  %s5590_s26 = smov 32   ;;  %vm1545_vm2 = vcmask 261120   ;;  %vm1764_vm3 = vcmask 130048   ;;  %vm2079_vm4 = vcmask 519424  }
  0xca   : > { %vm2094_vm5 = vcmask 781824   ;;  %vm2109_vm6 = vcmask 1044224   ;;  %p4554_p6 = scmp.ne.s32.totalorder %s5564_s30, 1 }
  0xcb   : > { %4746 = vmatpush3.bf16.msra.mxu1 %v5035_v46  ;;  %s6719_s22 = sld [smem:[#allocation43_spill]] (!%p4554_p6) }
  0xcc   : > { %955 = vadd.xlane.f32.xlu0 %v947_v14  ;;  %1202 = vmatpush1.bf16.msra.mxu0 %v5021_v31  ;;  %v6019_v31 = vrot.slane %v6012_v29, %v6009_v28  ;;  %s6720_s12 = sld [smem:[#allocation44_spill]] (!%p4554_p6) }
  0xcd   : > { %1203 = vmatprep.subr.bf16.mxu0 %v5022_v32  ;;  %4747 = vmatprep.subr.bf16.mxu1 %v5036_v4  ;;  %v6023_v32 = vrot.slane %v6012_v29, %v6015_v30 }
  0xcf   : > { %4748 = vmatpush3.bf16.msra.mxu1 %v5036_v4 }
  0xd0   : > { %1204 = vmatpush1.bf16.msra.mxu0 %v5024_v33  ;;  %4749 = vmatprep.subr.bf16.mxu1 %v5037_v5 }
  0xd1   : > { %1205 = vmatprep.subr.bf16.mxu0 %v5025_v34 }
  0xd3   : > { %4750 = vmatpush3.bf16.msra.mxu1 %v5037_v5 }
  0xd4   : > { %1206 = vmatpush1.bf16.msra.mxu0 %v5027_v36  ;;  %4751 = vmatprep.subr.bf16.mxu1 %v5038_v6 }
  0xd5   : > { %1207 = vmatprep.subr.bf16.mxu0 %v5028_v37 }
  0xd7   : > { %4752 = vmatpush3.bf16.msra.mxu1 %v5038_v6 }
  0xd8   : > { %1208 = vmatpush1.bf16.msra.mxu0 %v5030_v38  ;;  %4753 = vmatprep.subr.bf16.mxu1 %v5039_v7 }
  0xd9   : > { %1209 = vmatprep.subr.bf16.mxu0 %v5031_v40 }
  0xdb   : > { %4754 = vmatpush3.bf16.msra.mxu1 %v5039_v7 }
  0xdc   : > { %1210 = vmatpush1.bf16.msra.mxu0 %v5033_v42  ;;  %4755 = vmatprep.subr.bf16.mxu1 %v5040_v8 }
  0xdd   : > { %4763 = vmatprep.subr.bf16.mxu0 %v5586_v10 }
  0xdf   : > { %4756 = vmatpush3.bf16.msra.mxu1 %v5040_v8 }
  0xe0   : > { %4757 = vmatprep.subr.bf16.mxu1 %v5041_v9 }
  0xe3   : > { %4758 = vmatpush3.bf16.msra.mxu1 %v5041_v9 }
  0xe4   : > { %4775 = vmatprep.subr.bf16.mxu1 %v5586_v10 }
 0x14d   : > { %v952_v17 = vpop.xlane.xlu0 %951 }
 0x14e   : > { %v960_v18 = vmul.f32 0.0078125, %v952_v17 }
 0x150   : > { %v5950_v19 = vsub.f32 %v945_v12, %v960_v18 }
 0x151   : > { %v954_v20 = vpop.xlane.xlu0 %953 }
 0x152   : > { %v961_v21 = vmul.f32 0.0078125, %v954_v20  ;;  %v968_v22 = vmul.f32 %v5950_v19, %v5950_v19 }
 0x154   : > { %v5954_v23 = vsub.f32 %v946_v13, %v961_v21  ;;  %972 = vadd.xlane.f32.xlu1 %v968_v22 }
 0x155   : > { %v956_v39 = vpop.xlane.xlu0 %955 }
 0x156   : > { %v969_v24 = vmul.f32 %v5954_v23, %v5954_v23  ;;  %v962_v41 = vmul.f32 0.0078125, %v956_v39 }
 0x158   : > { %974 = vadd.xlane.f32.xlu1 %v969_v24  ;;  %v5973_v43 = vsub.f32 %v947_v14, %v962_v41 }
 0x15a   : > { %v970_v44 = vmul.f32 %v5973_v43, %v5973_v43 }
 0x15c   : > { %957 = vadd.xlane.f32.xlu1 %v948_v25  ;;  %976 = vadd.xlane.f32.xlu0 %v970_v44 }
 0x1dd   : > { %v973_v47 = vpop.xlane.xlu1 %972 }
 0x1de   : > { %v980_v48 = vmul.f32 0.0078125, %v973_v47 }
 0x1e0   : > { %v984_v49 = vadd.f32 1e-06, %v980_v48 }
 0x1e1   : > { %v975_v50 = vpop.xlane.xlu1 %974 }
 0x1e2   : > { %5156 = vrsqrt.f32 %v984_v49  ;;  %v981_v51 = vmul.f32 0.0078125, %v975_v50 }
 0x1e4   : > { %v985_v52 = vadd.f32 1e-06, %v981_v51 }
 0x1e5   : > { %v958_v53 = vpop.xlane.xlu1 %957  ;;  %v977_v11 = vpop.xlane.xlu0 %976 }
 0x1e6   : > { %5158 = vrsqrt.f32 %v985_v52  ;;  %v963_v54 = vmul.f32 0.0078125, %v958_v53  ;;  %v982_v12 = vmul.f32 0.0078125, %v977_v11 }
 0x1e8   : > { %v967_v55 = vsub.f32 %v948_v25, %v963_v54  ;;  %v986_v13 = vadd.f32 1e-06, %v982_v12 }
 0x1ea   : > { %v971_v56 = vmul.f32 %v967_v55, %v967_v55  ;;  %5160 = vrsqrt.f32 %v986_v13 }
 0x1ec   : > { %978 = vadd.xlane.f32.xlu1 %v971_v56 }
 0x1ef   : > { %v5157_v57 = vpop.eup %5156 }
 0x1f0   : > { %v992_v58 = vmul.f32 %v5157_v57, %v5950_v19 }
 0x1f2   : > { %v1002_v62 = vmul.f32 %v4382_v59, %v992_v58 }
 0x1f3   : > { %v5159_v60 = vpop.eup %5158 }
 0x1f4   : > { %v993_v61 = vmul.f32 %v5159_v60, %v5954_v23  ;;  %v1012_v1 = vadd.f32 %v4383_v63, %v1002_v62 }
 0x1f6   : > { %v1003_v0 = vmul.f32 %v4382_v59, %v993_v61 }
 0x1f7   : > { %v5161_v17 = vpop.eup %5160 }
 0x1f8   : > { %v1013_v2 = vadd.f32 %v4383_v63, %v1003_v0  ;;  %v994_v18 = vmul.f32 %v5161_v17, %v5973_v43 }
 0x1fa   : > { %v1016_v3 = vpack.c.bf16 %v1013_v2, %v1012_v1  ;;  %v1004_v19 = vmul.f32 %v4382_v59, %v994_v18 }
 0x1fc   : > { %1228 = vmatmul.mubr.bf16.vlgmr.msra.gmra.mxu0 %v1016_v3  ;;  %4759 = vmatprep.mubr.bf16.mxu1 %v1016_v3  ;;  %v1014_v23 = vadd.f32 %v4383_v63, %v1004_v19 }
 0x1fd   : > { %1237 = vmatprep.mubr.bf16.mxu0 %v5585_v35 }
 0x275   : > { %v979_v14 = vpop.xlane.xlu1 %978 }
 0x276   : > { %v983_v15 = vmul.f32 0.0078125, %v979_v14 }
 0x278   : > { %v987_v16 = vadd.f32 1e-06, %v983_v15 }
 0x27a   : > { %5162 = vrsqrt.f32 %v987_v16 }
 0x287   : > { %v5163_v20 = vpop.eup %5162 }
 0x288   : > { %v995_v21 = vmul.f32 %v5163_v20, %v967_v55 }
 0x28a   : > { %v1005_v22 = vmul.f32 %v4382_v59, %v995_v21 }
 0x28c   : > { %v1015_v24 = vadd.f32 %v4383_v63, %v1005_v22  ;;  %v6063_v63 = vsub.s32 2, %v6006_v27 }
 0x28e   : > { %v1017_v25 = vpack.c.bf16 %v1015_v24, %v1014_v23  ;;  %v1063_v4 = vrot.slane %v6012_v29, %v6063_v63 }
 0x290   : > { %1238 = vmatmul.mubr.bf16.gmra.mxu0 %v1017_v25  ;;  %4760 = vmatmul.mubr.bf16.vlgmr.msra.gmra.mxu1 %v1017_v25 }
 0x291   : > { %4765 = vmatprep.mubr.msk.bf16.mxu0 %vm5587_vm0, %v5586_v10  ;;  %4777 = vmatprep.mubr.msk.bf16.mxu1 %vm5587_vm0, %v5586_v10 }
 0x2bc   : > { %v1229_v33 = vpop.f32.mrf.mxu0 }
 0x2bd   : > { %v1230_v34 = vadd.f32 %v1229_v33, %v6019_v31 }
 0x2be   : > { %v1231_v36 = vpop.f32.mrf.mxu0 }
 0x2bf   : > { %v4589_v37 = vpack.c.bf16 %v1230_v34, %v1230_v34  ;;  %v1232_v38 = vadd.f32 %v1231_v36, %v6023_v32 }
 0x2c0   : > { %v1233_v39 = vpop.f32.mrf.mxu0 }
 0x2c1   : > { %1318 = vst.msk [vmem:[#allocation3] sm:$0xf] %vm1317_vm1, %v4589_v37  ;;  %v4593_v40 = vpack.c.bf16 %v1232_v38, %v1232_v38  ;;  %v1234_v41 = vadd.f32 %v1233_v39, %v6019_v31 }
 0x2c2   : > { %v1235_v42 = vpop.f32.mrf.mxu0 }
 0x2c3   : > { %1336 = vst.msk [vmem:[#allocation4] sm:$0xf] %vm1317_vm1, %v4593_v40  ;;  %v4590_v43 = vpack.c.bf16 %v1234_v41, %v1234_v41  ;;  %v1236_v44 = vadd.f32 %v1235_v42, %v6023_v32  ;;  %1426 = vrot.lane.b32.xlu1 %v4593_v40, %s5588_s17  ;;  %1375 = vrot.lane.b32.xlu0 %v4593_v40, %s5589_s7 }
 0x2c5   : > { %1319 = vst.msk [vmem:[#allocation3 + $0x4] sm:$0xf] %vm1317_vm1, %v4590_v43  ;;  %v4594_v45 = vpack.c.bf16 %v1236_v44, %v1236_v44 }
 0x2c7   : > { %1337 = vst.msk [vmem:[#allocation4 + $0x4] sm:$0xf] %vm1317_vm1, %v4594_v45  ;;  %1360 = vrot.lane.b32.xlu1 %v4590_v43, %s5589_s7  ;;  %1358 = vrot.lane.b32.xlu0 %v4589_v37, %s5589_s7 }
 0x2cb   : > { %1377 = vrot.lane.b32.xlu1 %v4594_v45, %s5589_s7  ;;  %1477 = vrot.lane.b32.xlu0 %v4593_v40, %s5590_s26 }
 0x2cc   : > { %v5043_v48 = vld [vmem:[#allocation3] sm:$0xff]  }
 0x2ce   : > { %v5042_v46 = vld [vmem:[#allocation4] sm:$0xff]  }
 0x2cf   : > { %1428 = vrot.lane.b32.xlu1 %v4594_v45, %s5588_s17  ;;  %1409 = vrot.lane.b32.xlu0 %v4589_v37, %s5588_s17  ;;  %v1550_v47 = vsel %vm1545_vm2, %v5042_v46, 0 }
 0x2d0   : > { %4764 = vmatpush3.bf16.xpose.msra.mxu0 %v1550_v47 }
 0x2d1   : > { %4769 = vmatprep.subr.bf16.mxu0 %v5586_v10 }
 0x2d3   : > { %1479 = vrot.lane.b32.xlu1 %v4594_v45, %s5590_s26  ;;  %1460 = vrot.lane.b32.xlu0 %v4589_v37, %s5590_s26 }
 0x2d7   : > { %1411 = vrot.lane.b32.xlu1 %v4590_v43, %s5588_s17  ;;  %4766 = vmatmul.mubr.msk.bf16.vlgmr.msra.gmra.mxu0 %vm1545_vm2, %v5043_v48 }
 0x2d8   : > { %4771 = vmatprep.mubr.msk.bf16.mxu0 %vm5587_vm0, %v5586_v10 }
 0x2db   : > { %1462 = vrot.lane.b32.xlu1 %v4590_v43, %s5590_s26 }
 0x335   : > { %v1427_v49 = vpop.permute.xlu1 %1426  ;;  %v1376_v50 = vpop.permute.xlu0 %1375 }
 0x336   : > { %1439 = vst.msk [vmem:[#allocation4 + $0x20] sm:$0xf] %vm1317_vm1, %v1427_v49  ;;  %1388 = vst.msk [vmem:[#allocation4 + $0x10] sm:$0xf] %vm1317_vm1, %v1376_v50 }
 0x339   : > { %v1361_v51 = vpop.permute.xlu1 %1360  ;;  %v1359_v52 = vpop.permute.xlu0 %1358 }
 0x33a   : > { %1372 = vst.msk [vmem:[#allocation3 + $0x14] sm:$0xf] %vm1317_vm1, %v1361_v51  ;;  %1371 = vst.msk [vmem:[#allocation3 + $0x10] sm:$0xf] %vm1317_vm1, %v1359_v52 }
 0x33d   : > { %v1378_v53 = vpop.permute.xlu1 %1377  ;;  %v1478_v54 = vpop.permute.xlu0 %1477 }
 0x33e   : > { %1389 = vst.msk [vmem:[#allocation4 + $0x14] sm:$0xf] %vm1317_vm1, %v1378_v53  ;;  %1490 = vst.msk [vmem:[#allocation4 + $0x30] sm:$0xf] %vm1317_vm1, %v1478_v54 }
 0x341   : > { %v1429_v55 = vpop.permute.xlu1 %1428  ;;  %v1410_v56 = vpop.permute.xlu0 %1409  ;;  %v5046_v1 = vld [vmem:[#allocation3 + $0x10] sm:$0xff]  }
 0x342   : > { %1440 = vst.msk [vmem:[#allocation4 + $0x24] sm:$0xf] %vm1317_vm1, %v1429_v55  ;;  %1422 = vst.msk [vmem:[#allocation3 + $0x20] sm:$0xf] %vm1317_vm1, %v1410_v56 }
 0x345   : > { %v1480_v57 = vpop.permute.xlu1 %1479  ;;  %v1461_v58 = vpop.permute.xlu0 %1460  ;;  %v5044_v59 = vld [vmem:[#allocation4 + $0x10] sm:$0xff]  }
 0x346   : > { %1491 = vst.msk [vmem:[#allocation4 + $0x34] sm:$0xf] %vm1317_vm1, %v1480_v57  ;;  %1473 = vst.msk [vmem:[#allocation3 + $0x30] sm:$0xf] %vm1317_vm1, %v1461_v58  ;;  %v1607_v60 = vsel %vm1545_vm2, %v5044_v59, 0 }
 0x347   : > { %4770 = vmatpush3.bf16.xpose.msra.mxu0 %v1607_v60 }
 0x348   : > { %4781 = vmatprep.subr.bf16.mxu0 %v5586_v10 }
 0x349   : > { %v1412_v61 = vpop.permute.xlu1 %1411  ;;  %v5045_v62 = vld [vmem:[#allocation4 + $0x20] sm:$0xff]  }
 0x34a   : > { %1423 = vst.msk [vmem:[#allocation3 + $0x24] sm:$0xf] %vm1317_vm1, %v1412_v61  ;;  %v1664_v0 = vsel %vm1545_vm2, %v5045_v62, 0 }
 0x34b   : > { %4776 = vmatpush3.bf16.xpose.msra.mxu1 %v1664_v0 }
 0x34c   : > { %4787 = vmatprep.subr.bf16.mxu1 %v5586_v10 }
 0x34d   : > { %v1463_v2 = vpop.permute.xlu1 %1462  ;;  %v5047_v3 = vld [vmem:[#allocation4 + $0x30] sm:$0xff]  }
 0x34e   : > { %1474 = vst.msk [vmem:[#allocation3 + $0x34] sm:$0xf] %vm1317_vm1, %v1463_v2  ;;  %4772 = vmatmul.mubr.msk.bf16.vlgmr.msra.gmra.mxu0 %vm1545_vm2, %v5046_v1  ;;  %v1721_v5 = vsel %vm1545_vm2, %v5047_v3, 0 }
 0x34f   : > { %4782 = vmatpush3.bf16.xpose.msra.mxu0 %v1721_v5  ;;  %4783 = vmatprep.mubr.msk.bf16.mxu0 %vm5587_vm0, %v5586_v10 }
 0x350   : > { %v1239_v6 = vpop.f32.mrf.mxu0  ;;  %v4761_v7 = vpop.f32.mrf.mxu1  ;;  %4793 = vmatprep.subr.bf16.mxu0 %v5586_v10 }
 0x351   : > { %v5048_v8 = vld [vmem:[#allocation3 + $0x20] sm:$0xff]   ;;  %v1240_v9 = vadd.f32 %v1239_v6, %v6019_v31  ;;  %v1291_v11 = vadd.f32 %v4761_v7, %v1063_v4 }
 0x352   : > { %v1241_v12 = vpop.f32.mrf.mxu0  ;;  %v1282_v13 = vpop.f32.mrf.mxu1  ;;  %4778 = vmatmul.mubr.msk.bf16.vlgmr.msra.gmra.mxu1 %vm1545_vm2, %v5048_v8 }
 0x353   : > { %v6078_v14 = vpack.c.bf16 %v1240_v9, %v1240_v9  ;;  %v6080_v15 = vpack.c.bf16 %v1291_v11, %v1291_v11  ;;  %v1242_v16 = vadd.f32 %v1241_v12, %v6023_v32  ;;  %v1283_v17 = vadd.f32 %v1282_v13, %v1063_v4  ;;  %4789 = vmatprep.mubr.msk.bf16.mxu1 %vm5587_vm0, %v5586_v10 }
 0x354   : > { %v1243_v18 = vpop.f32.mrf.mxu0  ;;  %v4762_v19 = vpop.f32.mrf.mxu1 }
 0x355   : > { %v5049_v20 = vld [vmem:[#allocation3 + $0x30] sm:$0xff]   ;;  %1320 = vst.msk [vmem:[#allocation3 + $0x8] sm:$0xf] %vm1317_vm1, %v6078_v14  ;;  %1356 = vst.msk [vmem:[#allocation5 + $0x8] sm:$0xf] %vm1317_vm1, %v6080_v15  ;;  %v6089_v21 = vpack.c.bf16 %v1242_v16, %v1242_v16  ;;  %v4597_v22 = vpack.c.bf16 %v1283_v17, %v1283_v17  ;;  %v1244_v23 = vadd.f32 %v1243_v18, %v6019_v31 }
 0x356   : > { %v1294_v24 = vadd.f32 %v4762_v19, %v1063_v4  ;;  %v1245_v25 = vpop.f32.mrf.mxu0  ;;  %v1285_v29 = vpop.f32.mrf.mxu1  ;;  %4784 = vmatmul.mubr.msk.bf16.vlgmr.msra.gmra.mxu0 %vm1545_vm2, %v5049_v20 }
 0x357   : > { %1338 = vst.msk [vmem:[#allocation4 + $0x8] sm:$0xf] %vm1317_vm1, %v6089_v21  ;;  %1354 = vst.msk [vmem:[#allocation5] sm:$0xf] %vm1317_vm1, %v4597_v22  ;;  %v6096_v33 = vpack.c.bf16 %v1244_v23, %v1244_v23  ;;  %v1246_v36 = vadd.f32 %v1245_v25, %v6023_v32  ;;  %v1286_v37 = vadd.f32 %v1285_v29, %v1063_v4  ;;  %4795 = vmatprep.mubr.msk.bf16.mxu0 %vm5587_vm0, %v5586_v10 }
 0x358   : > { %v6098_v34 = vpack.c.bf16 %v1294_v24, %v1294_v24 }
 0x359   : > { %1321 = vst.msk [vmem:[#allocation3 + $0xc] sm:$0xf] %vm1317_vm1, %v6096_v33  ;;  %v6107_v31 = vpack.c.bf16 %v1246_v36, %v1246_v36  ;;  %v4598_v38 = vpack.c.bf16 %v1286_v37, %v1286_v37 }
 0x35a   : > { %1357 = vst.msk [vmem:[#allocation5 + $0xc] sm:$0xf] %vm1317_vm1, %v6098_v34 }
 0x35b   : > { %1339 = vst.msk [vmem:[#allocation4 + $0xc] sm:$0xf] %vm1317_vm1, %v6107_v31  ;;  %1355 = vst.msk [vmem:[#allocation5 + $0x4] sm:$0xf] %vm1317_vm1, %v4598_v38 }
 0x362   : > { %v5050_v39 = vld [vmem:[#allocation5] sm:$0xff]  }
 0x363   : > { %4788 = vmatpush3.bf16.msra.mxu1 %v5050_v39 }
 0x364   : > { %4799 = vmatprep.subr.bf16.mxu1 %v5586_v10 }
 0x397   : > { %v1586_v32 = vpop.f32.mrf.mxu0 }
 0x398   : > { %v1765_v40 = vsel %vm1764_vm3, %v1586_v32, -inf }
 0x399   : > { %1766 = vmax.xlane.f32.xlu0 %v1765_v40  ;;  %v4767_v41 = vpop.f32.mrf.mxu0 }
 0x39b   : > { %v1589_v42 = vpop.f32.mrf.mxu0 }
 0x39c   : > { %v1768_v43 = vsel %vm1764_vm3, %v1589_v42, -inf }
 0x39d   : > { %1769 = vmax.xlane.f32.xlu1 %v1768_v43  ;;  %v4768_v44 = vpop.f32.mrf.mxu0 }
 0x40e   : > { %v1643_v45 = vpop.f32.mrf.mxu0 }
 0x40f   : > { %v1771_v46 = vsel %vm1764_vm3, %v1643_v45, -inf }
 0x410   : > { %1772 = vmax.xlane.f32.xlu0 %v1771_v46  ;;  %v4773_v47 = vpop.f32.mrf.mxu0 }
 0x412   : > { %v1646_v48 = vpop.f32.mrf.mxu0  ;;  %v1700_v49 = vpop.f32.mrf.mxu1 }
 0x413   : > { %v1774_v50 = vsel %vm1764_vm3, %v1646_v48, -inf  ;;  %v1777_v55 = vsel %vm1764_vm3, %v1700_v49, -inf }
 0x414   : > { %1775 = vmax.xlane.f32.xlu0 %v1774_v50  ;;  %v4774_v51 = vpop.f32.mrf.mxu0  ;;  %v4779_v52 = vpop.f32.mrf.mxu1 }
 0x416   : > { %v1703_v53 = vpop.f32.mrf.mxu1  ;;  %v1757_v54 = vpop.f32.mrf.mxu0 }
 0x417   : > { %v1780_v56 = vsel %vm1764_vm3, %v1703_v53, -inf  ;;  %v1783_v60 = vsel %vm1764_vm3, %v1757_v54, -inf }
 0x418   : > { %1778 = vmax.xlane.f32.xlu0 %v1777_v55  ;;  %1781 = vmax.xlane.f32.xlu1 %v1780_v56  ;;  %v4780_v57 = vpop.f32.mrf.mxu1  ;;  %v4785_v58 = vpop.f32.mrf.mxu0 }
 0x41a   : > { %v6119_v59 = vpop.f32.mrf.mxu0 }
 0x41b   : > { %v1786_v3 = vsel %vm1764_vm3, %v6119_v59, -inf }
 0x41c   : > { %1784 = vmax.xlane.f32.xlu0 %v1783_v60  ;;  %v4786_v61 = vpop.f32.mrf.mxu0 }
 0x422   : > { %v1767_v62 = vpop.xlane.xlu0 %1766 }
 0x423   : > { %v1789_v0 = vsub.f32 %v1586_v32, %v1767_v62 }
 0x425   : > { %v1797_v1 = vmul.f32 1.442695, %v1789_v0 }
 0x426   : > { %v1770_v5 = vpop.xlane.xlu1 %1769 }
 0x427   : > { %5164 = vpow2.f32 %v1797_v1  ;;  %v1790_v6 = vsub.f32 %v1589_v42, %v1770_v5 }
 0x429   : > { %1394 = vrot.lane.b32.xlu1 %v4598_v38, %s5589_s7  ;;  %v1799_v7 = vmul.f32 1.442695, %v1790_v6 }
 0x42b   : > { %5166 = vpow2.f32 %v1799_v7 }
 0x42d   : > { %1443 = vrot.lane.b32.xlu1 %v4597_v22, %s5588_s17 }
 0x431   : > { %1445 = vrot.lane.b32.xlu1 %v4598_v38, %s5588_s17 }
 0x432   : > { %1392 = vrot.lane.b32.xlu0 %v4597_v22, %s5589_s7 }
 0x434   : > { %v6138_v2 = vpop.eup %5164 }
 0x435   : > { %1496 = vrot.lane.b32.xlu1 %v4598_v38, %s5590_s26  ;;  %v1813_v4 = vsel %vm1764_vm3, %v6138_v2, 0.0 }
 0x436   : > { %1494 = vrot.lane.b32.xlu0 %v4597_v22, %s5590_s26 }
 0x438   : > { %v6146_v8 = vpop.eup %5166 }
 0x439   : > { %1381 = vrot.lane.b32.xlu1 %v6107_v31, %s5589_s7  ;;  %v1816_v9 = vsel %vm1764_vm3, %v6146_v8, 0.0 }
 0x43a   : > { %1379 = vrot.lane.b32.xlu0 %v6089_v21, %s5589_s7 }
 0x43d   : > { %1432 = vrot.lane.b32.xlu1 %v6107_v31, %s5588_s17 }
 0x43e   : > { %1430 = vrot.lane.b32.xlu0 %v6089_v21, %s5588_s17 }
 0x442   : > { %1362 = vrot.lane.b32.xlu0 %v6078_v14, %s5589_s7 }
 0x461   : > { %1787 = vmax.xlane.f32.xlu1 %v1786_v3  ;;  %1814 = vadd.xlane.f32.xlu0 %v1813_v4 }
 0x472   : > { %1364 = vrot.lane.b32.xlu1 %v6096_v33, %s5589_s7 }
 0x496   : > { %1817 = vadd.xlane.f32.xlu1 %v1816_v9 }
 0x499   : > { %v1773_v11 = vpop.xlane.xlu0 %1772 }
 0x49a   : > { %v1791_v12 = vsub.f32 %v1643_v45, %v1773_v11 }
 0x49c   : > { %v1801_v13 = vmul.f32 1.442695, %v1791_v12 }
 0x49d   : > { %v1776_v16 = vpop.xlane.xlu0 %1775 }
 0x49e   : > { %5168 = vpow2.f32 %v1801_v13  ;;  %v1792_v17 = vsub.f32 %v1646_v48, %v1776_v16 }
 0x4a0   : > { %v1803_v18 = vmul.f32 1.442695, %v1792_v17 }
 0x4a1   : > { %v1782_v19 = vpop.xlane.xlu1 %1781  ;;  %v1779_v20 = vpop.xlane.xlu0 %1778 }
 0x4a2   : > { %5170 = vpow2.f32 %v1803_v18  ;;  %v1794_v22 = vsub.f32 %v1703_v53, %v1782_v19  ;;  %v1793_v23 = vsub.f32 %v1700_v49, %v1779_v20 }
 0x4a4   : > { %v1807_v24 = vmul.f32 1.442695, %v1794_v22  ;;  %v1805_v25 = vmul.f32 1.442695, %v1793_v23 }
 0x4a5   : > { %v1395_v29 = vpop.permute.xlu1 %1394  ;;  %v1785_v36 = vpop.xlane.xlu0 %1784 }
 0x4a6   : > { %5172 = vpow2.f32 %v1807_v24  ;;  %1406 = vst.msk [vmem:[#allocation5 + $0x14] sm:$0xf] %vm1317_vm1, %v1395_v29  ;;  %v1795_v37 = vsub.f32 %v1757_v54, %v1785_v36 }
 0x4a7   : > { %5174 = vpow2.f32 %v1805_v25 }
 0x4a8   : > { %v1809_v38 = vmul.f32 1.442695, %v1795_v37 }
 0x4a9   : > { %v1444_v39 = vpop.permute.xlu1 %1443  ;;  %v1393_v32 = vpop.permute.xlu0 %1392 }
 0x4aa   : > { %5176 = vpow2.f32 %v1809_v38  ;;  %1456 = vst.msk [vmem:[#allocation5 + $0x20] sm:$0xf] %vm1317_vm1, %v1444_v39  ;;  %1405 = vst.msk [vmem:[#allocation5 + $0x10] sm:$0xf] %vm1317_vm1, %v1393_v32  ;;  %v5054_v38 = vld [vmem:[#allocation4 + $0x8] sm:$0xff]  }
 0x4ab   : > { %v6153_v40 = vpop.eup %5168 }
 0x4ac   : > { %v1819_v41 = vsel %vm1764_vm3, %v6153_v40, 0.0 }
 0x4ad   : > { %v1446_v42 = vpop.permute.xlu1 %1445  ;;  %1820 = vadd.xlane.f32.xlu0 %v1819_v41  ;;  %v1495_v43 = vpop.permute.xlu0 %1494 }
 0x4ae   : > { %1457 = vst.msk [vmem:[#allocation5 + $0x24] sm:$0xf] %vm1317_vm1, %v1446_v42  ;;  %1507 = vst.msk [vmem:[#allocation5 + $0x30] sm:$0xf] %vm1317_vm1, %v1495_v43  ;;  %v5055_v42 = vld [vmem:[#allocation3 + $0x8] sm:$0xff]  }
 0x4af   : > { %v6159_v44 = vpop.eup %5170 }
 0x4b0   : > { %v1822_v45 = vsel %vm1764_vm3, %v6159_v44, 0.0 }
 0x4b1   : > { %v1497_v46 = vpop.permute.xlu1 %1496  ;;  %1823 = vadd.xlane.f32.xlu1 %v1822_v45  ;;  %v1380_v47 = vpop.permute.xlu0 %1379  ;;  %v5051_v48 = vld [vmem:[#allocation5 + $0x10] sm:$0xff]   ;;  %v5058_v45 = vld [vmem:[#allocation5 + $0x8] sm:$0xff]  }
 0x4b2   : > { %1508 = vst.msk [vmem:[#allocation5 + $0x34] sm:$0xf] %vm1317_vm1, %v1497_v46  ;;  %1390 = vst.msk [vmem:[#allocation4 + $0x18] sm:$0xf] %vm1317_vm1, %v1380_v47  ;;  %4794 = vmatpush3.bf16.msra.mxu0 %v5051_v48 }
 0x4b3   : > { %v6165_v49 = vpop.eup %5172  ;;  %4805 = vmatprep.subr.bf16.mxu0 %v5586_v10 }
 0x4b4   : > { %v6167_v50 = vpop.eup %5174  ;;  %v1828_v51 = vsel %vm1764_vm3, %v6165_v49, 0.0 }
 0x4b5   : > { %v1382_v52 = vpop.permute.xlu1 %1381  ;;  %1829 = vadd.xlane.f32.xlu1 %v1828_v51  ;;  %v1825_v53 = vsel %vm1764_vm3, %v6167_v50, 0.0  ;;  %v1431_v54 = vpop.permute.xlu0 %1430  ;;  %v5052_v7 = vld [vmem:[#allocation5 + $0x20] sm:$0xff]  }
 0x4b6   : > { %1391 = vst.msk [vmem:[#allocation4 + $0x1c] sm:$0xf] %vm1317_vm1, %v1382_v52  ;;  %1826 = vadd.xlane.f32.xlu0 %v1825_v53  ;;  %1441 = vst.msk [vmem:[#allocation4 + $0x28] sm:$0xf] %vm1317_vm1, %v1431_v54 }
 0x4b7   : > { %v6176_v55 = vpop.eup %5176 }
 0x4b8   : > { %v1831_v56 = vsel %vm1764_vm3, %v6176_v55, 0.0 }
 0x4b9   : > { %v1433_v57 = vpop.permute.xlu1 %1432  ;;  %v1363_v58 = vpop.permute.xlu0 %1362  ;;  %v5053_v25 = vld [vmem:[#allocation5 + $0x30] sm:$0xff]  }
 0x4ba   : > { %1442 = vst.msk [vmem:[#allocation4 + $0x2c] sm:$0xf] %vm1317_vm1, %v1433_v57  ;;  %1832 = vadd.xlane.f32.xlu0 %v1831_v56  ;;  %1373 = vst.msk [vmem:[#allocation3 + $0x18] sm:$0xf] %vm1317_vm1, %v1363_v58 }
 0x4bd   : > { %v5059_v52 = vld [vmem:[#allocation4 + $0x18] sm:$0xff]  }
 0x4be   : > { %v2207_v54 = vsel %vm1545_vm2, %v5059_v52, 0 }
 0x4c1   : > { %v5056_v41 = vld [vmem:[#allocation4 + $0x28] sm:$0xff]  }
 0x4c2   : > { %v2264_v43 = vsel %vm1545_vm2, %v5056_v41, 0 }
 0x4c6   : > { %1483 = vrot.lane.b32.xlu1 %v6107_v31, %s5590_s26 }
 0x4ca   : > { %1415 = vrot.lane.b32.xlu1 %v6096_v33, %s5588_s17 }
 0x4d0   : > { %1481 = vrot.lane.b32.xlu0 %v6089_v21, %s5590_s26 }
 0x4d4   : > { %1413 = vrot.lane.b32.xlu0 %v6078_v14, %s5588_s17 }
 0x4d8   : > { %1464 = vrot.lane.b32.xlu0 %v6078_v14, %s5590_s26 }
 0x4ea   : > { %v1788_v60 = vpop.xlane.xlu1 %1787  ;;  %v1815_v21 = vpop.xlane.xlu0 %1814 }
 0x4eb   : > { %v1796_v61 = vsub.f32 %v6119_v59, %v1788_v60 }
 0x4ed   : > { %v1811_v62 = vmul.f32 1.442695, %v1796_v61 }
 0x4ee   : > { %v1365_v0 = vpop.permute.xlu1 %1364 }
 0x4ef   : > { %5178 = vpow2.f32 %v1811_v62  ;;  %1374 = vst.msk [vmem:[#allocation3 + $0x1c] sm:$0xf] %vm1317_vm1, %v1365_v0 }
 0x4f0   : > { %5180 = vrcp.f32 %v1815_v21 }
 0x4f6   : > { %v5060_v57 = vld [vmem:[#allocation3 + $0x18] sm:$0xff]  }
 0x4fc   : > { %v6194_v31 = vpop.eup %5178 }
 0x4fd   : > { %v1834_v1 = vsel %vm1764_vm3, %v6194_v31, 0.0  ;;  %v5181_v3 = vpop.eup %5180 }
 0x4fe   : > { %1835 = vadd.xlane.f32.xlu1 %v1834_v1  ;;  %v1845_v4 = vmul.f32 %v5181_v3, %v6138_v2 }
 0x50f   : > { %1466 = vrot.lane.b32.xlu1 %v6096_v33, %s5590_s26 }
 0x51f   : > { %v1818_v14 = vpop.xlane.xlu1 %1817 }
 0x520   : > { %5182 = vrcp.f32 %v1818_v14 }
 0x52d   : > { %v5183_v59 = vpop.eup %5182 }
 0x52e   : > { %v1846_v5 = vmul.f32 %v5183_v59, %v6146_v8 }
 0x530   : > { %v1853_v6 = vpack.c.bf16 %v1846_v5, %v1845_v4 }
 0x532   : > { %4790 = vmatmul.mubr.msk.bf16.vlgmr.msra.gmra.mxu1 %vm1764_vm3, %v1853_v6 }
 0x533   : > { %4800 = vmatpush3.bf16.msra.mxu1 %v5052_v7  ;;  %4801 = vmatprep.mubr.msk.bf16.mxu1 %vm5587_vm0, %v5586_v10 }
 0x534   : > { %4811 = vmatprep.subr.bf16.mxu1 %v5586_v10 }
 0x536   : > { %v1821_v33 = vpop.xlane.xlu0 %1820 }
 0x537   : > { %5184 = vrcp.f32 %v1821_v33 }
 0x53a   : > { %v1824_v9 = vpop.xlane.xlu1 %1823 }
 0x53b   : > { %5186 = vrcp.f32 %v1824_v9 }
 0x53e   : > { %v1830_v11 = vpop.xlane.xlu1 %1829 }
 0x53f   : > { %5188 = vrcp.f32 %v1830_v11  ;;  %v1827_v12 = vpop.xlane.xlu0 %1826 }
 0x540   : > { %5190 = vrcp.f32 %v1827_v12 }
 0x542   : > { %v1484_v2 = vpop.permute.xlu1 %1483 }
 0x543   : > { %1493 = vst.msk [vmem:[#allocation4 + $0x3c] sm:$0xf] %vm1317_vm1, %v1484_v2  ;;  %v1833_v8 = vpop.xlane.xlu0 %1832 }
 0x544   : > { %v5185_v13 = vpop.eup %5184  ;;  %5192 = vrcp.f32 %v1833_v8 }
 0x545   : > { %v1847_v19 = vmul.f32 %v5185_v13, %v6153_v40  ;;  %v2150_v40 = vsel %vm1545_vm2, %v5054_v38, 0 }
 0x546   : > { %v1416_v16 = vpop.permute.xlu1 %1415 }
 0x547   : > { %1425 = vst.msk [vmem:[#allocation3 + $0x2c] sm:$0xf] %vm1317_vm1, %v1416_v16  ;;  %v1482_v17 = vpop.permute.xlu0 %1481 }
 0x548   : > { %v5187_v18 = vpop.eup %5186  ;;  %1492 = vst.msk [vmem:[#allocation4 + $0x38] sm:$0xf] %vm1317_vm1, %v1482_v17 }
 0x549   : > { %v1848_v20 = vmul.f32 %v5187_v18, %v6159_v44 }
 0x54b   : > { %v1414_v22 = vpop.permute.xlu0 %1413  ;;  %v1854_v23 = vpack.c.bf16 %v1848_v20, %v1847_v19 }
 0x54c   : > { %v5189_v24 = vpop.eup %5188  ;;  %1424 = vst.msk [vmem:[#allocation3 + $0x28] sm:$0xf] %vm1317_vm1, %v1414_v22 }
 0x54d   : > { %v5191_v29 = vpop.eup %5190  ;;  %4796 = vmatmul.mubr.msk.bf16.vlgmr.msra.gmra.mxu0 %vm1764_vm3, %v1854_v23  ;;  %v1850_v36 = vmul.f32 %v5189_v24, %v6165_v49 }
 0x54e   : > { %4806 = vmatpush3.bf16.msra.mxu0 %v5053_v25  ;;  %v1849_v37 = vmul.f32 %v5191_v29, %v6167_v50  ;;  %4807 = vmatprep.mubr.msk.bf16.mxu0 %vm5587_vm0, %v5586_v10 }
 0x54f   : > { %v1465_v39 = vpop.permute.xlu0 %1464  ;;  %4817 = vmatprep.subr.bf16.mxu0 %v5586_v10  ;;  %v5061_v56 = vld [vmem:[#allocation4 + $0x38] sm:$0xff]  }
 0x550   : > { %1475 = vst.msk [vmem:[#allocation3 + $0x38] sm:$0xf] %vm1317_vm1, %v1465_v39  ;;  %v1855_v32 = vpack.c.bf16 %v1850_v36, %v1849_v37 }
 0x551   : > { %v5193_v48 = vpop.eup %5192 }
 0x552   : > { %4802 = vmatmul.mubr.msk.bf16.vlgmr.msra.gmra.mxu1 %vm1764_vm3, %v1855_v32  ;;  %v1851_v50 = vmul.f32 %v5193_v48, %v6176_v55  ;;  %v2321_v55 = vsel %vm1545_vm2, %v5061_v56, 0 }
 0x553   : > { %4812 = vmatpush3.bf16.xpose.msra.mxu1 %v2150_v40  ;;  %4813 = vmatprep.mubr.msk.bf16.mxu1 %vm5587_vm0, %v5586_v10  ;;  %v5057_v44 = vld [vmem:[#allocation3 + $0x28] sm:$0xff]  }
 0x554   : > { %4823 = vmatprep.subr.bf16.mxu1 %v5586_v10 }
 0x55a   : > { %4814 = vmatmul.mubr.msk.bf16.vlgmr.msra.gmra.mxu1 %vm1545_vm2, %v5055_v42 }
 0x55b   : > { %4824 = vmatpush3.bf16.xpose.msra.mxu1 %v2264_v43  ;;  %4825 = vmatprep.mubr.msk.bf16.mxu1 %vm5587_vm0, %v5586_v10 }
 0x55c   : > { %4835 = vmatprep.subr.bf16.mxu1 %v5586_v10 }
 0x562   : > { %4826 = vmatmul.mubr.msk.bf16.vlgmr.msra.gmra.mxu1 %vm1545_vm2, %v5057_v44 }
 0x563   : > { %4836 = vmatpush3.bf16.msra.mxu1 %v5058_v45  ;;  %4837 = vmatprep.mubr.msk.bf16.mxu1 %vm5587_vm0, %v5586_v10 }
 0x564   : > { %4847 = vmatprep.subr.bf16.mxu1 %v5586_v10 }
 0x587   : > { %v1836_v46 = vpop.xlane.xlu1 %1835 }
 0x588   : > { %5194 = vrcp.f32 %v1836_v46 }
 0x58b   : > { %v1467_v47 = vpop.permute.xlu1 %1466 }
 0x58c   : > { %1476 = vst.msk [vmem:[#allocation3 + $0x3c] sm:$0xf] %vm1317_vm1, %v1467_v47 }
 0x593   : > { %v5062_v58 = vld [vmem:[#allocation3 + $0x38] sm:$0xff]  }
 0x595   : > { %v5195_v49 = vpop.eup %5194 }
 0x596   : > { %v1852_v51 = vmul.f32 %v5195_v49, %v6194_v31 }
 0x598   : > { %v1856_v53 = vpack.c.bf16 %v1852_v51, %v1851_v50 }
 0x59a   : > { %4808 = vmatmul.mubr.msk.bf16.vlgmr.msra.gmra.mxu0 %vm1764_vm3, %v1856_v53 }
 0x59b   : > { %4818 = vmatpush3.bf16.xpose.msra.mxu0 %v2207_v54  ;;  %4819 = vmatprep.mubr.msk.bf16.mxu0 %vm5587_vm0, %v5586_v10 }
 0x59c   : > { %4829 = vmatprep.subr.bf16.mxu0 %v5586_v10 }
 0x5a2   : > { %4820 = vmatmul.mubr.msk.bf16.vlgmr.msra.gmra.mxu0 %vm1545_vm2, %v5060_v57 }
 0x5a3   : > { %4830 = vmatpush3.bf16.xpose.msra.mxu0 %v2321_v55  ;;  %4831 = vmatprep.mubr.msk.bf16.mxu0 %vm5587_vm0, %v5586_v10 }
 0x5a4   : > { %4841 = vmatprep.subr.bf16.mxu0 %v5586_v10 }
 0x5aa   : > { %4832 = vmatmul.mubr.msk.bf16.vlgmr.msra.gmra.mxu0 %vm1545_vm2, %v5062_v58 }
 0x5ab   : > { %4843 = vmatprep.mubr.msk.bf16.mxu0 %vm5587_vm0, %v5586_v10 }
 0x5f2   : > { %v1900_v60 = vpop.f32.mrf.mxu1 }
 0x5f3   : > { %v4601_v61 = vpack.c.bf16 %v1900_v60, %v1900_v60 }
 0x5f4   : > { %v4791_v62 = vpop.f32.mrf.mxu1 }
 0x5f5   : > { %2065 = vst.msk [vmem:[#allocation6] sm:$0xf] %vm1317_vm1, %v4601_v61 }
 0x5f6   : > { %v1903_v0 = vpop.f32.mrf.mxu1 }
 0x5f7   : > { %v4602_v31 = vpack.c.bf16 %v1903_v0, %v1903_v0 }
 0x5f8   : > { %v4792_v1 = vpop.f32.mrf.mxu1 }
 0x5f9   : > { %2066 = vst.msk [vmem:[#allocation6 + $0x4] sm:$0xf] %vm1317_vm1, %v4602_v31 }
 0x60d   : > { %v6251_v21 = vpop.f32.mrf.mxu0 }
 0x60f   : > { %v4797_v14 = vpop.f32.mrf.mxu0 }
 0x611   : > { %v6253_v3 = vpop.f32.mrf.mxu0 }
 0x612   : > { %v6255_v59 = vpop.f32.mrf.mxu1 }
 0x613   : > { %v4798_v4 = vpop.f32.mrf.mxu0 }
 0x614   : > { %v4803_v5 = vpop.f32.mrf.mxu1 }
 0x616   : > { %v6257_v6 = vpop.f32.mrf.mxu1 }
 0x618   : > { %v4804_v7 = vpop.f32.mrf.mxu1 }
 0x61a   : > { %v2186_v33 = vpop.f32.mrf.mxu1 }
 0x61b   : > { %v2364_v9 = vsel %vm1764_vm3, %v2186_v33, -inf }
 0x61c   : > { %2365 = vmax.xlane.f32.xlu0 %v2364_v9  ;;  %v4815_v11 = vpop.f32.mrf.mxu1 }
 0x61e   : > { %v2189_v12 = vpop.f32.mrf.mxu1 }
 0x61f   : > { %v2367_v2 = vsel %vm1764_vm3, %v2189_v12, -inf }
 0x620   : > { %2368 = vmax.xlane.f32.xlu1 %v2367_v2  ;;  %v4816_v8 = vpop.f32.mrf.mxu1 }
 0x622   : > { %v2300_v13 = vpop.f32.mrf.mxu1 }
 0x623   : > { %v2376_v40 = vsel %vm1764_vm3, %v2300_v13, -inf }
 0x624   : > { %v4827_v16 = vpop.f32.mrf.mxu1 }
 0x626   : > { %v2303_v17 = vpop.f32.mrf.mxu1 }
 0x627   : > { %v2379_v18 = vsel %vm1764_vm3, %v2303_v17, -inf }
 0x628   : > { %2380 = vmax.xlane.f32.xlu1 %v2379_v18  ;;  %v4828_v19 = vpop.f32.mrf.mxu1 }
 0x65a   : > { %v6262_v20 = vpop.f32.mrf.mxu0 }
 0x65c   : > { %v4809_v22 = vpop.f32.mrf.mxu0 }
 0x65e   : > { %v6264_v23 = vpop.f32.mrf.mxu0 }
 0x660   : > { %v4810_v24 = vpop.f32.mrf.mxu0 }
 0x662   : > { %v2243_v25 = vpop.f32.mrf.mxu0 }
 0x663   : > { %v2370_v29 = vsel %vm1764_vm3, %v2243_v25, -inf }
 0x664   : > { %2371 = vmax.xlane.f32.xlu0 %v2370_v29  ;;  %v4821_v36 = vpop.f32.mrf.mxu0 }
 0x666   : > { %v2246_v37 = vpop.f32.mrf.mxu0 }
 0x667   : > { %v2373_v38 = vsel %vm1764_vm3, %v2246_v37, -inf }
 0x668   : > { %2374 = vmax.xlane.f32.xlu0 %v2373_v38  ;;  %v4822_v39 = vpop.f32.mrf.mxu0 }
 0x66a   : > { %v2357_v32 = vpop.f32.mrf.mxu0 }
 0x66b   : > { %v2382_v43 = vsel %vm1764_vm3, %v2357_v32, -inf }
 0x66c   : > { %2377 = vmax.xlane.f32.xlu0 %v2376_v40  ;;  %v4833_v41 = vpop.f32.mrf.mxu0 }
 0x66e   : > { %v2360_v42 = vpop.f32.mrf.mxu0 }
 0x66f   : > { %v2385_v44 = vsel %vm1764_vm3, %v2360_v42, -inf }
 0x670   : > { %2383 = vmax.xlane.f32.xlu0 %v2382_v43  ;;  %2386 = vmax.xlane.f32.xlu1 %v2385_v44  ;;  %v4834_v45 = vpop.f32.mrf.mxu0  ;;  %v4606_v43 = vpack.c.bf16 %v6257_v6, %v6257_v6  ;;  %v4603_v44 = vpack.c.bf16 %v6251_v21, %v6251_v21 }
 0x671   : > { %v4608_v45 = vpack.c.bf16 %v6264_v23, %v6264_v23 }
 0x681   : > { %1398 = vrot.lane.b32.xlu1 %v6098_v34, %s5589_s7 }
 0x685   : > { %1447 = vrot.lane.b32.xlu1 %v6080_v15, %s5588_s17 }
 0x686   : > { %1396 = vrot.lane.b32.xlu0 %v6080_v15, %s5589_s7 }
 0x689   : > { %1449 = vrot.lane.b32.xlu1 %v6098_v34, %s5588_s17 }
 0x6a5   : > { %v2366_v46 = vpop.xlane.xlu0 %2365 }
 0x6a6   : > { %v2388_v47 = vsub.f32 %v2186_v33, %v2366_v46 }
 0x6a8   : > { %v2396_v48 = vmul.f32 1.442695, %v2388_v47 }
 0x6a9   : > { %v2369_v49 = vpop.xlane.xlu1 %2368 }
 0x6aa   : > { %5196 = vpow2.f32 %v2396_v48  ;;  %v2389_v50 = vsub.f32 %v2189_v12, %v2369_v49 }
 0x6ac   : > { %v2398_v51 = vmul.f32 1.442695, %v2389_v50 }
 0x6ae   : > { %5198 = vpow2.f32 %v2398_v51 }
 0x6b1   : > { %v2381_v57 = vpop.xlane.xlu1 %2380 }
 0x6b2   : > { %v2393_v60 = vsub.f32 %v2303_v17, %v2381_v57 }
 0x6b4   : > { %v2406_v31 = vmul.f32 1.442695, %v2393_v60 }
 0x6b7   : > { %v6279_v52 = vpop.eup %5196 }
 0x6b8   : > { %v2412_v53 = vsel %vm1764_vm3, %v6279_v52, 0.0 }
 0x6b9   : > { %2413 = vadd.xlane.f32.xlu0 %v2412_v53 }
 0x6bb   : > { %v6283_v54 = vpop.eup %5198 }
 0x6bc   : > { %v2415_v56 = vsel %vm1764_vm3, %v6283_v54, 0.0 }
 0x6bd   : > { %2416 = vadd.xlane.f32.xlu1 %v2415_v56 }
 0x6ed   : > { %v2372_v55 = vpop.xlane.xlu0 %2371 }
 0x6ee   : > { %v2390_v58 = vsub.f32 %v2243_v25, %v2372_v55 }
 0x6f0   : > { %v2400_v61 = vmul.f32 1.442695, %v2390_v58 }
 0x6f1   : > { %v2375_v62 = vpop.xlane.xlu0 %2374 }
 0x6f2   : > { %5200 = vpow2.f32 %v2400_v61  ;;  %v2391_v0 = vsub.f32 %v2246_v37, %v2375_v62 }
 0x6f4   : > { %v2402_v1 = vmul.f32 1.442695, %v2391_v0 }
 0x6f5   : > { %v2378_v14 = vpop.xlane.xlu0 %2377 }
 0x6f6   : > { %5202 = vpow2.f32 %v2402_v1  ;;  %v2392_v4 = vsub.f32 %v2300_v13, %v2378_v14 }
 0x6f7   : > { %5204 = vpow2.f32 %v2406_v31 }
 0x6f8   : > { %v2404_v5 = vmul.f32 1.442695, %v2392_v4 }
 0x6f9   : > { %v2387_v7 = vpop.xlane.xlu1 %2386  ;;  %v2384_v33 = vpop.xlane.xlu0 %2383 }
 0x6fa   : > { %5206 = vpow2.f32 %v2404_v5  ;;  %v2395_v9 = vsub.f32 %v2360_v42, %v2387_v7  ;;  %v2394_v11 = vsub.f32 %v2357_v32, %v2384_v33  ;;  %v4604_v42 = vpack.c.bf16 %v6253_v3, %v6253_v3 }
 0x6fc   : > { %v2410_v12 = vmul.f32 1.442695, %v2395_v9  ;;  %v2408_v2 = vmul.f32 1.442695, %v2394_v11 }
 0x6fd   : > { %v1399_v8 = vpop.permute.xlu1 %1398  ;;  %v1397_v16 = vpop.permute.xlu0 %1396 }
 0x6fe   : > { %5208 = vpow2.f32 %v2410_v12  ;;  %1408 = vst.msk [vmem:[#allocation5 + $0x1c] sm:$0xf] %vm1317_vm1, %v1399_v8  ;;  %1407 = vst.msk [vmem:[#allocation5 + $0x18] sm:$0xf] %vm1317_vm1, %v1397_v16 }
 0x6ff   : > { %v6289_v17 = vpop.eup %5200  ;;  %5210 = vpow2.f32 %v2408_v2 }
 0x700   : > { %v2418_v13 = vsel %vm1764_vm3, %v6289_v17, 0.0 }
 0x701   : > { %v1448_v18 = vpop.permute.xlu1 %1447  ;;  %2419 = vadd.xlane.f32.xlu0 %v2418_v13 }
 0x702   : > { %1458 = vst.msk [vmem:[#allocation5 + $0x28] sm:$0xf] %vm1317_vm1, %v1448_v18  ;;  %v5067_v18 = vld [vmem:[%s5885_s18 + $0x38] sm:$0xff]  }
 0x703   : > { %v6294_v19 = vpop.eup %5202 }
 0x704   : > { %v2421_v22 = vsel %vm1764_vm3, %v6294_v19, 0.0  ;;  %v6298_v24 = vpop.eup %5204 }
 0x705   : > { %v1450_v25 = vpop.permute.xlu1 %1449  ;;  %2422 = vadd.xlane.f32.xlu1 %v2421_v22  ;;  %v5063_v29 = vld [vmem:[#allocation5 + $0x18] sm:$0xff]   ;;  %v2427_v37 = vsel %vm1764_vm3, %v6298_v24, 0.0 }
 0x706   : > { %1459 = vst.msk [vmem:[#allocation5 + $0x2c] sm:$0xf] %vm1317_vm1, %v1450_v25  ;;  %4842 = vmatpush3.bf16.msra.mxu0 %v5063_v29  ;;  %v5069_v22 = vld [vmem:[%s5885_s18 + $0x28] sm:$0xff]  }
 0x707   : > { %v6301_v36 = vpop.eup %5206  ;;  %4853 = vmatprep.subr.bf16.mxu0 %v5586_v10 }
 0x708   : > { %v2424_v38 = vsel %vm1764_vm3, %v6301_v36, 0.0 }
 0x709   : > { %2428 = vadd.xlane.f32.xlu1 %v2427_v37  ;;  %2425 = vadd.xlane.f32.xlu0 %v2424_v38 }
 0x70b   : > { %v6308_v39 = vpop.eup %5208 }
 0x70c   : > { %v6310_v32 = vpop.eup %5210  ;;  %v2433_v40 = vsel %vm1764_vm3, %v6308_v39, 0.0 }
 0x70d   : > { %2434 = vadd.xlane.f32.xlu1 %v2433_v40  ;;  %v2430_v41 = vsel %vm1764_vm3, %v6310_v32, 0.0  ;;  %v5064_v48 = vld [vmem:[#allocation5 + $0x28] sm:$0xff]  }
 0x70e   : > { %2431 = vadd.xlane.f32.xlu0 %v2430_v41  ;;  %v5072_v40 = vld [vmem:[%s5885_s18 + $0x10] sm:$0xff]  }
 0x71e   : > { %1500 = vrot.lane.b32.xlu1 %v6098_v34, %s5590_s26  ;;  %v4605_v34 = vpack.c.bf16 %v6255_v59, %v6255_v59 }
 0x722   : > { %2075 = vrot.lane.b32.xlu1 %v4604_v42, %s5590_s26 }
 0x724   : > { %1498 = vrot.lane.b32.xlu0 %v6080_v15, %s5590_s26  ;;  %v4607_v15 = vpack.c.bf16 %v6262_v20, %v6262_v20 }
 0x726   : > { %2090 = vrot.lane.b32.xlu1 %v4606_v43, %s5588_s17 }
 0x728   : > { %2073 = vrot.lane.b32.xlu0 %v4603_v44, %s5590_s26  ;;  %v5073_v44 = vld [vmem:[%s5885_s18 + $0x8] sm:$0xff]  }
 0x72a   : > { %2105 = vrot.lane.b32.xlu1 %v4608_v45, %s5589_s7  ;;  %v5074_v45 = vld [vmem:[%s5885_s18] sm:$0xff]  }
 0x72c   : > { %2088 = vrot.lane.b32.xlu0 %v4605_v34, %s5588_s17 }
 0x730   : > { %2103 = vrot.lane.b32.xlu0 %v4607_v15, %s5589_s7 }
 0x742   : > { %v2414_v21 = vpop.xlane.xlu0 %2413 }
 0x743   : > { %5212 = vrcp.f32 %v2414_v21 }
 0x746   : > { %v2417_v3 = vpop.xlane.xlu1 %2416 }
 0x747   : > { %5214 = vrcp.f32 %v2417_v3 }
 0x750   : > { %v5213_v6 = vpop.eup %5212 }
 0x751   : > { %v2444_v46 = vmul.f32 %v5213_v6, %v6279_v52 }
 0x754   : > { %v5215_v23 = vpop.eup %5214 }
 0x755   : > { %v2445_v47 = vmul.f32 %v5215_v23, %v6283_v54 }
 0x757   : > { %v2452_v59 = vpack.c.bf16 %v2445_v47, %v2444_v46 }
 0x759   : > { %4838 = vmatmul.mubr.msk.bf16.vlgmr.msra.gmra.mxu1 %vm1764_vm3, %v2452_v59 }
 0x75a   : > { %4848 = vmatpush3.bf16.msra.mxu1 %v5064_v48  ;;  %4849 = vmatprep.mubr.msk.bf16.mxu1 %vm5587_vm0, %v5586_v10 }
 0x75b   : > { %4859 = vmatprep.subr.bf16.mxu1 %v5067_v18 }
 0x78a   : > { %v2420_v20 = vpop.xlane.xlu0 %2419 }
 0x78b   : > { %5216 = vrcp.f32 %v2420_v20 }
 0x78e   : > { %v2423_v49 = vpop.xlane.xlu1 %2422 }
 0x78f   : > { %5218 = vrcp.f32 %v2423_v49 }
 0x792   : > { %v2429_v50 = vpop.xlane.xlu1 %2428  ;;  %v2426_v51 = vpop.xlane.xlu0 %2425 }
 0x793   : > { %5220 = vrcp.f32 %v2429_v50 }
 0x794   : > { %5222 = vrcp.f32 %v2426_v51 }
 0x796   : > { %v2435_v53 = vpop.xlane.xlu1 %2434 }
 0x797   : > { %5224 = vrcp.f32 %v2435_v53  ;;  %v2432_v52 = vpop.xlane.xlu0 %2431 }
 0x798   : > { %5226 = vrcp.f32 %v2432_v52  ;;  %v5217_v54 = vpop.eup %5216 }
 0x799   : > { %v2446_v58 = vmul.f32 %v5217_v54, %v6289_v17 }
 0x79a   : > { %v1501_v56 = vpop.permute.xlu1 %1500 }
 0x79b   : > { %1510 = vst.msk [vmem:[#allocation5 + $0x3c] sm:$0xf] %vm1317_vm1, %v1501_v56  ;;  %v1499_v57 = vpop.permute.xlu0 %1498 }
 0x79c   : > { %v5219_v55 = vpop.eup %5218  ;;  %1509 = vst.msk [vmem:[#allocation5 + $0x38] sm:$0xf] %vm1317_vm1, %v1499_v57 }
 0x79d   : > { %v2447_v60 = vmul.f32 %v5219_v55, %v6294_v19  ;;  %v5068_v19 = vld [vmem:[%s5885_s18 + $0x30] sm:$0xff]  }
 0x79e   : > { %v2076_v61 = vpop.permute.xlu1 %2075 }
 0x79f   : > { %2081 = vst.msk [vmem:[#allocation6 + $0x4] sm:$0xf] %vm2079_vm4, %v2076_v61  ;;  %v2074_v62 = vpop.permute.xlu0 %2073  ;;  %v2453_v0 = vpack.c.bf16 %v2447_v60, %v2446_v58 }
 0x7a0   : > { %v5221_v31 = vpop.eup %5220  ;;  %2080 = vst.msk [vmem:[#allocation6] sm:$0xf] %vm2079_vm4, %v2074_v62 }
 0x7a1   : > { %v5223_v1 = vpop.eup %5222  ;;  %4844 = vmatmul.mubr.msk.bf16.vlgmr.msra.gmra.mxu0 %vm1764_vm3, %v2453_v0  ;;  %v2449_v14 = vmul.f32 %v5221_v31, %v6298_v24  ;;  %v5268_v0 = vld [vmem:[#allocation2 + $0x10] sm:$0xff] }
 0x7a2   : > { %v2091_v4 = vpop.permute.xlu1 %2090  ;;  %v2448_v5 = vmul.f32 %v5223_v1, %v6301_v36  ;;  %4855 = vmatprep.mubr.msk.bf16.mxu0 %vm5587_vm0, %v5586_v10 }
 0x7a3   : > { %2096 = vst.msk [vmem:[#allocation6 + $0x4] sm:$0xf] %vm2094_vm5, %v2091_v4  ;;  %v2089_v7 = vpop.permute.xlu0 %2088  ;;  %v5065_v33 = vld [vmem:[#allocation5 + $0x38] sm:$0xff]  }
 0x7a4   : > { %v5225_v9 = vpop.eup %5224  ;;  %2095 = vst.msk [vmem:[#allocation6] sm:$0xf] %vm2094_vm5, %v2089_v7  ;;  %v2454_v11 = vpack.c.bf16 %v2449_v14, %v2448_v5  ;;  %4854 = vmatpush3.bf16.msra.mxu0 %v5065_v33  ;;  %v5269_v4 = vld [vmem:[#allocation2 + $0x18] sm:$0xff] }
 0x7a5   : > { %v5227_v12 = vpop.eup %5226  ;;  %v2451_v2 = vmul.f32 %v5225_v9, %v6308_v39  ;;  %v5070_v39 = vld [vmem:[%s5885_s18 + $0x20] sm:$0xff]   ;;  %v5270_v9 = vld [vmem:[#allocation2] sm:$0xff] }
 0x7a6   : > { %4850 = vmatmul.mubr.msk.bf16.vlgmr.msra.gmra.mxu1 %vm1764_vm3, %v2454_v11  ;;  %v2106_v8 = vpop.permute.xlu1 %2105  ;;  %v2450_v10 = vmul.f32 %v5227_v12, %v6310_v32  ;;  %v5071_v32 = vld [vmem:[%s5885_s18 + $0x18] sm:$0xff]   ;;  %s6713_s18 = scalar_lea.vmem [#allocation12], %s5865_s8 }
 0x7a7   : > { %2111 = vst.msk [vmem:[#allocation6 + $0x4] sm:$0xf] %vm2109_vm6, %v2106_v8  ;;  %v2104_v16 = vpop.permute.xlu0 %2103  ;;  %4860 = vmatpush3.bf16.msra.mxu1 %v5067_v18  ;;  %v4486_v1 = vld [vmem:[%s6713_s18] ss:$0 sm:$0xff]  ;;  %v5079_v18 = vld [vmem:[%s5928_s6 + $0xe8] ss:$16 sps:$4 sm:$0xff]  }
 0x7a8   : > { %2110 = vst.msk [vmem:[#allocation6] sm:$0xf] %vm2109_vm6, %v2104_v16  ;;  %v2455_v17 = vpack.c.bf16 %v2451_v2, %v2450_v10  ;;  %4861 = vmatprep.subr.bf16.mxu1 %v5068_v19  ;;  %v5271_v2 = vld [vmem:[#allocation2 + $0x8] sm:$0xff] }
 0x7aa   : > { %4856 = vmatmul.mubr.msk.bf16.vlgmr.msra.gmra.mxu0 %vm1764_vm3, %v2455_v17  ;;  %v5076_v17 = vld [vmem:[%s5928_s6 + $0xe0] ss:$16 sps:$4 sm:$0xff]  }
 0x7ab   : > { %3166 = vmatprep.mubr.bf16.mxu0 %v5585_v35  ;;  %4862 = vmatpush3.bf16.msra.mxu1 %v5068_v19  ;;  %v5081_v19 = vld [vmem:[%s5928_s6 + $0xec] ss:$16 sps:$4 sm:$0xff]  }
 0x7ac   : > { %4863 = vmatprep.subr.bf16.mxu1 %v5069_v22 }
 0x7af   : > { %v5066_v13 = vld [vmem:[#allocation6] sm:$0xff]   ;;  %4864 = vmatpush3.bf16.msra.mxu1 %v5069_v22 }
 0x7b0   : > { %4875 = vmatprep.mubr.bf16.mxu1 %v5066_v13  ;;  %4865 = vmatprep.subr.bf16.mxu1 %v5070_v39  ;;  %v5078_v13 = vld [vmem:[%s5928_s6 + $0xe4] ss:$16 sps:$4 sm:$0xff]  }
 0x7b1   : > { %3134 = vmatprep.subr.bf16.mxu0 %v5078_v13 }
 0x7b2   : > { %3135 = vmatpush1.bf16.msra.mxu0 %v5076_v17 }
 0x7b3   : > { %4866 = vmatpush3.bf16.msra.mxu1 %v5070_v39 }
 0x7b4   : > { %4867 = vmatprep.subr.bf16.mxu1 %v5071_v32 }
 0x7b7   : > { %4868 = vmatpush3.bf16.msra.mxu1 %v5071_v32 }
 0x7b8   : > { %4869 = vmatprep.subr.bf16.mxu1 %v5072_v40 }
 0x7bb   : > { %4870 = vmatpush3.bf16.msra.mxu1 %v5072_v40 }
 0x7bc   : > { %4871 = vmatprep.subr.bf16.mxu1 %v5073_v44 }
 0x7bf   : > { %4872 = vmatpush3.bf16.msra.mxu1 %v5073_v44 }
 0x7c0   : > { %4873 = vmatprep.subr.bf16.mxu1 %v5074_v45 }
 0x7c3   : > { %4874 = vmatpush3.bf16.msra.mxu1 %v5074_v45 }
 0x7c4   : > { %3187 = vmatprep.subr.bf16.mxu1 %v5081_v19 }
 0x819   : > { %v2499_v24 = vpop.f32.mrf.mxu1 }
 0x81a   : > { %v4609_v25 = vpack.c.bf16 %v2499_v24, %v2499_v24 }
 0x81b   : > { %v4839_v29 = vpop.f32.mrf.mxu1 }
 0x81c   : > { %2664 = vst.msk [vmem:[#allocation6 + $0x8] sm:$0xf] %vm1317_vm1, %v4609_v25 }
 0x81d   : > { %v2502_v36 = vpop.f32.mrf.mxu1 }
 0x81e   : > { %v4610_v37 = vpack.c.bf16 %v2502_v36, %v2502_v36 }
 0x81f   : > { %v4840_v38 = vpop.f32.mrf.mxu1 }
 0x820   : > { %2665 = vst.msk [vmem:[#allocation6 + $0xc] sm:$0xf] %vm1317_vm1, %v4610_v37 }
 0x861   : > { %v2549_v41 = vpop.f32.mrf.mxu0 }
 0x862   : > { %v4611_v42 = vpack.c.bf16 %v2549_v41, %v2549_v41 }
 0x863   : > { %v4845_v43 = vpop.f32.mrf.mxu0 }
 0x864   : > { %2672 = vrot.lane.b32.xlu0 %v4611_v42, %s5590_s26 }
 0x865   : > { %v2552_v34 = vpop.f32.mrf.mxu0 }
 0x866   : > { %v4612_v15 = vpack.c.bf16 %v2552_v34, %v2552_v34  ;;  %v2599_v21 = vpop.f32.mrf.mxu1 }
 0x867   : > { %v4613_v3 = vpack.c.bf16 %v2599_v21, %v2599_v21  ;;  %v4846_v6 = vpop.f32.mrf.mxu0  ;;  %v5087_v21 = vld [vmem:[%s5928_s6 + $0xcc] ss:$16 sps:$4 sm:$0xff]  }
 0x868   : > { %v4851_v23 = vpop.f32.mrf.mxu1  ;;  %2674 = vrot.lane.b32.xlu1 %v4612_v15, %s5590_s26  ;;  %v5084_v15 = vld [vmem:[%s5928_s6 + $0xc4] ss:$16 sps:$4 sm:$0xff]   ;;  %v5085_v6 = vld [vmem:[%s5928_s6 + $0xc8] ss:$16 sps:$4 sm:$0xff]  }
 0x869   : > { %2686 = vrot.lane.b32.xlu0 %v4613_v3, %s5588_s17  ;;  %v5082_v3 = vld [vmem:[%s5928_s6 + $0xc0] ss:$16 sps:$4 sm:$0xff]   ;;  %3136 = vmatprep.subr.bf16.mxu0 %v5084_v15  ;;  %v5090_v23 = vld [vmem:[%s5928_s6 + $0xa4] ss:$16 sps:$4 sm:$0xff]  }
 0x86a   : > { %v2602_v46 = vpop.f32.mrf.mxu1  ;;  %v2649_v47 = vpop.f32.mrf.mxu0  ;;  %3137 = vmatpush1.bf16.msra.mxu0 %v5082_v3 }
 0x86b   : > { %v4614_v59 = vpack.c.bf16 %v2602_v46, %v2602_v46  ;;  %v4615_v48 = vpack.c.bf16 %v2649_v47, %v2649_v47  ;;  %v5093_v46 = vld [vmem:[%s5928_s6 + $0xac] ss:$16 sps:$4 sm:$0xff]   ;;  %v5088_v47 = vld [vmem:[%s5928_s6 + $0xa0] ss:$16 sps:$4 sm:$0xff]   ;;  %3138 = vmatprep.subr.bf16.mxu0 %v5090_v23 }
 0x86c   : > { %v4852_v20 = vpop.f32.mrf.mxu1  ;;  %v4857_v49 = vpop.f32.mrf.mxu0 }
 0x86d   : > { %2688 = vrot.lane.b32.xlu1 %v4614_v59, %s5588_s17  ;;  %2700 = vrot.lane.b32.xlu0 %v4615_v48, %s5589_s7  ;;  %v5091_v59 = vld [vmem:[%s5928_s6 + $0xa8] ss:$16 sps:$4 sm:$0xff]   ;;  %v5096_v48 = vld [vmem:[%s5928_s6 + $0x84] ss:$16 sps:$4 sm:$0xff]  }
 0x86e   : > { %v2652_v50 = vpop.f32.mrf.mxu0  ;;  %3139 = vmatpush1.bf16.msra.mxu0 %v5088_v47  ;;  %v5099_v20 = vld [vmem:[%s5928_s6 + $0x8c] ss:$16 sps:$4 sm:$0xff]   ;;  %v5094_v49 = vld [vmem:[%s5928_s6 + $0x80] ss:$16 sps:$4 sm:$0xff]  }
 0x86f   : > { %v4616_v51 = vpack.c.bf16 %v2652_v50, %v2652_v50  ;;  %v5097_v50 = vld [vmem:[%s5928_s6 + $0x88] ss:$16 sps:$4 sm:$0xff]   ;;  %3140 = vmatprep.subr.bf16.mxu0 %v5096_v48 }
 0x870   : > { %v4858_v53 = vpop.f32.mrf.mxu0  ;;  %v5126_v48 = vld [vmem:[%s5933_s13 + $0x38] sm:$0xff]  }
 0x871   : > { %2702 = vrot.lane.b32.xlu1 %v4616_v51, %s5589_s7  ;;  %v5100_v51 = vld [vmem:[%s5928_s6 + $0x60] ss:$16 sps:$4 sm:$0xff]   ;;  %v5102_v53 = vld [vmem:[%s5928_s6 + $0x64] ss:$16 sps:$4 sm:$0xff]  }
 0x872   : > { %3141 = vmatpush1.bf16.msra.mxu0 %v5094_v49  ;;  %v5129_v49 = vld [vmem:[%s5933_s13 + $0xf0] sm:$0xff]  }
 0x873   : > { %3142 = vmatprep.subr.bf16.mxu0 %v5102_v53  ;;  %v5132_v53 = vld [vmem:[%s5933_s13 + $0x68] sm:$0xff]  }
 0x876   : > { %3143 = vmatpush1.bf16.msra.mxu0 %v5100_v51  ;;  %v5131_v51 = vld [vmem:[%s5933_s13 + $0xb0] sm:$0xff]  }
 0x8d6   : > { %v2673_v52 = vpop.permute.xlu0 %2672 }
 0x8d7   : > { %2678 = vst.msk [vmem:[#allocation6 + $0x8] sm:$0xf] %vm2079_vm4, %v2673_v52  ;;  %v5103_v52 = vld [vmem:[%s5928_s6 + $0x68] ss:$16 sps:$4 sm:$0xff]  }
 0x8da   : > { %v2675_v54 = vpop.permute.xlu1 %2674 }
 0x8db   : > { %2679 = vst.msk [vmem:[#allocation6 + $0xc] sm:$0xf] %vm2079_vm4, %v2675_v54  ;;  %v2687_v56 = vpop.permute.xlu0 %2686  ;;  %v5105_v54 = vld [vmem:[%s5928_s6 + $0x6c] ss:$16 sps:$4 sm:$0xff]  }
 0x8dc   : > { %2692 = vst.msk [vmem:[#allocation6 + $0x8] sm:$0xf] %vm2094_vm5, %v2687_v56  ;;  %v5108_v56 = vld [vmem:[%s5928_s6 + $0x44] ss:$16 sps:$4 sm:$0xff]  }
 0x8dd   : > { %3144 = vmatprep.subr.bf16.mxu0 %v5108_v56  ;;  %v5135_v56 = vld [vmem:[%s5933_s13 + $0xa8] sm:$0xff]  }
 0x8df   : > { %v2689_v57 = vpop.permute.xlu1 %2688  ;;  %v2701_v55 = vpop.permute.xlu0 %2700 }
 0x8e0   : > { %2693 = vst.msk [vmem:[#allocation6 + $0xc] sm:$0xf] %vm2094_vm5, %v2689_v57  ;;  %v5111_v57 = vld [vmem:[%s5928_s6 + $0x4c] ss:$16 sps:$4 sm:$0xff]  }
 0x8e1   : > { %2706 = vst.msk [vmem:[#allocation6 + $0x8] sm:$0xf] %vm2109_vm6, %v2701_v55  ;;  %v5106_v55 = vld [vmem:[%s5928_s6 + $0x40] ss:$16 sps:$4 sm:$0xff]  }
 0x8e2   : > { %3145 = vmatpush1.bf16.msra.mxu0 %v5106_v55  ;;  %v5137_v55 = vld [vmem:[%s5933_s13 + $0xe0] sm:$0xff]  }
 0x8e3   : > { %v2703_v58 = vpop.permute.xlu1 %2702 }
 0x8e4   : > { %2707 = vst.msk [vmem:[#allocation6 + $0xc] sm:$0xf] %vm2109_vm6, %v2703_v58  ;;  %v5109_v58 = vld [vmem:[%s5928_s6 + $0x48] ss:$16 sps:$4 sm:$0xff]  }
 0x8eb   : > { %v5075_v60 = vld [vmem:[#allocation6 + $0x8] sm:$0xff]  }
 0x8ec   : > { %4876 = vmatmul.mubr.bf16.vlgmr.msra.gmra.mxu1 %v5075_v60  ;;  %v5114_v60 = vld [vmem:[%s5928_s6 + $0x24] ss:$16 sps:$4 sm:$0xff]  }
 0x8ed   : > { %3219 = vmatprep.mubr.bf16.mxu1 %v5585_v35  ;;  %3188 = vmatpush1.bf16.msra.mxu1 %v5079_v18 }
 0x8ee   : > { %3189 = vmatprep.subr.bf16.mxu1 %v5087_v21  ;;  %3146 = vmatprep.subr.bf16.mxu0 %v5114_v60  ;;  %v5139_v60 = vld [vmem:[%s5933_s13 + $0xa0] sm:$0xff]  }
 0x8f1   : > { %3190 = vmatpush1.bf16.msra.mxu1 %v5085_v6 }
 0x8f2   : > { %3191 = vmatprep.subr.bf16.mxu1 %v5093_v46 }
 0x8f5   : > { %3192 = vmatpush1.bf16.msra.mxu1 %v5091_v59  ;;  %v5125_v59 = vld [vmem:[%s5933_s13 + $0xf8] sm:$0xff]  }
 0x8f6   : > { %3193 = vmatprep.subr.bf16.mxu1 %v5099_v20  ;;  %v5127_v20 = vld [vmem:[%s5933_s13 + $0xb8] sm:$0xff]  }
 0x8f9   : > { %3194 = vmatpush1.bf16.msra.mxu1 %v5097_v50  ;;  %v5130_v50 = vld [vmem:[%s5933_s13 + $0x30] sm:$0xff]  }
 0x8fa   : > { %3195 = vmatprep.subr.bf16.mxu1 %v5105_v54  ;;  %v5134_v54 = vld [vmem:[%s5933_s13 + $0x28] sm:$0xff]  }
 0x8fd   : > { %3196 = vmatpush1.bf16.msra.mxu1 %v5103_v52  ;;  %v5133_v52 = vld [vmem:[%s5933_s13 + $0xe8] sm:$0xff]  }
 0x8fe   : > { %3197 = vmatprep.subr.bf16.mxu1 %v5111_v57  ;;  %v5136_v57 = vld [vmem:[%s5933_s13 + $0x60] sm:$0xff]  }
 0x901   : > { %3198 = vmatpush1.bf16.msra.mxu1 %v5109_v58  ;;  %v5138_v58 = vld [vmem:[%s5933_s13 + $0x20] sm:$0xff]  }
 0x9ac   : > { %v4877_v61 = vpop.f32.mrf.mxu1 }
 0x9ad   : > { %v2839_v5 = vadd.f32 %v5269_v4, %v4877_v61  ;;  %v5117_v61 = vld [vmem:[%s5928_s6 + $0x2c] ss:$16 sps:$4 sm:$0xff]   ;;  %v5121_v4 = vld [vmem:[%s5928_s6 + $0x8] ss:$16 sps:$4 sm:$0xff]  }
 0x9ae   : > { %v2822_v62 = vpop.f32.mrf.mxu1  ;;  %3199 = vmatprep.subr.bf16.mxu1 %v5117_v61  ;;  %v5140_v61 = vld [vmem:[%s5933_s13 + $0x58] sm:$0xff]  }
 0x9af   : > { %v2837_v31 = vadd.f32 %v5268_v0, %v2822_v62  ;;  %v6391_v12 = vadd.f32 %v4486_v1, %v2839_v5  ;;  %v5112_v62 = vld [vmem:[%s5928_s6 + $0x20] ss:$16 sps:$4 sm:$0xff]   ;;  %v5115_v0 = vld [vmem:[%s5928_s6 + $0x28] ss:$16 sps:$4 sm:$0xff]  }
 0x9b0   : > { %v4878_v14 = vpop.f32.mrf.mxu1  ;;  %3147 = vmatpush1.bf16.msra.mxu0 %v5112_v62  ;;  %3200 = vmatpush1.bf16.msra.mxu1 %v5115_v0  ;;  %v5141_v62 = vld [vmem:[%s5933_s13 + $0xd8] sm:$0xff]  }
 0x9b1   : > { %v6388_v7 = vadd.f32 %v4486_v1, %v2837_v31  ;;  %v2840_v8 = vadd.f32 %v5271_v2, %v4878_v14  ;;  %v5120_v31 = vld [vmem:[%s5928_s6 + $0x4] ss:$16 sps:$4 sm:$0xff]   ;;  %v5118_v14 = vld [vmem:[%s5928_s6] ss:$16 sps:$4 sm:$0xff]   ;;  %v5142_v0 = vld [vmem:[%s5933_s13 + $0x18] sm:$0xff]  }
 0x9b2   : > { %v2825_v33 = vpop.f32.mrf.mxu1  ;;  %3148 = vmatprep.subr.bf16.mxu0 %v5120_v31  ;;  %v5143_v31 = vld [vmem:[%s5933_s13 + $0x98] sm:$0xff]  }
 0x9b3   : > { %v2838_v11 = vadd.f32 %v5270_v9, %v2825_v33  ;;  %2854 = vadd.xlane.f32.xlu0 %v6388_v7  ;;  %v6397_v16 = vadd.f32 %v4486_v1, %v2840_v8 }
 0x9b4   : > { %3149 = vmatpush1.bf16.msra.mxu0 %v5118_v14  ;;  %v5145_v14 = vld [vmem:[%s5933_s13 + $0xd0] sm:$0xff]  }
 0x9b5   : > { %v6393_v10 = vadd.f32 %v4486_v1, %v2838_v11  ;;  %v5123_v1 = vld [vmem:[%s5928_s6 + $0xc] ss:$16 sps:$4 sm:$0xff]  }
 0x9b6   : > { %3201 = vmatprep.subr.bf16.mxu1 %v5123_v1  ;;  %v5144_v1 = vld [vmem:[%s5933_s13 + $0x50] sm:$0xff]  }
 0x9b7   : > { %2858 = vadd.xlane.f32.xlu0 %v6391_v12  ;;  %2856 = vadd.xlane.f32.xlu1 %v6393_v10 }
 0x9b8   : > { %3202 = vmatpush1.bf16.msra.mxu1 %v5121_v4  ;;  %v5146_v4 = vld [vmem:[%s5933_s13 + $0x10] sm:$0xff]  }
 0x9b9   : > { %4706 = vmatprep.subr.bf16.mxu1 %v5125_v59 }
 0x9bb   : > { %2860 = vadd.xlane.f32.xlu0 %v6397_v16 }
 0xa3c   : > { %v2855_v22 = vpop.xlane.xlu0 %2854 }
 0xa3d   : > { %v2862_v24 = vmul.f32 0.0078125, %v2855_v22 }
 0xa3f   : > { %v6405_v25 = vsub.f32 %v6388_v7, %v2862_v24 }
 0xa40   : > { %v2859_v29 = vpop.xlane.xlu0 %2858  ;;  %v2857_v36 = vpop.xlane.xlu1 %2856 }
 0xa41   : > { %v2864_v37 = vmul.f32 0.0078125, %v2859_v29  ;;  %v2863_v38 = vmul.f32 0.0078125, %v2857_v36  ;;  %v2870_v39 = vmul.f32 %v6405_v25, %v6405_v25 }
 0xa43   : > { %v6410_v32 = vsub.f32 %v6391_v12, %v2864_v37  ;;  %v6413_v40 = vsub.f32 %v6393_v10, %v2863_v38  ;;  %2874 = vadd.xlane.f32.xlu0 %v2870_v39  ;;  %v4487_v37 = vld [vmem:[%s902_s23] ss:$0 sm:$0xff] }
 0xa44   : > { %v2861_v41 = vpop.xlane.xlu0 %2860 }
 0xa45   : > { %v2865_v42 = vmul.f32 0.0078125, %v2861_v41  ;;  %v2872_v43 = vmul.f32 %v6410_v32, %v6410_v32  ;;  %v2871_v44 = vmul.f32 %v6413_v40, %v6413_v40 }
 0xa47   : > { %v6420_v45 = vsub.f32 %v6397_v16, %v2865_v42  ;;  %2878 = vadd.xlane.f32.xlu0 %v2872_v43  ;;  %2876 = vadd.xlane.f32.xlu1 %v2871_v44  ;;  %v4488_v43 = vld [vmem:[%s905_s24] ss:$0 sm:$0xff]  ;;  %s6718_s24 = sld [smem:[#allocation41_spill]] (!%p4554_p6) }
 0xa49   : > { %v2873_v34 = vmul.f32 %v6420_v45, %v6420_v45 }
 0xa4b   : > { %2880 = vadd.xlane.f32.xlu1 %v2873_v34 }
 0xacc   : > { %v2875_v5 = vpop.xlane.xlu0 %2874 }
 0xacd   : > { %v2882_v33 = vmul.f32 0.0078125, %v2875_v5  ;;  %v5147_v5 = vld [vmem:[%s5933_s13 + $0x90] sm:$0xff]  }
 0xacf   : > { %v2886_v9 = vadd.f32 1e-06, %v2882_v33  ;;  %v5148_v33 = vld [vmem:[%s5933_s13 + $0x48] sm:$0xff]  }
 0xad0   : > { %v2879_v11 = vpop.xlane.xlu0 %2878  ;;  %v2877_v2 = vpop.xlane.xlu1 %2876 }
 0xad1   : > { %5228 = vrsqrt.f32 %v2886_v9  ;;  %v2884_v8 = vmul.f32 0.0078125, %v2879_v11  ;;  %v2883_v17 = vmul.f32 0.0078125, %v2877_v2  ;;  %v5149_v9 = vld [vmem:[%s5933_s13 + $0xc8] sm:$0xff]  }
 0xad2   : > { %v5150_v11 = vld [vmem:[%s5933_s13 + $0x8] sm:$0xff]  }
 0xad3   : > { %v2887_v13 = vadd.f32 1e-06, %v2883_v17  ;;  %v2888_v18 = vadd.f32 1e-06, %v2884_v8  ;;  %v5151_v2 = vld [vmem:[%s5933_s13 + $0x88] sm:$0xff]   ;;  %v5152_v8 = vld [vmem:[%s5933_s13 + $0x40] sm:$0xff]  }
 0xad4   : > { %v2881_v19 = vpop.xlane.xlu1 %2880  ;;  %v5153_v17 = vld [vmem:[%s5933_s13 + $0xc0] sm:$0xff]  }
 0xad5   : > { %v2885_v22 = vmul.f32 0.0078125, %v2881_v19  ;;  %5230 = vrsqrt.f32 %v2887_v13  ;;  %v5154_v13 = vld [vmem:[%s5933_s13] sm:$0xff]   ;;  %v2952_v19 = vld [vmem:[%s5893_s3] sm:$0xf]  ;;  %s6717_s3 = sld [smem:[#allocation40_spill]] (!%p4554_p6) }
 0xad6   : > { %5232 = vrsqrt.f32 %v2888_v18  ;;  %v5155_v18 = vld [vmem:[%s5933_s13 + $0x80] sm:$0xff]  }
 0xad7   : > { %v2889_v24 = vadd.f32 1e-06, %v2885_v22  ;;  %v2968_v22 = vsub.s32 3, %v6006_v27 }
 0xad9   : > { %5234 = vrsqrt.f32 %v2889_v24  ;;  %v2957_v24 = vrot.slane %v2952_v19, %v6009_v28 }
 0xade   : > { %v5229_v29 = vpop.eup %5228 }
 0xadf   : > { %v2894_v36 = vmul.f32 %v5229_v29, %v6405_v25  ;;  %v2965_v29 = vrot.slane %v2952_v19, %v6063_v63 }
 0xae1   : > { %v2904_v41 = vmul.f32 %v4487_v37, %v2894_v36 }
 0xae2   : > { %v5231_v38 = vpop.eup %5230 }
 0xae3   : > { %v2895_v39 = vmul.f32 %v5231_v38, %v6413_v40  ;;  %v5233_v42 = vpop.eup %5232  ;;  %v2914_v25 = vadd.f32 %v4488_v43, %v2904_v41  ;;  %v2961_v38 = vrot.slane %v2952_v19, %v6015_v30 }
 0xae4   : > { %v2896_v3 = vmul.f32 %v5233_v42, %v6410_v32  ;;  %v5124_v32 = vld [vmem:[%s5933_s13 + $0x78] sm:$0xff]  }
 0xae5   : > { %v2905_v34 = vmul.f32 %v4487_v37, %v2895_v39  ;;  %4678 = vmatprep.subr.bf16.mxu0 %v5124_v32  ;;  %v2969_v39 = vrot.slane %v2952_v19, %v2968_v22 }
 0xae6   : > { %v5235_v44 = vpop.eup %5234  ;;  %v2906_v23 = vmul.f32 %v4487_v37, %v2896_v3 }
 0xae7   : > { %v2897_v15 = vmul.f32 %v5235_v44, %v6420_v45  ;;  %v2915_v21 = vadd.f32 %v4488_v43, %v2905_v34 }
 0xae8   : > { %v2916_v46 = vadd.f32 %v4488_v43, %v2906_v23 }
 0xae9   : > { %v2918_v40 = vpack.c.bf16 %v2915_v21, %v2914_v25  ;;  %v2907_v6 = vmul.f32 %v4487_v37, %v2897_v15 }
 0xaeb   : > { %3167 = vmatmul.mubr.bf16.vlgmr.msra.gmra.mxu0 %v2918_v40  ;;  %3220 = vmatmul.mubr.bf16.vlgmr.msra.gmra.mxu1 %v2918_v40  ;;  %v2917_v45 = vadd.f32 %v4488_v43, %v2907_v6 }
 0xaec   : > { %3176 = vmatprep.mubr.bf16.mxu0 %v5585_v35  ;;  %3229 = vmatprep.mubr.bf16.mxu1 %v5585_v35  ;;  %v5128_v35 = vld [vmem:[%s5933_s13 + $0x70] sm:$0xff]   ;;  %s6716_s13 = scalar_lea.vmem [#allocation15], %s5865_s8 }
 0xaed   : > { %v2919_v47 = vpack.c.bf16 %v2917_v45, %v2916_v46  ;;  %4679 = vmatpush3.bf16.msra.mxu0 %v5126_v48  ;;  %4707 = vmatpush3.bf16.msra.mxu1 %v5127_v20 }
 0xaee   : > { %4680 = vmatprep.subr.bf16.mxu0 %v5128_v35  ;;  %4708 = vmatprep.subr.bf16.mxu1 %v5129_v49 }
 0xaf1   : > { %4681 = vmatpush3.bf16.msra.mxu0 %v5130_v50  ;;  %4709 = vmatpush3.bf16.msra.mxu1 %v5131_v51 }
 0xaf2   : > { %4682 = vmatprep.subr.bf16.mxu0 %v5132_v53  ;;  %4710 = vmatprep.subr.bf16.mxu1 %v5133_v52 }
 0xaf3   : > { %3177 = vmatmul.mubr.bf16.gmra.mxu0 %v2919_v47  ;;  %3230 = vmatmul.mubr.bf16.gmra.mxu1 %v2919_v47 }
 0xaf5   : > { %4683 = vmatpush3.bf16.msra.mxu0 %v5134_v54  ;;  %4711 = vmatpush3.bf16.msra.mxu1 %v5135_v56 }
 0xaf6   : > { %4684 = vmatprep.subr.bf16.mxu0 %v5136_v57  ;;  %4712 = vmatprep.subr.bf16.mxu1 %v5137_v55 }
 0xaf9   : > { %4685 = vmatpush3.bf16.msra.mxu0 %v5138_v58  ;;  %4713 = vmatpush3.bf16.msra.mxu1 %v5139_v60 }
 0xafa   : > { %4686 = vmatprep.subr.bf16.mxu0 %v5140_v61  ;;  %4714 = vmatprep.subr.bf16.mxu1 %v5141_v62 }
 0xafd   : > { %4687 = vmatpush3.bf16.msra.mxu0 %v5142_v0  ;;  %4715 = vmatpush3.bf16.msra.mxu1 %v5143_v31 }
 0xafe   : > { %4688 = vmatprep.subr.bf16.mxu0 %v5144_v1  ;;  %4716 = vmatprep.subr.bf16.mxu1 %v5145_v14 }
 0xb01   : > { %4689 = vmatpush3.bf16.msra.mxu0 %v5146_v4  ;;  %4717 = vmatpush3.bf16.msra.mxu1 %v5147_v5 }
 0xb02   : > { %4690 = vmatprep.subr.bf16.mxu0 %v5148_v33  ;;  %4718 = vmatprep.subr.bf16.mxu1 %v5149_v9 }
 0xb05   : > { %4691 = vmatpush3.bf16.msra.mxu0 %v5150_v11  ;;  %4719 = vmatpush3.bf16.msra.mxu1 %v5151_v2 }
 0xb06   : > { %4692 = vmatprep.subr.bf16.mxu0 %v5152_v8  ;;  %4720 = vmatprep.subr.bf16.mxu1 %v5153_v17 }
 0xb09   : > { %4693 = vmatpush3.bf16.msra.mxu0 %v5154_v13  ;;  %4721 = vmatpush3.bf16.msra.mxu1 %v5155_v18 }
 0xbab   : > { %v3168_v36 = vpop.f32.mrf.mxu0  ;;  %v3221_v37 = vpop.f32.mrf.mxu1 }
 0xbac   : > { %v6505_v41 = vadd.f32 %v3168_v36, %v2957_v24  ;;  %v6507_v42 = vadd.f32 %v3221_v37, %v2965_v29 }
 0xbad   : > { %v3170_v43 = vpop.f32.mrf.mxu0  ;;  %v3223_v44 = vpop.f32.mrf.mxu1 }
 0xbae   : > { %v3256_v34 = vmul.f32 0.70710677, %v6505_v41  ;;  %v3258_v15 = vmul.f32 0.70710677, %v6507_v42  ;;  %v3171_v25 = vadd.f32 %v3170_v43, %v2961_v38  ;;  %v6511_v21 = vadd.f32 %v3223_v44, %v2969_v39 }
 0xbaf   : > { %v3172_v3 = vpop.f32.mrf.mxu0  ;;  %v3225_v40 = vpop.f32.mrf.mxu1  ;;  %v3240_v37 = vmul.f32 0.5, %v6505_v41 }
 0xbb0   : > { %v6513_v6 = vadd.f32 %v3172_v3, %v2957_v24  ;;  %v6515_v23 = vadd.f32 %v3225_v40, %v2965_v29  ;;  %5236 = verf.f32 %v3256_v34  ;;  %v3257_v45 = vmul.f32 0.70710677, %v3171_v25 }
 0xbb1   : > { %v3174_v46 = vpop.f32.mrf.mxu0  ;;  %v3227_v47 = vpop.f32.mrf.mxu1  ;;  %5238 = verf.f32 %v3258_v15  ;;  %v3259_v32 = vmul.f32 0.70710677, %v6511_v21 }
 0xbb2   : > { %v3260_v59 = vmul.f32 0.70710677, %v6513_v6  ;;  %5240 = verf.f32 %v3257_v45  ;;  %v3262_v48 = vmul.f32 0.70710677, %v6515_v23  ;;  %v3175_v20 = vadd.f32 %v3174_v46, %v2961_v38 }
 0xbb3   : > { %v6520_v35 = vadd.f32 %v3227_v47, %v2969_v39  ;;  %v3178_v49 = vpop.f32.mrf.mxu0  ;;  %v3231_v50 = vpop.f32.mrf.mxu1  ;;  %5242 = verf.f32 %v3259_v32  ;;  %v3244_v3 = vmul.f32 0.5, %v6513_v6  ;;  %v3246_v47 = vmul.f32 0.5, %v6515_v23 }
 0xbb4   : > { %v6522_v51 = vadd.f32 %v3178_v49, %v2957_v24  ;;  %v6524_v53 = vadd.f32 %v3231_v50, %v2965_v29  ;;  %5244 = verf.f32 %v3260_v59  ;;  %v3261_v52 = vmul.f32 0.70710677, %v3175_v20 }
 0xbb5   : > { %v3180_v54 = vpop.f32.mrf.mxu0  ;;  %v3233_v56 = vpop.f32.mrf.mxu1  ;;  %5246 = verf.f32 %v3262_v48  ;;  %v3263_v57 = vmul.f32 0.70710677, %v6520_v35  ;;  %v3245_v32 = vmul.f32 0.5, %v3175_v20  ;;  %v3243_v49 = vmul.f32 0.5, %v6511_v21 }
 0xbb6   : > { %v3264_v55 = vmul.f32 0.70710677, %v6522_v51  ;;  %5248 = verf.f32 %v3261_v52  ;;  %v3266_v58 = vmul.f32 0.70710677, %v6524_v53  ;;  %v6529_v60 = vadd.f32 %v3180_v54, %v2961_v38 }
 0xbb7   : > { %v3182_v61 = vpop.f32.mrf.mxu0  ;;  %v3235_v62 = vpop.f32.mrf.mxu1  ;;  %5250 = verf.f32 %v3263_v57  ;;  %v6531_v0 = vadd.f32 %v3233_v56, %v2969_v39  ;;  %v3247_v41 = vmul.f32 0.5, %v6520_v35  ;;  %v3242_v54 = vmul.f32 0.5, %v6507_v42 }
 0xbb8   : > { %v6533_v31 = vadd.f32 %v3182_v61, %v2957_v24  ;;  %v6535_v1 = vadd.f32 %v3235_v62, %v2965_v29  ;;  %5252 = verf.f32 %v3264_v55  ;;  %v3265_v14 = vmul.f32 0.70710677, %v6529_v60 }
 0xbb9   : > { %v3184_v4 = vpop.f32.mrf.mxu0  ;;  %v3237_v5 = vpop.f32.mrf.mxu1  ;;  %5254 = verf.f32 %v3266_v58  ;;  %v3267_v33 = vmul.f32 0.70710677, %v6531_v0 }
 0xbba   : > { %5256 = verf.f32 %v3265_v14  ;;  %v3268_v9 = vmul.f32 0.70710677, %v6533_v31  ;;  %v3270_v11 = vmul.f32 0.70710677, %v6535_v1  ;;  %v6541_v2 = vadd.f32 %v3184_v4, %v2961_v38 }
 0xbbb   : > { %5258 = verf.f32 %v3267_v33  ;;  %v6543_v8 = vadd.f32 %v3237_v5, %v2969_v39  ;;  %v3241_v38 = vmul.f32 0.5, %v3171_v25 }
 0xbbc   : > { %5260 = verf.f32 %v3268_v9  ;;  %v3269_v13 = vmul.f32 0.70710677, %v6541_v2 }
 0xbbd   : > { %v5237_v17 = vpop.eup %5236  ;;  %5262 = verf.f32 %v3270_v11  ;;  %v3271_v19 = vmul.f32 0.70710677, %v6543_v8  ;;  %v3248_v11 = vmul.f32 0.5, %v6522_v51  ;;  %v3251_v51 = vmul.f32 0.5, %v6531_v0 }
 0xbbe   : > { %v5239_v18 = vpop.eup %5238  ;;  %5264 = verf.f32 %v3269_v13  ;;  %v3288_v34 = vadd.f32 1.0, %v5237_v17 }
 0xbbf   : > { %v5241_v22 = vpop.eup %5240  ;;  %5266 = verf.f32 %v3271_v19  ;;  %v3290_v46 = vadd.f32 1.0, %v5239_v18  ;;  %v3249_v19 = vmul.f32 0.5, %v6529_v60 }
 0xbc0   : > { %v5243_v24 = vpop.eup %5242  ;;  %v3289_v43 = vadd.f32 1.0, %v5241_v22  ;;  %v3304_v58 = vmul.f32 %v3288_v34, %v3240_v37  ;;  %v3254_v37 = vmul.f32 0.5, %v6535_v1 }
 0xbc1   : > { %v5245_v29 = vpop.eup %5244  ;;  %v3291_v15 = vadd.f32 1.0, %v5243_v24  ;;  %v3306_v20 = vmul.f32 %v3290_v46, %v3242_v54  ;;  %v3252_v24 = vmul.f32 0.5, %v6533_v31 }
 0xbc2   : > { %v5247_v36 = vpop.eup %5246  ;;  %v3292_v39 = vadd.f32 1.0, %v5245_v29  ;;  %v3305_v56 = vmul.f32 %v3289_v43, %v3241_v38  ;;  %v3253_v38 = vmul.f32 0.5, %v6541_v2 }
 0xbc3   : > { %v5249_v44 = vpop.eup %5248  ;;  %v3294_v40 = vadd.f32 1.0, %v5247_v36  ;;  %v3307_v61 = vmul.f32 %v3291_v15, %v3243_v49  ;;  %v3250_v15 = vmul.f32 0.5, %v6524_v53 }
 0xbc4   : > { %v5251_v45 = vpop.eup %5250  ;;  %v3293_v59 = vadd.f32 1.0, %v5249_v44  ;;  %v3308_v50 = vmul.f32 %v3292_v39, %v3244_v3  ;;  %v3255_v44 = vmul.f32 0.5, %v6543_v8 }
 0xbc5   : > { %v5253_v48 = vpop.eup %5252  ;;  %v3295_v25 = vadd.f32 1.0, %v5251_v45  ;;  %v3310_v57 = vmul.f32 %v3294_v40, %v3246_v47 }
 0xbc6   : > { %v5255_v52 = vpop.eup %5254  ;;  %v3309_v6 = vmul.f32 %v3293_v59, %v3245_v32  ;;  %v3320_v5 = vpack.c.bf16 %v3308_v50, %v3304_v58  ;;  %v3296_v18 = vadd.f32 1.0, %v5253_v48 }
 0xbc7   : > { %v5257_v55 = vpop.eup %5256  ;;  %v3311_v62 = vmul.f32 %v3295_v25, %v3247_v41  ;;  %v3322_v9 = vpack.c.bf16 %v3310_v57, %v3306_v20  ;;  %v3298_v36 = vadd.f32 1.0, %v5255_v52 }
 0xbc8   : > { %v5259_v23 = vpop.eup %5258  ;;  %v3321_v14 = vpack.c.bf16 %v3309_v6, %v3305_v56  ;;  %v3297_v42 = vadd.f32 1.0, %v5257_v55  ;;  %v3312_v31 = vmul.f32 %v3296_v18, %v3248_v11  ;;  %v4553_v56 = vld [vmem:[%s6716_s13] ss:$0 sm:$0xff] }
 0xbc9   : > { %v5261_v4 = vpop.eup %5260  ;;  %v3323_v21 = vpack.c.bf16 %v3311_v62, %v3307_v61  ;;  %v3299_v22 = vadd.f32 1.0, %v5259_v23  ;;  %v3314_v47 = vmul.f32 %v3298_v36, %v3250_v15 }
 0xbca   : > { %v5263_v33 = vpop.eup %5262  ;;  %v3300_v35 = vadd.f32 1.0, %v5261_v4  ;;  %3616 = vmatprep.mubr.bf16.mxu0 %v3321_v14  ;;  %v3313_v60 = vmul.f32 %v3297_v42, %v3249_v19 }
 0xbcb   : > { %v3302_v17 = vadd.f32 1.0, %v5263_v33  ;;  %3665 = vmatprep.mubr.bf16.mxu1 %v3323_v21  ;;  %3617 = vmatmul.mubr.bf16.vlgmr.msra.gmra.mxu0 %v3320_v5  ;;  %v5265_v13 = vpop.eup %5264  ;;  %v3315_v45 = vmul.f32 %v3299_v22, %v3251_v51 }
 0xbcc   : > { %3666 = vmatmul.mubr.bf16.vlgmr.msra.gmra.mxu1 %v3322_v9  ;;  %v5267_v29 = vpop.eup %5266  ;;  %v3301_v43 = vadd.f32 1.0, %v5265_v13  ;;  %v3316_v39 = vmul.f32 %v3300_v35, %v3252_v24 }
 0xbcd   : > { %v3303_v34 = vadd.f32 1.0, %v5267_v29  ;;  %v3318_v3 = vmul.f32 %v3302_v17, %v3254_v37 }
 0xbce   : > { %v3317_v40 = vmul.f32 %v3301_v43, %v3253_v38  ;;  %v3324_v59 = vpack.c.bf16 %v3316_v39, %v3312_v31 }
 0xbcf   : > { %v3319_v46 = vmul.f32 %v3303_v34, %v3255_v44  ;;  %v3326_v2 = vpack.c.bf16 %v3318_v3, %v3314_v47 }
 0xbd0   : > { %v3325_v32 = vpack.c.bf16 %v3317_v40, %v3313_v60 }
 0xbd1   : > { %v3327_v1 = vpack.c.bf16 %v3319_v46, %v3315_v45 }
 0xbd2   : > { %3624 = vmatprep.mubr.bf16.mxu0 %v3325_v32 }
 0xbd3   : > { %3673 = vmatprep.mubr.bf16.mxu1 %v3327_v1  ;;  %3625 = vmatmul.mubr.bf16.gmra.mxu0 %v3324_v59 }
 0xbd4   : > { %3674 = vmatmul.mubr.bf16.gmra.mxu1 %v3326_v2 }
 0xc8b   : > { %v4694_v0 = vpop.f32.mrf.mxu0 }
 0xc8c   : > { %v4722_v8 = vpop.f32.mrf.mxu1 }
 0xc8d   : > { %v4695_v48 = vpop.f32.mrf.mxu0 }
 0xc8e   : > { %v4696_v53 = vadd.f32 %v4695_v48, %v4694_v0  ;;  %v4723_v49 = vpop.f32.mrf.mxu1 }
 0xc8f   : > { %v4724_v50 = vadd.f32 %v4723_v49, %v4722_v8  ;;  %v4697_v41 = vpop.f32.mrf.mxu0 }
 0xc90   : > { %v4725_v25 = vpop.f32.mrf.mxu1 }
 0xc91   : > { %v3668_v52 = vadd.f32 %v4724_v50, %v4696_v53  ;;  %v4698_v54 = vpop.f32.mrf.mxu0 }
 0xc92   : > { %v4699_v57 = vadd.f32 %v4698_v54, %v4697_v41  ;;  %v4726_v6 = vpop.f32.mrf.mxu1 }
 0xc93   : > { %v3682_v55 = vadd.f32 %v3668_v52, %v6388_v7  ;;  %v4727_v58 = vadd.f32 %v4726_v6, %v4725_v25  ;;  %v4700_v61 = vpop.f32.mrf.mxu0 }
 0xc94   : > { %v4728_v20 = vpop.f32.mrf.mxu1 }
 0xc95   : > { %v3693_v62 = vadd.f32 %v4553_v56, %v3682_v55  ;;  %v3671_v23 = vadd.f32 %v4727_v58, %v4699_v57  ;;  %v4701_v14 = vpop.f32.mrf.mxu0 }
 0xc96   : > { %v4702_v5 = vadd.f32 %v4701_v14, %v4700_v61  ;;  %v4729_v21 = vpop.f32.mrf.mxu1 }
 0xc97   : > { %3697 = vst [vmem:[#allocation2 + $0x10] sm:$0xff] %v3693_v62  ;;  %v3683_v4 = vadd.f32 %v3671_v23, %v6393_v10  ;;  %v4730_v33 = vadd.f32 %v4729_v21, %v4728_v20  ;;  %v4703_v9 = vpop.f32.mrf.mxu0 }
 0xc98   : > { %v4731_v11 = vpop.f32.mrf.mxu1 }
 0xc99   : > { %v3694_v35 = vadd.f32 %v4553_v56, %v3683_v4  ;;  %v3676_v42 = vadd.f32 %v4730_v33, %v4702_v5  ;;  %v4704_v17 = vpop.f32.mrf.mxu0 }
 0xc9a   : > { %v4705_v13 = vadd.f32 %v4704_v17, %v4703_v9  ;;  %v4732_v7 = vpop.f32.mrf.mxu1 }
 0xc9b   : > { %3698 = vst [vmem:[#allocation2] sm:$0xff] %v3694_v35  ;;  %v3684_v18 = vadd.f32 %v3676_v42, %v6391_v12  ;;  %v4733_v19 = vadd.f32 %v4732_v7, %v4731_v11 }
 0xc9d   : > { %v3695_v22 = vadd.f32 %v4553_v56, %v3684_v18  ;;  %v3679_v24 = vadd.f32 %v4733_v19, %v4705_v13 }
 0xc9f   : > { %3699 = vst [vmem:[#allocation2 + $0x18] sm:$0xff] %v3695_v22  ;;  %v3685_v29 = vadd.f32 %v3679_v24, %v6397_v16  ;;  %3704 = sbr.rel (%p4554_p6) target bundleno = 3779 (0xec3), region = 128 }
 0xca1   : > { %v3696_v10 = vadd.f32 %v4553_v56, %v3685_v29 }
 0xca3   : > { %3700 = vst [vmem:[#allocation2 + $0x8] sm:$0xff] %v3696_v10 }
 0xca4   : > { %3707 = vadd.xlane.f32.xlu0 %v3693_v62  ;;  %3711 = vadd.xlane.f32.xlu1 %v3695_v22  ;;  %v5272_v46 = vld [vmem:[#allocation17 + $0xac] ss:$12 sps:$4 sm:$0xff]   ;;  %v5274_v47 = vld [vmem:[#allocation17 + $0xa8] ss:$12 sps:$4 sm:$0xff]   ;;  %v5275_v32 = vld [vmem:[#allocation17 + $0xb0] ss:$12 sps:$4 sm:$0xff]  }
 0xca5   : > { %3975 = vmatprep.subr.bf16.mxu0 %v5272_v46  ;;  %v5591_v1 = vmov 0.0   ;;  %v5276_v59 = vld [vmem:[#allocation17 + $0x94] ss:$12 sps:$4 sm:$0xff]   ;;  %v5278_v2 = vld [vmem:[#allocation17 + $0x90] ss:$12 sps:$4 sm:$0xff]   ;;  %v5592_v52 = vmov 0  }
 0xca6   : > { %4879 = vmatprep.subr.bf16.mxu1 %v5591_v1  ;;  %3976 = vmatpush1.bf16.msra.mxu0 %v5274_v47  ;;  %v5279_v0 = vld [vmem:[#allocation17 + $0x98] ss:$12 sps:$4 sm:$0xff]   ;;  %v5280_v8 = vld [vmem:[#allocation17 + $0x7c] ss:$12 sps:$4 sm:$0xff]   ;;  %v5283_v53 = vld [vmem:[#allocation17 + $0x80] ss:$12 sps:$4 sm:$0xff]  }
 0xca7   : > { %4880 = vmatpush3.bf16.msra.mxu1 %v5275_v32  ;;  %3977 = vmatprep.subr.bf16.mxu0 %v5276_v59  ;;  %v5282_v48 = vld [vmem:[#allocation17 + $0x78] ss:$12 sps:$4 sm:$0xff]   ;;  %v5286_v50 = vld [vmem:[#allocation17 + $0x60] ss:$12 sps:$4 sm:$0xff]   ;;  %v5287_v41 = vld [vmem:[#allocation17 + $0x68] ss:$12 sps:$4 sm:$0xff]  }
 0xca8   : > { %3709 = vadd.xlane.f32.xlu0 %v3694_v35  ;;  %3713 = vadd.xlane.f32.xlu1 %v3696_v10  ;;  %v5284_v49 = vld [vmem:[#allocation17 + $0x64] ss:$12 sps:$4 sm:$0xff]   ;;  %v5288_v25 = vld [vmem:[#allocation17 + $0x4c] ss:$12 sps:$4 sm:$0xff]   ;;  %vm5593_vm7 = vmmov 0   ;;  %vm3843_vm8 = vcmask 1041409  }
 0xca9   : > { %4881 = vmatprep.subr.bf16.mxu1 %v5591_v1  ;;  %4007 = vmatprep.mubr.bf16.mxu0 %v5592_v52  ;;  %v5290_v54 = vld [vmem:[#allocation17 + $0x48] ss:$12 sps:$4 sm:$0xff]   ;;  %v5291_v56 = vld [vmem:[#allocation17 + $0x50] ss:$12 sps:$4 sm:$0xff]   ;;  %v5295_v55 = vld [vmem:[#allocation17 + $0x38] ss:$12 sps:$4 sm:$0xff]  }
 0xcaa   : > { %3978 = vmatpush1.bf16.msra.mxu0 %v5278_v2  ;;  %4895 = vmatprep.mubr.msk.bf16.mxu1 %vm5593_vm7, %v5591_v1  ;;  %v5292_v57 = vld [vmem:[#allocation17 + $0x34] ss:$12 sps:$4 sm:$0xff]   ;;  %v5294_v6 = vld [vmem:[#allocation17 + $0x30] ss:$12 sps:$4 sm:$0xff]   ;;  %v5298_v61 = vld [vmem:[#allocation17 + $0x18] ss:$12 sps:$4 sm:$0xff]  }
 0xcab   : > { %4882 = vmatpush3.bf16.msra.mxu1 %v5279_v0  ;;  %3979 = vmatprep.subr.bf16.mxu0 %v5280_v8  ;;  %v5296_v58 = vld [vmem:[#allocation17 + $0x1c] ss:$12 sps:$4 sm:$0xff]   ;;  %v5300_v23 = vld [vmem:[#allocation17 + $0x4] ss:$12 sps:$4 sm:$0xff]   ;;  %v5302_v20 = vld [vmem:[#allocation17] ss:$12 sps:$4 sm:$0xff]  }
 0xcac   : > { %4883 = vmatprep.subr.bf16.mxu1 %v5591_v1  ;;  %v5303_v14 = vld [vmem:[#allocation17 + $0x8] ss:$12 sps:$4 sm:$0xff]   ;;  %v4555_v24 = vld [vmem:[%s6717_s3] ss:$0 sm:$0xff]  ;;  %vm4094_vm9 = vcmp.lt.s32.totalorder %v1052_v26, 384 }
 0xcae   : > { %3980 = vmatpush1.bf16.msra.mxu0 %v5282_v48 }
 0xcaf   : > { %4884 = vmatpush3.bf16.msra.mxu1 %v5283_v53  ;;  %3981 = vmatprep.subr.bf16.mxu0 %v5284_v49 }
 0xcb0   : > { %4885 = vmatprep.subr.bf16.mxu1 %v5591_v1 }
 0xcb2   : > { %3982 = vmatpush1.bf16.msra.mxu0 %v5286_v50 }
 0xcb3   : > { %4886 = vmatpush3.bf16.msra.mxu1 %v5287_v41  ;;  %3983 = vmatprep.subr.bf16.mxu0 %v5288_v25 }
 0xcb4   : > { %4887 = vmatprep.subr.bf16.mxu1 %v5591_v1 }
 0xcb6   : > { %3984 = vmatpush1.bf16.msra.mxu0 %v5290_v54 }
 0xcb7   : > { %4888 = vmatpush3.bf16.msra.mxu1 %v5291_v56  ;;  %3985 = vmatprep.subr.bf16.mxu0 %v5292_v57 }
 0xcb8   : > { %4889 = vmatprep.subr.bf16.mxu1 %v5591_v1 }
 0xcba   : > { %3986 = vmatpush1.bf16.msra.mxu0 %v5294_v6 }
 0xcbb   : > { %4890 = vmatpush3.bf16.msra.mxu1 %v5295_v55  ;;  %3987 = vmatprep.subr.bf16.mxu0 %v5296_v58  ;;  %v5594_v55 = vmov 1966171168  }
 0xcbc   : > { %4891 = vmatprep.subr.bf16.mxu1 %v5591_v1  ;;  %v4061_v58 = vunpack.c.l.s4 %v5594_v55 }
 0xcbe   : > { %3988 = vmatpush1.bf16.msra.mxu0 %v5298_v61  ;;  %v3822_v61 = vld [vmem:[%s6719_s22] sm:$0x7] }
 0xcbf   : > { %3989 = vmatprep.subr.bf16.mxu0 %v5300_v23  ;;  %v3835_v23 = vrot.slane %v3822_v61, %v6063_v63 }
 0xcc2   : > { %3990 = vmatpush1.bf16.msra.mxu0 %v5302_v20  ;;  %v4062_v20 = vunpack.c.0.s8 %v4061_v58 }
 0xd2d   : > { %v3708_v36 = vpop.xlane.xlu0 %3707  ;;  %v3712_v37 = vpop.xlane.xlu1 %3711 }
 0xd2e   : > { %v3715_v38 = vmul.f32 0.0078125, %v3708_v36  ;;  %v3717_v43 = vmul.f32 0.0078125, %v3712_v37 }
 0xd30   : > { %v6568_v12 = vsub.f32 %v3693_v62, %v3715_v38  ;;  %v6570_v51 = vsub.f32 %v3695_v22, %v3717_v43  ;;  %v5299_v62 = vld [vmem:[#allocation17 + $0x20] ss:$12 sps:$4 sm:$0xff]   ;;  %v4556_v43 = vld [vmem:[%s6718_s24] ss:$0 sm:$0xff] }
 0xd31   : > { %v3710_v39 = vpop.xlane.xlu0 %3709  ;;  %v3714_v44 = vpop.xlane.xlu1 %3713  ;;  %4892 = vmatpush3.bf16.msra.mxu1 %v5299_v62  ;;  %v3827_v62 = vrot.slane %v3822_v61, %v6009_v28 }
 0xd32   : > { %v3716_v16 = vmul.f32 0.0078125, %v3710_v39  ;;  %v3723_v34 = vmul.f32 %v6568_v12, %v6568_v12  ;;  %v3718_v15 = vmul.f32 0.0078125, %v3714_v44  ;;  %v3725_v40 = vmul.f32 %v6570_v51, %v6570_v51  ;;  %4893 = vmatprep.subr.bf16.mxu1 %v5591_v1 }
 0xd34   : > { %v6574_v60 = vsub.f32 %v3694_v35, %v3716_v16  ;;  %3727 = vadd.xlane.f32.xlu0 %v3723_v34  ;;  %v6576_v3 = vsub.f32 %v3696_v10, %v3718_v15 }
 0xd35   : > { %4894 = vmatpush3.bf16.msra.mxu1 %v5303_v14  ;;  %v3831_v14 = vrot.slane %v3822_v61, %v6015_v30 }
 0xd36   : > { %v3724_v31 = vmul.f32 %v6574_v60, %v6574_v60  ;;  %v3726_v45 = vmul.f32 %v6576_v3, %v6576_v3 }
 0xd38   : > { %3731 = vadd.xlane.f32.xlu0 %v3725_v40  ;;  %3729 = vadd.xlane.f32.xlu1 %v3724_v31 }
 0xd3c   : > { %3733 = vadd.xlane.f32.xlu1 %v3726_v45 }
 0xdbd   : > { %v3728_v4 = vpop.xlane.xlu0 %3727 }
 0xdbe   : > { %v3735_v5 = vmul.f32 0.0078125, %v3728_v4 }
 0xdc0   : > { %v3739_v21 = vadd.f32 1e-06, %v3735_v5 }
 0xdc1   : > { %v3730_v33 = vpop.xlane.xlu1 %3729  ;;  %v3732_v9 = vpop.xlane.xlu0 %3731 }
 0xdc2   : > { %5304 = vrsqrt.f32 %v3739_v21  ;;  %v3736_v35 = vmul.f32 0.0078125, %v3730_v33  ;;  %v3737_v11 = vmul.f32 0.0078125, %v3732_v9 }
 0xdc4   : > { %v3740_v42 = vadd.f32 1e-06, %v3736_v35  ;;  %v3741_v17 = vadd.f32 1e-06, %v3737_v11  ;;  %v4065_v11 = vsub.s32 %v4062_v20, %v6006_v27 }
 0xdc5   : > { %v3734_v13 = vpop.xlane.xlu1 %3733 }
 0xdc6   : > { %5306 = vrsqrt.f32 %v3740_v42  ;;  %v3738_v7 = vmul.f32 0.0078125, %v3734_v13 }
 0xdc7   : > { %5308 = vrsqrt.f32 %v3741_v17 }
 0xdc8   : > { %v3742_v18 = vadd.f32 1e-06, %v3738_v7 }
 0xdca   : > { %5310 = vrsqrt.f32 %v3742_v18 }
 0xdcf   : > { %v5305_v19 = vpop.eup %5304 }
 0xdd0   : > { %v3747_v22 = vmul.f32 %v5305_v19, %v6568_v12 }
 0xdd2   : > { %v3757_v36 = vmul.f32 %v4555_v24, %v3747_v22 }
 0xdd3   : > { %v5307_v29 = vpop.eup %5306 }
 0xdd4   : > { %v5309_v10 = vpop.eup %5308  ;;  %v3748_v37 = vmul.f32 %v5307_v29, %v6574_v60  ;;  %v3767_v34 = vadd.f32 %v4556_v43, %v3757_v36 }
 0xdd5   : > { %v3749_v38 = vmul.f32 %v5309_v10, %v6570_v51 }
 0xdd6   : > { %v3758_v39 = vmul.f32 %v4555_v24, %v3748_v37 }
 0xdd7   : > { %v5311_v44 = vpop.eup %5310  ;;  %v3759_v16 = vmul.f32 %v4555_v24, %v3749_v38 }
 0xdd8   : > { %v3750_v12 = vmul.f32 %v5311_v44, %v6576_v3  ;;  %v3768_v15 = vadd.f32 %v4556_v43, %v3758_v39 }
 0xdd9   : > { %v3769_v45 = vadd.f32 %v4556_v43, %v3759_v16 }
 0xdda   : > { %v3760_v40 = vmul.f32 %v4555_v24, %v3750_v12  ;;  %v3771_v31 = vadd.f32 %v3768_v15, %v3767_v34 }
 0xddc   : > { %v3770_v46 = vadd.f32 %v4556_v43, %v3760_v40  ;;  %v3772_v47 = vrot.slane %v3771_v31, 4 }
 0xdde   : > { %v3773_v32 = vadd.f32 %v3772_v47, %v3771_v31  ;;  %v3778_v60 = vadd.f32 %v3770_v46, %v3769_v45 }
 0xde0   : > { %v3774_v1 = vrot.slane %v3773_v32, 2  ;;  %v3779_v51 = vrot.slane %v3778_v60, 4 }
 0xde2   : > { %v3775_v59 = vadd.f32 %v3774_v1, %v3773_v32  ;;  %v3780_v2 = vadd.f32 %v3779_v51, %v3778_v60 }
 0xde4   : > { %v3776_v0 = vrot.slane %v3775_v59, 1  ;;  %v3781_v8 = vrot.slane %v3780_v2, 2 }
 0xde6   : > { %v3777_v48 = vadd.f32 %v3776_v0, %v3775_v59  ;;  %v3782_v53 = vadd.f32 %v3781_v8, %v3780_v2 }
 0xde8   : > { %v3783_v49 = vrot.slane %v3782_v53, 1  ;;  %v3786_v50 = vmul.f32 0.0625, %v3777_v48 }
 0xdea   : > { %v3784_v3 = vadd.f32 %v3783_v49, %v3782_v53  ;;  %v3788_v25 = vpack.c.bf16 %v3786_v50, %v3786_v50 }
 0xdec   : > { %v3787_v41 = vmul.f32 0.0625, %v3784_v3  ;;  %v3841_v54 = vunpack.c.l.b16 %v3788_v25 }
 0xdee   : > { %v3789_v52 = vpack.c.bf16 %v3787_v41, %v3787_v41 }
 0xdf0   : > { %v3842_v56 = vunpack.c.l.b16 %v3789_v52 }
 0xdf2   : > { %v3844_v57 = vsel %vm3843_vm8, %v3842_v56, %v3841_v54 }
 0xdf3   : > { %v3845_v6 = vpack.c.b16 %v3844_v57, %v3844_v57 }
 0xdf5   : > { %4008 = vmatmul.mubr.bf16.vlgmr.msra.gmra.mxu0 %v3845_v6  ;;  %4896 = vmatmul.mubr.bf16.vlgmr.msra.gmra.mxu1 %v3845_v6 }
 0xeb5   : > { %v4009_v4 = vpop.f32.mrf.mxu0  ;;  %v4050_v5 = vpop.f32.mrf.mxu1 }
 0xeb6   : > { %v4010_v9 = vadd.f32 %v4009_v4, %v3827_v62  ;;  %v4051_v35 = vadd.f32 %v4050_v5, %v3835_v23 }
 0xeb7   : > { %v4011_v21 = vpop.f32.mrf.mxu0  ;;  %v4897_v33 = vpop.f32.mrf.mxu1 }
 0xeb8   : > { %v4012_v42 = vadd.f32 %v4011_v21, %v3831_v14  ;;  %v4073_v28 = vrot.slane %v4051_v35, %v4065_v11 }
 0xeb9   : > { %v4013_v17 = vpop.f32.mrf.mxu0  ;;  %v4053_v13 = vpop.f32.mrf.mxu1 }
 0xeba   : > { %v4059_v7 = vcombine.low %v4010_v9, %v4012_v42 }
 0xebb   : > { %v4014_v18 = vpop.f32.mrf.mxu0  ;;  %v4898_v19 = vpop.f32.mrf.mxu1 }
 0xebc   : > { %v4066_v22 = vrot.slane %v4059_v7, %v4065_v11 }
 0xebe   : > { %v4074_v63 = vcombine.low %v4066_v22, %v4073_v28  ;;  %v4075_v24 = vcombine.high %v4066_v22, %v4073_v28 }
 0xec0   : > { %v4082_v30 = vrot.slane %v4074_v63, %v4065_v11  ;;  %v4089_v29 = vrot.slane %v4075_v24, %v4065_v11 }
 0xec2   : > { %4096 = vst.msk [vmem:[%s6720_s12] sm:$0x7] %vm4094_vm9, %v4082_v30  ;;  %4097 = vst.msk [vmem:[%s6720_s12 + $0x3] sm:$0x7] %vm4094_vm9, %v4089_v29 }
 0xec3 PF: > { %s40_s19 = sadd.s32 1, %s5572_s19   ;;  %s6721_s5 = sld [smem:[#allocation23_spill]] }
 0xec4   : > { %p37_p9 = scmp.ge.s32.totalorder %s40_s19, 4   ;;  %s6722_s29 = sld [smem:[#allocation25_spill]] }
 0xec5   : > { %s6723_s17 = sld [smem:[#allocation24_spill]]  ;;  %s6724_s27 = smov %s5556_s28 }
 0xec6   : > { %s6726_s30 = smov %s5568_s0 }
 0xec7   :  { %39 = sbr.rel (!%p37_p9) target bundleno = 30 (0x1e), region = 235 }
 0xec9   : > { %s6725_s28 = smov %s6721_s5 }
 0xecb   : > { %s6727_s0 = smov %s6723_s17 }
 0xecc   :  { %4120 = vsyncpa [#allocation8], 1 }
 0xecd   :  { %4122 = vsyncpa [#allocation8 + $0x1], 1 }
 0xece   :  { %4123 = vsyncpa [#allocation10], 1 }
 0xecf   :  { %4125 = vsyncpa [#allocation10 + $0x1], 1 }
 0xed0   :  { %4126 = vsyncpa [#allocation13], 1 }
 0xed1   :  { %4128 = vsyncpa [#allocation13 + $0x1], 1 }
 0xed2   :  { %4129 = vsyncpa [#allocation16], 1 }
 0xed3   :  { %4131 = vsyncpa [#allocation16 + $0x1], 1 }

</bundles_post_ra>
